<compile_context>
chip_gen: v7x
topology: tpu7x:2x2x1
jax: 0.10.0
libtpu: 0.0.40
codegen_flags: <defaults>
</compile_context>

<pallas_src>
import functools
import math

import jax
import jax.numpy as jnp
from jax import lax
from jax.experimental import pallas as pl
from jax.experimental.pallas import tpu as pltpu


def _round_up(x, m):
    return (x + m - 1) // m * m


def _vmem_capacity_bytes():
    """Physical VMEM of the local TPU generation (fallback: 128 MiB)."""
    try:
        return int(pltpu.get_tpu_info().vmem_capacity_bytes)
    except Exception:
        return 128 * 1024 * 1024


def _weight_spec(block_shape, index_map, single_buffer):
    """BlockSpec for a grid-invariant weight.

    With single_buffer=True the block is kept resident with ONE buffer instead
    of the default double buffering (a 2x VMEM saving that matters for
    multi-MiB weights on v7x's 64 MiB VMEM)."""
    if single_buffer:
        return pl.BlockSpec(block_shape, index_map, pipeline_mode=pl.Buffered(1))
    return pl.BlockSpec(block_shape, index_map)


# ---------------------------------------------------------------------------
# Kernel 1: fused QKV projection (one matmul) + per-head RMSNorm
# ---------------------------------------------------------------------------
def _qkv_kernel(x_ref, w_ref, qn_ref, kn_ref, q_ref, k_ref, v_ref, *,
                num_heads, dh, eps):
    x = x_ref[0]                                          # (blk_q, D) native dtype
    # One long MXU pass over all heads and q/k/v: (blk_q, D) x (D, 3D) -> f32.
    y = jnp.dot(x, w_ref[...], preferred_element_type=jnp.float32)
    qn = qn_ref[...]                                      # (1, dh) f32, 1/sqrt(dh) folded
    kn = kn_ref[...]                                      # (1, dh) f32
    for h in range(num_heads):                            # slice + RMSNorm only, no matmul
        base = 3 * dh * h
        q = y[:, base:base + dh]
        k = y[:, base + dh:base + 2 * dh]
        v = y[:, base + 2 * dh:base + 3 * dh]
        # per-head RMSNorm (qkv_norm="RRI": R on q, R on k, identity on v)
        q = q * lax.rsqrt(jnp.mean(q * q, axis=-1, keepdims=True) + eps) * qn
        k = k * lax.rsqrt(jnp.mean(k * k, axis=-1, keepdims=True) + eps) * kn
        q_ref[0, h] = q.astype(q_ref.dtype)
        k_ref[0, h] = k.astype(k_ref.dtype)
        v_ref[0, h] = v.astype(v_ref.dtype)


# ---------------------------------------------------------------------------
# Kernel 2: flash attention, online softmax over kv tiles
# ---------------------------------------------------------------------------
def _flash_kernel(q_ref, k_ref, v_ref, o_ref, m_ref, l_ref, acc_ref, *,
                  seq_len, block_kv, needs_mask):
    ki = pl.program_id(3)

    @pl.when(ki == 0)
    def _init():
        m_ref[...] = jnp.full(m_ref.shape, -1e30, jnp.float32)
        l_ref[...] = jnp.zeros(l_ref.shape, jnp.float32)
        acc_ref[...] = jnp.zeros(acc_ref.shape, jnp.float32)

    q = q_ref[0, 0]                                       # (blk_q,  dh) native dtype
    k = k_ref[0, 0]                                       # (blk_kv, dh)
    v = v_ref[0, 0]                                       # (blk_kv, dh)

    # q @ k^T without an explicit transpose (NT matmul: contract the last dims).
    s = lax.dot_general(q, k, (((1,), (1,)), ((), ())),
                        preferred_element_type=jnp.float32)   # (blk_q, blk_kv) f32

    if needs_mask:                                        # only when L was padded to Lp
        col = ki * block_kv + lax.broadcasted_iota(jnp.int32, s.shape, 1)
        s = jnp.where(col < seq_len, s, -1e30)

    m_prev = m_ref[...]
    m_new = jnp.maximum(m_prev, jnp.max(s, axis=-1, keepdims=True))
    alpha = jnp.exp(m_prev - m_new)
    p = jnp.exp(s - m_new)
    l_ref[...] = alpha * l_ref[...] + jnp.sum(p, axis=-1, keepdims=True)
    acc_ref[...] = alpha * acc_ref[...] + jnp.dot(
        p.astype(v.dtype), v, preferred_element_type=jnp.float32)
    m_ref[...] = m_new

    @pl.when(ki == pl.num_programs(3) - 1)
    def _finalize():
        l = l_ref[...]
        inv = pl.reciprocal(l, approx=True)               # EUP slot (off the VALU path)
        inv = inv * (2.0 - l * inv)                       # one Newton step -> f32 accuracy
        o_ref[...] = (acc_ref[...] * inv).astype(o_ref.dtype).reshape(o_ref.shape)


# ---------------------------------------------------------------------------
# Kernel 3: output projection — one full-depth matmul per token tile
# ---------------------------------------------------------------------------
def _out_proj_dense_kernel(a_ref, w_ref, o_ref):
    # attn already lane-dense (blk_q, D): single (blk_q, D) x (D, D) matmul.
    o_ref[0] = jnp.dot(a_ref[0], w_ref[...],
                       preferred_element_type=jnp.float32).astype(o_ref.dtype)


def _out_proj_heads_kernel(a_ref, w_ref, o_ref, *, num_heads):
    # Head-major attn (nh, blk_q, dh); accumulate in vregs, no scratch / phases.
    acc = jnp.dot(a_ref[0, 0], w_ref[0], preferred_element_type=jnp.float32)
    for h in range(1, num_heads):
        acc = acc + jnp.dot(a_ref[0, h], w_ref[h],
                            preferred_element_type=jnp.float32)
    o_ref[0] = acc.astype(o_ref.dtype)


# ---------------------------------------------------------------------------
# Wrapper
# ---------------------------------------------------------------------------
def video_attn_forward(x_thwbd, params, num_heads, *, block_q=None, block_kv=None):
    """Self-attention path of VideoAttn.  x: (T, H, W, B, D)."""
    try:
        return _forward(x_thwbd, params, num_heads, block_q=block_q,
                        block_kv=block_kv, single_buffer_weights=True)
    except Exception:
        # BlockSpec.pipeline_mode / pl.Buffered(1) not available on this JAX:
        # fall back to default double-buffered weights (identical math).
        return _forward(x_thwbd, params, num_heads, block_q=block_q,
                        block_kv=block_kv, single_buffer_weights=False)


def _forward(x_thwbd, params, num_heads, *, block_q, block_kv,
             single_buffer_weights):
    T, H, W, B, D = x_thwbd.shape
    assert D % num_heads == 0
    L = T * H * W
    dh = D // num_heads
    dtype = x_thwbd.dtype
    eps = 1e-6

    # Generation-aware VMEM budget (~96 MiB on v5e/v6e, ~48 MiB on v7x).
    vmem_cap = _vmem_capacity_bytes()
    vmem_limit = min(vmem_cap * 3 // 4, 100 * 1024 * 1024)

    # Decoupled q / kv tile sizes, multiples of 16 (bf16 sublane packing).
    l16 = _round_up(L, 16)
    if block_q is None:
        block_q = min(256 if vmem_cap <= 80 * 1024 * 1024 else 512, l16)
    if block_kv is None:
        block_kv = min(256, l16)
    assert block_q % 16 == 0 and block_kv % 16 == 0

    Lp = _round_up(L, math.lcm(block_q, block_kv))
    n_q = Lp // block_q
    n_kv = Lp // block_kv

    # (T,H,W,B,D) -> (L,B,D) -> (B,L,D): batch-major token slab, padded to Lp.
    x_bld = jnp.transpose(x_thwbd.reshape(L, B, D), (1, 0, 2))
    if Lp != L:
        x_bld = jnp.pad(x_bld, ((0, 0), (0, Lp - L), (0, 0)))

    # Fused QKV weight (D, 3D) with head-major column grouping [h][q | k | v].
    # torch nn.Linear weights are (out, in) -> transpose to (in, out).
    wq_h = params["wq"].T.reshape(D, num_heads, dh)
    wk_h = params["wk"].T.reshape(D, num_heads, dh)
    wv_h = params["wv"].T.reshape(D, num_heads, dh)
    wqkv = jnp.concatenate([wq_h, wk_h, wv_h], axis=-1).reshape(D, 3 * D)
    wqkv = wqkv.astype(dtype)

    # Fold the 1/sqrt(dh) attention scale into the q RMSNorm weight.
    qn = (params["q_norm_w"].astype(jnp.float32)
          * (1.0 / math.sqrt(dh))).reshape(1, dh)
    kn = params["k_norm_w"].astype(jnp.float32).reshape(1, dh)

    # ---- 1) fused QKV projection + per-head RMSNorm -> (B, nh, Lp, dh) x 3 ----
    qkv_shape = jax.ShapeDtypeStruct((B, num_heads, Lp, dh), dtype)
    q_all, k_all, v_all = pl.pallas_call(
        functools.partial(_qkv_kernel, num_heads=num_heads, dh=dh, eps=eps),
        out_shape=(qkv_shape, qkv_shape, qkv_shape),
        grid_spec=pltpu.PrefetchScalarGridSpec(
            num_scalar_prefetch=0,
            grid=(B, n_q),
            in_specs=[
                pl.BlockSpec((1, block_q, D), lambda b, l: (b, l, 0)),
                _weight_spec((D, 3 * D), lambda b, l: (0, 0),
                             single_buffer_weights),
                pl.BlockSpec((1, dh), lambda b, l: (0, 0)),
                pl.BlockSpec((1, dh), lambda b, l: (0, 0)),
            ],
            out_specs=(
                pl.BlockSpec((1, num_heads, block_q, dh), lambda b, l: (b, 0, l, 0)),
                pl.BlockSpec((1, num_heads, block_q, dh), lambda b, l: (b, 0, l, 0)),
                pl.BlockSpec((1, num_heads, block_q, dh), lambda b, l: (b, 0, l, 0)),
            ),
        ),
        compiler_params=pltpu.CompilerParams(
            dimension_semantics=("parallel", "parallel"),
            vmem_limit_bytes=vmem_limit),
    )(x_bld, wqkv, qn, kn)

    # ---- 2) flash attention over kv tiles ----
    # Lane-dense output (straight into (B, Lp, D)) when dh is a multiple of 128
    # (or there is a single head): the out projection then runs at full MXU
    # contraction depth D with no head-reduction axis.
    lane_dense = (dh % 128 == 0) or (num_heads == 1)
    if lane_dense:
        attn_shape = jax.ShapeDtypeStruct((B, Lp, D), dtype)
        attn_out_spec = pl.BlockSpec((1, block_q, dh),
                                     lambda b, h, qi, ki: (b, qi, h))
    else:
        attn_shape = jax.ShapeDtypeStruct((B, num_heads, Lp, dh), dtype)
        attn_out_spec = pl.BlockSpec((1, 1, block_q, dh),
                                     lambda b, h, qi, ki: (b, h, qi, 0))

    attn = pl.pallas_call(
        functools.partial(_flash_kernel, seq_len=L, block_kv=block_kv,
                          needs_mask=(Lp != L)),
        out_shape=attn_shape,
        grid_spec=pltpu.PrefetchScalarGridSpec(
            num_scalar_prefetch=0,
            grid=(B, num_heads, n_q, n_kv),
            in_specs=[
                pl.BlockSpec((1, 1, block_q, dh), lambda b, h, qi, ki: (b, h, qi, 0)),
                pl.BlockSpec((1, 1, block_kv, dh), lambda b, h, qi, ki: (b, h, ki, 0)),
                pl.BlockSpec((1, 1, block_kv, dh), lambda b, h, qi, ki: (b, h, ki, 0)),
            ],
            out_specs=attn_out_spec,
            scratch_shapes=[
                pltpu.VMEM((block_q, 1), jnp.float32),    # running max m
                pltpu.VMEM((block_q, 1), jnp.float32),    # running denom l
                pltpu.VMEM((block_q, dh), jnp.float32),   # output accumulator
            ],
        ),
        compiler_params=pltpu.CompilerParams(
            dimension_semantics=("parallel", "parallel", "parallel", "arbitrary"),
            vmem_limit_bytes=vmem_limit),
    )(q_all, k_all, v_all)

    # ---- 3) output projection: one (blk_q, D) x (D, D) matmul per (b, l) ----
    wo = params["wo"].T.astype(dtype)                     # (D_in = h*dh + d, D_out)
    if lane_dense:
        out_bld = pl.pallas_call(
            _out_proj_dense_kernel,
            out_shape=jax.ShapeDtypeStruct((B, Lp, D), dtype),
            grid_spec=pltpu.PrefetchScalarGridSpec(
                num_scalar_prefetch=0,
                grid=(B, n_q),
                in_specs=[
                    pl.BlockSpec((1, block_q, D), lambda b, l: (b, l, 0)),
                    _weight_spec((D, D), lambda b, l: (0, 0),
                                 single_buffer_weights),
                ],
                out_specs=pl.BlockSpec((1, block_q, D), lambda b, l: (b, l, 0)),
            ),
            compiler_params=pltpu.CompilerParams(
                dimension_semantics=("parallel", "parallel"),
                vmem_limit_bytes=vmem_limit),
        )(attn, wo)
    else:
        wo_h = wo.reshape(num_heads, dh, D)
        out_bld = pl.pallas_call(
            functools.partial(_out_proj_heads_kernel, num_heads=num_heads),
            out_shape=jax.ShapeDtypeStruct((B, Lp, D), dtype),
            grid_spec=pltpu.PrefetchScalarGridSpec(
                num_scalar_prefetch=0,
                grid=(B, n_q),
                in_specs=[
                    pl.BlockSpec((1, num_heads, block_q, dh),
                                 lambda b, l: (b, 0, l, 0)),
                    _weight_spec((num_heads, dh, D), lambda b, l: (0, 0, 0),
                                 single_buffer_weights),
                ],
                out_specs=pl.BlockSpec((1, block_q, D), lambda b, l: (b, l, 0)),
            ),
            compiler_params=pltpu.CompilerParams(
                dimension_semantics=("parallel", "parallel"),
                vmem_limit_bytes=vmem_limit),
        )(attn, wo_h)

    if Lp != L:
        out_bld = out_bld[:, :L, :]
    # (B,L,D) -> (L,B,D) -> (T,H,W,B,D)
    return jnp.transpose(out_bld, (1, 0, 2)).reshape(T, H, W, B, D)


# ---------------------------------------------------------------------------
# Pure-JAX reference (mirrors torch Attention with qkv_norm='RRI', sbhd format)
# ---------------------------------------------------------------------------
def _reference(x_thwbd, params, num_heads):
    T, H, W, B, D = x_thwbd.shape
    dh = D // num_heads
    with jax.default_matmul_precision("highest"):
        x = x_thwbd.reshape(-1, B, D).astype(jnp.float32)            # (L, B, D)
        q = x @ params["wq"].T.astype(jnp.float32)
        k = x @ params["wk"].T.astype(jnp.float32)
        v = x @ params["wv"].T.astype(jnp.float32)

        def split(t):
            return t.reshape(t.shape[0], B, num_heads, dh)

        q, k, v = split(q), split(k), split(v)

        def rms(t, w):
            return t * lax.rsqrt(jnp.mean(t * t, -1, keepdims=True) + 1e-6) * w

        q = rms(q, params["q_norm_w"].astype(jnp.float32))
        k = rms(k, params["k_norm_w"].astype(jnp.float32))

        q = q.transpose(1, 2, 0, 3)   # (B, h, L, dh)
        k = k.transpose(1, 2, 0, 3)
        v = v.transpose(1, 2, 0, 3)
        s = jnp.einsum("bhqd,bhkd->bhqk", q, k) / math.sqrt(dh)
        p = jax.nn.softmax(s, axis=-1)
        o = jnp.einsum("bhqk,bhkd->bhqd", p, v)                       # (B, h, L, dh)
        o = o.transpose(2, 0, 1, 3).reshape(-1, B, D)                 # (L, B, D)
        o = o @ params["wo"].T.astype(jnp.float32)
    return o.reshape(T, H, W, B, D)


if __name__ == "__main__":
    def make_params(key, D, dh):
        kq, kk, kv, ko = jax.random.split(key, 4)
        return {
            # torch nn.Linear weights: (out_features, in_features), bias=False
            "wq": 0.02 * jax.random.normal(kq, (D, D), dtype=jnp.float32),
            "wk": 0.02 * jax.random.normal(kk, (D, D), dtype=jnp.float32),
            "wv": 0.02 * jax.random.normal(kv, (D, D), dtype=jnp.float32),
            "wo": 0.02 * jax.random.normal(ko, (D, D), dtype=jnp.float32),
            # per-head RMSNorm weights (init = ones, matching RMSNorm __init__)
            "q_norm_w": jnp.ones((dh,), dtype=jnp.float32),
            "k_norm_w": jnp.ones((dh,), dtype=jnp.float32),
        }

    # Small shapes consistent with VideoAttn's (T, H, W, B, D) input.
    # W=5 makes L=40 not a multiple of the tile sizes -> exercises the padding /
    # kv-mask path (including a fully-masked trailing kv tile).
    T, H, W, B, D = 2, 4, 5, 2, 32
    key = jax.random.PRNGKey(0)
    kx, kp = jax.random.split(key)
    x = jax.random.normal(kx, (T, H, W, B, D), dtype=jnp.float32)

    # Config 1: 4 heads (dh=8) -> head-major flash output path; decoupled
    # block_q/block_kv with multi-tile online softmax.
    nh1 = 4
    params1 = make_params(kp, D, D // nh1)
    out1 = jax.block_until_ready(
        video_attn_forward(x, params1, nh1, block_q=32, block_kv=16))
    ref1 = _reference(x, params1, nh1)
    assert out1.shape == (T, H, W, B, D)
    err1 = float(jnp.max(jnp.abs(out1 - ref1)))
    assert jnp.allclose(out1, ref1, atol=1e-3, rtol=1e-2), f"config1 max abs err {err1}"

    # Config 2: single head (dh=D) -> lane-dense flash output + full-depth
    # (blk, D) x (D, D) out projection; generation-aware auto tile selection.
    nh2 = 1
    params2 = make_params(jax.random.fold_in(kp, 1), D, D // nh2)
    out2 = jax.block_until_ready(video_attn_forward(x, params2, nh2))
    ref2 = _reference(x, params2, nh2)
    assert out2.shape == (T, H, W, B, D)
    err2 = float(jnp.max(jnp.abs(out2 - ref2)))
    assert jnp.allclose(out2, ref2, atol=1e-3, rtol=1e-2), f"config2 max abs err {err2}"

    print("KERNEL_OK")
</pallas_src>

<mosaic_0001>
module attributes {stable_mosaic.version = 11 : i64} {
  func.func @_qkv_kernel(%arg0: i32, %arg1: i32, %arg2: memref<1x32x32xf32, #tpu.memory_space<vmem>>, %arg3: memref<32x96xf32, #tpu.memory_space<vmem>>, %arg4: memref<1x8xf32, #tpu.memory_space<vmem>>, %arg5: memref<1x8xf32, #tpu.memory_space<vmem>>, %arg6: memref<1x4x32x8xf32, #tpu.memory_space<vmem>>, %arg7: memref<1x4x32x8xf32, #tpu.memory_space<vmem>>, %arg8: memref<1x4x32x8xf32, #tpu.memory_space<vmem>>) attributes {dimension_semantics = [#tpu.dimension_semantics<parallel>, #tpu.dimension_semantics<parallel>], iteration_bounds = array<i64: 2, 2>, scalar_prefetch = 0 : i64, scratch_operands = 0 : i64, tpu.core_type = #tpu.core_type<tc>, window_params = [{transform_indices = @transform_0, window_bounds = array<i64: 1, 32, 32>}, {pipeline_mode = #tpu.pipeline_mode<synchronous>, transform_indices = @transform_1, window_bounds = array<i64: 32, 96>}, {pipeline_mode = #tpu.pipeline_mode<synchronous>, transform_indices = @transform_2, window_bounds = array<i64: 1, 8>}, {pipeline_mode = #tpu.pipeline_mode<synchronous>, transform_indices = @transform_3, window_bounds = array<i64: 1, 8>}, {transform_indices = @transform_4, window_bounds = array<i64: 1, 4, 32, 8>}, {transform_indices = @transform_5, window_bounds = array<i64: 1, 4, 32, 8>}, {transform_indices = @transform_6, window_bounds = array<i64: 1, 4, 32, 8>}]} {
    %c0 = arith.constant 0 : index
    %c0_0 = arith.constant 0 : index
    %c0_1 = arith.constant 0 : index
    %0 = vector.load %arg2[%c0, %c0_0, %c0_1] : memref<1x32x32xf32, #tpu.memory_space<vmem>>, vector<1x32x32xf32>
    %1 = vector.shape_cast %0 : vector<1x32x32xf32> to vector<32x32xf32>
    %c0_2 = arith.constant 0 : index
    %c0_3 = arith.constant 0 : index
    %2 = vector.load %arg3[%c0_2, %c0_3] : memref<32x96xf32, #tpu.memory_space<vmem>>, vector<32x96xf32>
    %cst = arith.constant dense<0.000000e+00> : vector<32x96xf32>
    %3 = tpu.matmul %1, %2, %cst {dimension_numbers = #tpu.dot_dimension_numbers<[1], [0], [0], [1], [0, 0, 1, 1], [], []>} : vector<32x32xf32>, vector<32x96xf32>, vector<32x96xf32> -> vector<32x96xf32>
    %c0_4 = arith.constant 0 : index
    %c0_5 = arith.constant 0 : index
    %4 = vector.load %arg4[%c0_4, %c0_5] : memref<1x8xf32, #tpu.memory_space<vmem>>, vector<1x8xf32>
    %c0_6 = arith.constant 0 : index
    %c0_7 = arith.constant 0 : index
    %5 = vector.load %arg5[%c0_6, %c0_7] : memref<1x8xf32, #tpu.memory_space<vmem>>, vector<1x8xf32>
    %6 = vector.extract_strided_slice %3 {offsets = [0, 0], sizes = [32, 8], strides = [1, 1]} : vector<32x96xf32> to vector<32x8xf32>
    %7 = vector.extract_strided_slice %3 {offsets = [0, 8], sizes = [32, 8], strides = [1, 1]} : vector<32x96xf32> to vector<32x8xf32>
    %8 = vector.extract_strided_slice %3 {offsets = [0, 16], sizes = [32, 8], strides = [1, 1]} : vector<32x96xf32> to vector<32x8xf32>
    %9 = arith.mulf %6, %6 : vector<32x8xf32>
    %cst_8 = arith.constant dense<0.000000e+00> : vector<32xf32>
    %10 = vector.multi_reduction <add>, %9, %cst_8 [1] : vector<32x8xf32> to vector<32xf32>
    %11 = vector.shape_cast %10 : vector<32xf32> to vector<32x1xf32>
    %cst_9 = arith.constant 8.000000e+00 : f32
    %12 = vector.broadcast %cst_9 : f32 to vector<32x1xf32>
    %13 = arith.divf %11, %12 : vector<32x1xf32>
    %cst_10 = arith.constant 9.99999997E-7 : f32
    %14 = vector.broadcast %cst_10 : f32 to vector<32x1xf32>
    %15 = arith.addf %13, %14 : vector<32x1xf32>
    %16 = math.rsqrt %15 : vector<32x1xf32>
    %17 = vector.broadcast %16 : vector<32x1xf32> to vector<32x8xf32>
    %18 = arith.mulf %6, %17 : vector<32x8xf32>
    %19 = vector.broadcast %4 : vector<1x8xf32> to vector<32x8xf32>
    %20 = arith.mulf %18, %19 : vector<32x8xf32>
    %21 = arith.mulf %7, %7 : vector<32x8xf32>
    %cst_11 = arith.constant dense<0.000000e+00> : vector<32xf32>
    %22 = vector.multi_reduction <add>, %21, %cst_11 [1] : vector<32x8xf32> to vector<32xf32>
    %23 = vector.shape_cast %22 : vector<32xf32> to vector<32x1xf32>
    %cst_12 = arith.constant 8.000000e+00 : f32
    %24 = vector.broadcast %cst_12 : f32 to vector<32x1xf32>
    %25 = arith.divf %23, %24 : vector<32x1xf32>
    %cst_13 = arith.constant 9.99999997E-7 : f32
    %26 = vector.broadcast %cst_13 : f32 to vector<32x1xf32>
    %27 = arith.addf %25, %26 : vector<32x1xf32>
    %28 = math.rsqrt %27 : vector<32x1xf32>
    %29 = vector.broadcast %28 : vector<32x1xf32> to vector<32x8xf32>
    %30 = arith.mulf %7, %29 : vector<32x8xf32>
    %31 = vector.broadcast %5 : vector<1x8xf32> to vector<32x8xf32>
    %32 = arith.mulf %30, %31 : vector<32x8xf32>
    %c0_14 = arith.constant 0 : index
    %c0_15 = arith.constant 0 : index
    %c0_16 = arith.constant 0 : index
    %c0_17 = arith.constant 0 : index
    %33 = vector.load %arg6[%c0_14, %c0_15, %c0_16, %c0_17] : memref<1x4x32x8xf32, #tpu.memory_space<vmem>>, vector<1x1x32x8xf32>
    %34 = vector.shape_cast %33 : vector<1x1x32x8xf32> to vector<32x8xf32>
    %35 = vector.shape_cast %20 : vector<32x8xf32> to vector<1x1x32x8xf32>
    tpu.vector_store %arg6[%c0_14, %c0_15, %c0_16, %c0_17], %35 {strides = array<i32>} : memref<1x4x32x8xf32, #tpu.memory_space<vmem>>, vector<1x1x32x8xf32>,
    %c0_18 = arith.constant 0 : index
    %c0_19 = arith.constant 0 : index
    %c0_20 = arith.constant 0 : index
    %c0_21 = arith.constant 0 : index
    %36 = vector.load %arg7[%c0_18, %c0_19, %c0_20, %c0_21] : memref<1x4x32x8xf32, #tpu.memory_space<vmem>>, vector<1x1x32x8xf32>
    %37 = vector.shape_cast %36 : vector<1x1x32x8xf32> to vector<32x8xf32>
    %38 = vector.shape_cast %32 : vector<32x8xf32> to vector<1x1x32x8xf32>
    tpu.vector_store %arg7[%c0_18, %c0_19, %c0_20, %c0_21], %38 {strides = array<i32>} : memref<1x4x32x8xf32, #tpu.memory_space<vmem>>, vector<1x1x32x8xf32>,
    %c0_22 = arith.constant 0 : index
    %c0_23 = arith.constant 0 : index
    %c0_24 = arith.constant 0 : index
    %c0_25 = arith.constant 0 : index
    %39 = vector.load %arg8[%c0_22, %c0_23, %c0_24, %c0_25] : memref<1x4x32x8xf32, #tpu.memory_space<vmem>>, vector<1x1x32x8xf32>
    %40 = vector.shape_cast %39 : vector<1x1x32x8xf32> to vector<32x8xf32>
    %41 = vector.shape_cast %8 : vector<32x8xf32> to vector<1x1x32x8xf32>
    tpu.vector_store %arg8[%c0_22, %c0_23, %c0_24, %c0_25], %41 {strides = array<i32>} : memref<1x4x32x8xf32, #tpu.memory_space<vmem>>, vector<1x1x32x8xf32>,
    %42 = vector.extract_strided_slice %3 {offsets = [0, 24], sizes = [32, 8], strides = [1, 1]} : vector<32x96xf32> to vector<32x8xf32>
    %43 = vector.extract_strided_slice %3 {offsets = [0, 32], sizes = [32, 8], strides = [1, 1]} : vector<32x96xf32> to vector<32x8xf32>
    %44 = vector.extract_strided_slice %3 {offsets = [0, 40], sizes = [32, 8], strides = [1, 1]} : vector<32x96xf32> to vector<32x8xf32>
    %45 = arith.mulf %42, %42 : vector<32x8xf32>
    %cst_26 = arith.constant dense<0.000000e+00> : vector<32xf32>
    %46 = vector.multi_reduction <add>, %45, %cst_26 [1] : vector<32x8xf32> to vector<32xf32>
    %47 = vector.shape_cast %46 : vector<32xf32> to vector<32x1xf32>
    %cst_27 = arith.constant 8.000000e+00 : f32
    %48 = vector.broadcast %cst_27 : f32 to vector<32x1xf32>
    %49 = arith.divf %47, %48 : vector<32x1xf32>
    %cst_28 = arith.constant 9.99999997E-7 : f32
    %50 = vector.broadcast %cst_28 : f32 to vector<32x1xf32>
    %51 = arith.addf %49, %50 : vector<32x1xf32>
    %52 = math.rsqrt %51 : vector<32x1xf32>
    %53 = vector.broadcast %52 : vector<32x1xf32> to vector<32x8xf32>
    %54 = arith.mulf %42, %53 : vector<32x8xf32>
    %55 = vector.broadcast %4 : vector<1x8xf32> to vector<32x8xf32>
    %56 = arith.mulf %54, %55 : vector<32x8xf32>
    %57 = arith.mulf %43, %43 : vector<32x8xf32>
    %cst_29 = arith.constant dense<0.000000e+00> : vector<32xf32>
    %58 = vector.multi_reduction <add>, %57, %cst_29 [1] : vector<32x8xf32> to vector<32xf32>
    %59 = vector.shape_cast %58 : vector<32xf32> to vector<32x1xf32>
    %cst_30 = arith.constant 8.000000e+00 : f32
    %60 = vector.broadcast %cst_30 : f32 to vector<32x1xf32>
    %61 = arith.divf %59, %60 : vector<32x1xf32>
    %cst_31 = arith.constant 9.99999997E-7 : f32
    %62 = vector.broadcast %cst_31 : f32 to vector<32x1xf32>
    %63 = arith.addf %61, %62 : vector<32x1xf32>
    %64 = math.rsqrt %63 : vector<32x1xf32>
    %65 = vector.broadcast %64 : vector<32x1xf32> to vector<32x8xf32>
    %66 = arith.mulf %43, %65 : vector<32x8xf32>
    %67 = vector.broadcast %5 : vector<1x8xf32> to vector<32x8xf32>
    %68 = arith.mulf %66, %67 : vector<32x8xf32>
    %c0_32 = arith.constant 0 : index
    %c1 = arith.constant 1 : index
    %c0_33 = arith.constant 0 : index
    %c0_34 = arith.constant 0 : index
    %69 = vector.load %arg6[%c0_32, %c1, %c0_33, %c0_34] : memref<1x4x32x8xf32, #tpu.memory_space<vmem>>, vector<1x1x32x8xf32>
    %70 = vector.shape_cast %69 : vector<1x1x32x8xf32> to vector<32x8xf32>
    %71 = vector.shape_cast %56 : vector<32x8xf32> to vector<1x1x32x8xf32>
    tpu.vector_store %arg6[%c0_32, %c1, %c0_33, %c0_34], %71 {strides = array<i32>} : memref<1x4x32x8xf32, #tpu.memory_space<vmem>>, vector<1x1x32x8xf32>,
    %c0_35 = arith.constant 0 : index
    %c1_36 = arith.constant 1 : index
    %c0_37 = arith.constant 0 : index
    %c0_38 = arith.constant 0 : index
    %72 = vector.load %arg7[%c0_35, %c1_36, %c0_37, %c0_38] : memref<1x4x32x8xf32, #tpu.memory_space<vmem>>, vector<1x1x32x8xf32>
    %73 = vector.shape_cast %72 : vector<1x1x32x8xf32> to vector<32x8xf32>
    %74 = vector.shape_cast %68 : vector<32x8xf32> to vector<1x1x32x8xf32>
    tpu.vector_store %arg7[%c0_35, %c1_36, %c0_37, %c0_38], %74 {strides = array<i32>} : memref<1x4x32x8xf32, #tpu.memory_space<vmem>>, vector<1x1x32x8xf32>,
    %c0_39 = arith.constant 0 : index
    %c1_40 = arith.constant 1 : index
    %c0_41 = arith.constant 0 : index
    %c0_42 = arith.constant 0 : index
    %75 = vector.load %arg8[%c0_39, %c1_40, %c0_41, %c0_42] : memref<1x4x32x8xf32, #tpu.memory_space<vmem>>, vector<1x1x32x8xf32>
    %76 = vector.shape_cast %75 : vector<1x1x32x8xf32> to vector<32x8xf32>
    %77 = vector.shape_cast %44 : vector<32x8xf32> to vector<1x1x32x8xf32>
    tpu.vector_store %arg8[%c0_39, %c1_40, %c0_41, %c0_42], %77 {strides = array<i32>} : memref<1x4x32x8xf32, #tpu.memory_space<vmem>>, vector<1x1x32x8xf32>,
    %78 = vector.extract_strided_slice %3 {offsets = [0, 48], sizes = [32, 8], strides = [1, 1]} : vector<32x96xf32> to vector<32x8xf32>
    %79 = vector.extract_strided_slice %3 {offsets = [0, 56], sizes = [32, 8], strides = [1, 1]} : vector<32x96xf32> to vector<32x8xf32>
    %80 = vector.extract_strided_slice %3 {offsets = [0, 64], sizes = [32, 8], strides = [1, 1]} : vector<32x96xf32> to vector<32x8xf32>
    %81 = arith.mulf %78, %78 : vector<32x8xf32>
    %cst_43 = arith.constant dense<0.000000e+00> : vector<32xf32>
    %82 = vector.multi_reduction <add>, %81, %cst_43 [1] : vector<32x8xf32> to vector<32xf32>
    %83 = vector.shape_cast %82 : vector<32xf32> to vector<32x1xf32>
    %cst_44 = arith.constant 8.000000e+00 : f32
    %84 = vector.broadcast %cst_44 : f32 to vector<32x1xf32>
    %85 = arith.divf %83, %84 : vector<32x1xf32>
    %cst_45 = arith.constant 9.99999997E-7 : f32
    %86 = vector.broadcast %cst_45 : f32 to vector<32x1xf32>
    %87 = arith.addf %85, %86 : vector<32x1xf32>
    %88 = math.rsqrt %87 : vector<32x1xf32>
    %89 = vector.broadcast %88 : vector<32x1xf32> to vector<32x8xf32>
    %90 = arith.mulf %78, %89 : vector<32x8xf32>
    %91 = vector.broadcast %4 : vector<1x8xf32> to vector<32x8xf32>
    %92 = arith.mulf %90, %91 : vector<32x8xf32>
    %93 = arith.mulf %79, %79 : vector<32x8xf32>
    %cst_46 = arith.constant dense<0.000000e+00> : vector<32xf32>
    %94 = vector.multi_reduction <add>, %93, %cst_46 [1] : vector<32x8xf32> to vector<32xf32>
    %95 = vector.shape_cast %94 : vector<32xf32> to vector<32x1xf32>
    %cst_47 = arith.constant 8.000000e+00 : f32
    %96 = vector.broadcast %cst_47 : f32 to vector<32x1xf32>
    %97 = arith.divf %95, %96 : vector<32x1xf32>
    %cst_48 = arith.constant 9.99999997E-7 : f32
    %98 = vector.broadcast %cst_48 : f32 to vector<32x1xf32>
    %99 = arith.addf %97, %98 : vector<32x1xf32>
    %100 = math.rsqrt %99 : vector<32x1xf32>
    %101 = vector.broadcast %100 : vector<32x1xf32> to vector<32x8xf32>
    %102 = arith.mulf %79, %101 : vector<32x8xf32>
    %103 = vector.broadcast %5 : vector<1x8xf32> to vector<32x8xf32>
    %104 = arith.mulf %102, %103 : vector<32x8xf32>
    %c0_49 = arith.constant 0 : index
    %c2 = arith.constant 2 : index
    %c0_50 = arith.constant 0 : index
    %c0_51 = arith.constant 0 : index
    %105 = vector.load %arg6[%c0_49, %c2, %c0_50, %c0_51] : memref<1x4x32x8xf32, #tpu.memory_space<vmem>>, vector<1x1x32x8xf32>
    %106 = vector.shape_cast %105 : vector<1x1x32x8xf32> to vector<32x8xf32>
    %107 = vector.shape_cast %92 : vector<32x8xf32> to vector<1x1x32x8xf32>
    tpu.vector_store %arg6[%c0_49, %c2, %c0_50, %c0_51], %107 {strides = array<i32>} : memref<1x4x32x8xf32, #tpu.memory_space<vmem>>, vector<1x1x32x8xf32>,
    %c0_52 = arith.constant 0 : index
    %c2_53 = arith.constant 2 : index
    %c0_54 = arith.constant 0 : index
    %c0_55 = arith.constant 0 : index
    %108 = vector.load %arg7[%c0_52, %c2_53, %c0_54, %c0_55] : memref<1x4x32x8xf32, #tpu.memory_space<vmem>>, vector<1x1x32x8xf32>
    %109 = vector.shape_cast %108 : vector<1x1x32x8xf32> to vector<32x8xf32>
    %110 = vector.shape_cast %104 : vector<32x8xf32> to vector<1x1x32x8xf32>
    tpu.vector_store %arg7[%c0_52, %c2_53, %c0_54, %c0_55], %110 {strides = array<i32>} : memref<1x4x32x8xf32, #tpu.memory_space<vmem>>, vector<1x1x32x8xf32>,
    %c0_56 = arith.constant 0 : index
    %c2_57 = arith.constant 2 : index
    %c0_58 = arith.constant 0 : index
    %c0_59 = arith.constant 0 : index
    %111 = vector.load %arg8[%c0_56, %c2_57, %c0_58, %c0_59] : memref<1x4x32x8xf32, #tpu.memory_space<vmem>>, vector<1x1x32x8xf32>
    %112 = vector.shape_cast %111 : vector<1x1x32x8xf32> to vector<32x8xf32>
    %113 = vector.shape_cast %80 : vector<32x8xf32> to vector<1x1x32x8xf32>
    tpu.vector_store %arg8[%c0_56, %c2_57, %c0_58, %c0_59], %113 {strides = array<i32>} : memref<1x4x32x8xf32, #tpu.memory_space<vmem>>, vector<1x1x32x8xf32>,
    %114 = vector.extract_strided_slice %3 {offsets = [0, 72], sizes = [32, 8], strides = [1, 1]} : vector<32x96xf32> to vector<32x8xf32>
    %115 = vector.extract_strided_slice %3 {offsets = [0, 80], sizes = [32, 8], strides = [1, 1]} : vector<32x96xf32> to vector<32x8xf32>
    %116 = vector.extract_strided_slice %3 {offsets = [0, 88], sizes = [32, 8], strides = [1, 1]} : vector<32x96xf32> to vector<32x8xf32>
    %117 = arith.mulf %114, %114 : vector<32x8xf32>
    %cst_60 = arith.constant dense<0.000000e+00> : vector<32xf32>
    %118 = vector.multi_reduction <add>, %117, %cst_60 [1] : vector<32x8xf32> to vector<32xf32>
    %119 = vector.shape_cast %118 : vector<32xf32> to vector<32x1xf32>
    %cst_61 = arith.constant 8.000000e+00 : f32
    %120 = vector.broadcast %cst_61 : f32 to vector<32x1xf32>
    %121 = arith.divf %119, %120 : vector<32x1xf32>
    %cst_62 = arith.constant 9.99999997E-7 : f32
    %122 = vector.broadcast %cst_62 : f32 to vector<32x1xf32>
    %123 = arith.addf %121, %122 : vector<32x1xf32>
    %124 = math.rsqrt %123 : vector<32x1xf32>
    %125 = vector.broadcast %124 : vector<32x1xf32> to vector<32x8xf32>
    %126 = arith.mulf %114, %125 : vector<32x8xf32>
    %127 = vector.broadcast %4 : vector<1x8xf32> to vector<32x8xf32>
    %128 = arith.mulf %126, %127 : vector<32x8xf32>
    %129 = arith.mulf %115, %115 : vector<32x8xf32>
    %cst_63 = arith.constant dense<0.000000e+00> : vector<32xf32>
    %130 = vector.multi_reduction <add>, %129, %cst_63 [1] : vector<32x8xf32> to vector<32xf32>
    %131 = vector.shape_cast %130 : vector<32xf32> to vector<32x1xf32>
    %cst_64 = arith.constant 8.000000e+00 : f32
    %132 = vector.broadcast %cst_64 : f32 to vector<32x1xf32>
    %133 = arith.divf %131, %132 : vector<32x1xf32>
    %cst_65 = arith.constant 9.99999997E-7 : f32
    %134 = vector.broadcast %cst_65 : f32 to vector<32x1xf32>
    %135 = arith.addf %133, %134 : vector<32x1xf32>
    %136 = math.rsqrt %135 : vector<32x1xf32>
    %137 = vector.broadcast %136 : vector<32x1xf32> to vector<32x8xf32>
    %138 = arith.mulf %115, %137 : vector<32x8xf32>
    %139 = vector.broadcast %5 : vector<1x8xf32> to vector<32x8xf32>
    %140 = arith.mulf %138, %139 : vector<32x8xf32>
    %c0_66 = arith.constant 0 : index
    %c3 = arith.constant 3 : index
    %c0_67 = arith.constant 0 : index
    %c0_68 = arith.constant 0 : index
    %141 = vector.load %arg6[%c0_66, %c3, %c0_67, %c0_68] : memref<1x4x32x8xf32, #tpu.memory_space<vmem>>, vector<1x1x32x8xf32>
    %142 = vector.shape_cast %141 : vector<1x1x32x8xf32> to vector<32x8xf32>
    %143 = vector.shape_cast %128 : vector<32x8xf32> to vector<1x1x32x8xf32>
    tpu.vector_store %arg6[%c0_66, %c3, %c0_67, %c0_68], %143 {strides = array<i32>} : memref<1x4x32x8xf32, #tpu.memory_space<vmem>>, vector<1x1x32x8xf32>,
    %c0_69 = arith.constant 0 : index
    %c3_70 = arith.constant 3 : index
    %c0_71 = arith.constant 0 : index
    %c0_72 = arith.constant 0 : index
    %144 = vector.load %arg7[%c0_69, %c3_70, %c0_71, %c0_72] : memref<1x4x32x8xf32, #tpu.memory_space<vmem>>, vector<1x1x32x8xf32>
    %145 = vector.shape_cast %144 : vector<1x1x32x8xf32> to vector<32x8xf32>
    %146 = vector.shape_cast %140 : vector<32x8xf32> to vector<1x1x32x8xf32>
    tpu.vector_store %arg7[%c0_69, %c3_70, %c0_71, %c0_72], %146 {strides = array<i32>} : memref<1x4x32x8xf32, #tpu.memory_space<vmem>>, vector<1x1x32x8xf32>,
    %c0_73 = arith.constant 0 : index
    %c3_74 = arith.constant 3 : index
    %c0_75 = arith.constant 0 : index
    %c0_76 = arith.constant 0 : index
    %147 = vector.load %arg8[%c0_73, %c3_74, %c0_75, %c0_76] : memref<1x4x32x8xf32, #tpu.memory_space<vmem>>, vector<1x1x32x8xf32>
    %148 = vector.shape_cast %147 : vector<1x1x32x8xf32> to vector<32x8xf32>
    %149 = vector.shape_cast %116 : vector<32x8xf32> to vector<1x1x32x8xf32>
    tpu.vector_store %arg8[%c0_73, %c3_74, %c0_75, %c0_76], %149 {strides = array<i32>} : memref<1x4x32x8xf32, #tpu.memory_space<vmem>>, vector<1x1x32x8xf32>,
    return
  }
  func.func @transform_0(%arg0: i32, %arg1: i32) -> (i32, i32, i32) {
    %c0_i32 = arith.constant 0 : i32
    %c0_i32_0 = arith.constant 0 : i32
    return %arg0, %arg1, %c0_i32 : i32, i32, i32
  }
  func.func @transform_1(%arg0: i32, %arg1: i32) -> (i32, i32) {
    %c0_i32 = arith.constant 0 : i32
    %c0_i32_0 = arith.constant 0 : i32
    %c0_i32_1 = arith.constant 0 : i32
    return %c0_i32, %c0_i32_0 : i32, i32
  }
  func.func @transform_2(%arg0: i32, %arg1: i32) -> (i32, i32) {
    %c0_i32 = arith.constant 0 : i32
    %c0_i32_0 = arith.constant 0 : i32
    %c0_i32_1 = arith.constant 0 : i32
    return %c0_i32, %c0_i32_0 : i32, i32
  }
  func.func @transform_3(%arg0: i32, %arg1: i32) -> (i32, i32) {
    %c0_i32 = arith.constant 0 : i32
    %c0_i32_0 = arith.constant 0 : i32
    %c0_i32_1 = arith.constant 0 : i32
    return %c0_i32, %c0_i32_0 : i32, i32
  }
  func.func @transform_4(%arg0: i32, %arg1: i32) -> (i32, i32, i32, i32) {
    %c0_i32 = arith.constant 0 : i32
    %c0_i32_0 = arith.constant 0 : i32
    %c0_i32_1 = arith.constant 0 : i32
    return %arg0, %c0_i32, %arg1, %c0_i32_0 : i32, i32, i32, i32
  }
  func.func @transform_5(%arg0: i32, %arg1: i32) -> (i32, i32, i32, i32) {
    %c0_i32 = arith.constant 0 : i32
    %c0_i32_0 = arith.constant 0 : i32
    %c0_i32_1 = arith.constant 0 : i32
    return %arg0, %c0_i32, %arg1, %c0_i32_0 : i32, i32, i32, i32
  }
  func.func @transform_6(%arg0: i32, %arg1: i32) -> (i32, i32, i32, i32) {
    %c0_i32 = arith.constant 0 : i32
    %c0_i32_0 = arith.constant 0 : i32
    %c0_i32_1 = arith.constant 0 : i32
    return %arg0, %c0_i32, %arg1, %c0_i32_0 : i32, i32, i32, i32
  }
}

module attributes {stable_mosaic.version = 11 : i64} {
  func.func @_qkv_kernel(%arg0: i32, %arg1: i32, %arg2: memref<1x32x32xf32, #tpu.memory_space<vmem>>, %arg3: memref<32x96xf32, #tpu.memory_space<vmem>>, %arg4: memref<1x8xf32, #tpu.memory_space<vmem>>, %arg5: memref<1x8xf32, #tpu.memory_space<vmem>>, %arg6: memref<1x4x32x8xf32, #tpu.memory_space<vmem>>, %arg7: memref<1x4x32x8xf32, #tpu.memory_space<vmem>>, %arg8: memref<1x4x32x8xf32, #tpu.memory_space<vmem>>) attributes {dimension_semantics = [#tpu.dimension_semantics<parallel>, #tpu.dimension_semantics<parallel>], iteration_bounds = array<i64: 2, 2>, scalar_prefetch = 0 : i64, scratch_operands = 0 : i64, tpu.core_type = #tpu.core_type<tc>, window_params = [{transform_indices = @transform_0, window_bounds = array<i64: 1, 32, 32>}, {pipeline_mode = #tpu.pipeline_mode<synchronous>, transform_indices = @transform_1, window_bounds = array<i64: 32, 96>}, {pipeline_mode = #tpu.pipeline_mode<synchronous>, transform_indices = @transform_2, window_bounds = array<i64: 1, 8>}, {pipeline_mode = #tpu.pipeline_mode<synchronous>, transform_indices = @transform_3, window_bounds = array<i64: 1, 8>}, {transform_indices = @transform_4, window_bounds = array<i64: 1, 4, 32, 8>}, {transform_indices = @transform_5, window_bounds = array<i64: 1, 4, 32, 8>}, {transform_indices = @transform_6, window_bounds = array<i64: 1, 4, 32, 8>}]} {
    %c0 = arith.constant 0 : index
    %c0_0 = arith.constant 0 : index
    %c0_1 = arith.constant 0 : index
    %0 = vector.load %arg2[%c0, %c0_0, %c0_1] : memref<1x32x32xf32, #tpu.memory_space<vmem>>, vector<1x32x32xf32>
    %1 = vector.shape_cast %0 : vector<1x32x32xf32> to vector<32x32xf32>
    %c0_2 = arith.constant 0 : index
    %c0_3 = arith.constant 0 : index
    %2 = vector.load %arg3[%c0_2, %c0_3] : memref<32x96xf32, #tpu.memory_space<vmem>>, vector<32x96xf32>
    %cst = arith.constant dense<0.000000e+00> : vector<32x96xf32>
    %3 = tpu.matmul %1, %2, %cst {dimension_numbers = #tpu.dot_dimension_numbers<[1], [0], [0], [1], [0, 0, 1, 1], [], []>} : vector<32x32xf32>, vector<32x96xf32>, vector<32x96xf32> -> vector<32x96xf32>
    %c0_4 = arith.constant 0 : index
    %c0_5 = arith.constant 0 : index
    %4 = vector.load %arg4[%c0_4, %c0_5] : memref<1x8xf32, #tpu.memory_space<vmem>>, vector<1x8xf32>
    %c0_6 = arith.constant 0 : index
    %c0_7 = arith.constant 0 : index
    %5 = vector.load %arg5[%c0_6, %c0_7] : memref<1x8xf32, #tpu.memory_space<vmem>>, vector<1x8xf32>
    %6 = vector.extract_strided_slice %3 {offsets = [0, 0], sizes = [32, 8], strides = [1, 1]} : vector<32x96xf32> to vector<32x8xf32>
    %7 = vector.extract_strided_slice %3 {offsets = [0, 8], sizes = [32, 8], strides = [1, 1]} : vector<32x96xf32> to vector<32x8xf32>
    %8 = vector.extract_strided_slice %3 {offsets = [0, 16], sizes = [32, 8], strides = [1, 1]} : vector<32x96xf32> to vector<32x8xf32>
    %9 = arith.mulf %6, %6 : vector<32x8xf32>
    %cst_8 = arith.constant dense<0.000000e+00> : vector<32xf32>
    %10 = vector.multi_reduction <add>, %9, %cst_8 [1] : vector<32x8xf32> to vector<32xf32>
    %11 = vector.shape_cast %10 : vector<32xf32> to vector<32x1xf32>
    %cst_9 = arith.constant 8.000000e+00 : f32
    %12 = vector.broadcast %cst_9 : f32 to vector<32x1xf32>
    %13 = arith.divf %11, %12 : vector<32x1xf32>
    %cst_10 = arith.constant 9.99999997E-7 : f32
    %14 = vector.broadcast %cst_10 : f32 to vector<32x1xf32>
    %15 = arith.addf %13, %14 : vector<32x1xf32>
    %16 = math.rsqrt %15 : vector<32x1xf32>
    %17 = vector.broadcast %16 : vector<32x1xf32> to vector<32x8xf32>
    %18 = arith.mulf %6, %17 : vector<32x8xf32>
    %19 = vector.broadcast %4 : vector<1x8xf32> to vector<32x8xf32>
    %20 = arith.mulf %18, %19 : vector<32x8xf32>
    %21 = arith.mulf %7, %7 : vector<32x8xf32>
    %cst_11 = arith.constant dense<0.000000e+00> : vector<32xf32>
    %22 = vector.multi_reduction <add>, %21, %cst_11 [1] : vector<32x8xf32> to vector<32xf32>
    %23 = vector.shape_cast %22 : vector<32xf32> to vector<32x1xf32>
    %cst_12 = arith.constant 8.000000e+00 : f32
    %24 = vector.broadcast %cst_12 : f32 to vector<32x1xf32>
    %25 = arith.divf %23, %24 : vector<32x1xf32>
    %cst_13 = arith.constant 9.99999997E-7 : f32
    %26 = vector.broadcast %cst_13 : f32 to vector<32x1xf32>
    %27 = arith.addf %25, %26 : vector<32x1xf32>
    %28 = math.rsqrt %27 : vector<32x1xf32>
    %29 = vector.broadcast %28 : vector<32x1xf32> to vector<32x8xf32>
    %30 = arith.mulf %7, %29 : vector<32x8xf32>
    %31 = vector.broadcast %5 : vector<1x8xf32> to vector<32x8xf32>
    %32 = arith.mulf %30, %31 : vector<32x8xf32>
    %c0_14 = arith.constant 0 : index
    %c0_15 = arith.constant 0 : index
    %c0_16 = arith.constant 0 : index
    %c0_17 = arith.constant 0 : index
    %33 = vector.load %arg6[%c0_14, %c0_15, %c0_16, %c0_17] : memref<1x4x32x8xf32, #tpu.memory_space<vmem>>, vector<1x1x32x8xf32>
    %34 = vector.shape_cast %33 : vector<1x1x32x8xf32> to vector<32x8xf32>
    %35 = vector.shape_cast %20 : vector<32x8xf32> to vector<1x1x32x8xf32>
    tpu.vector_store %arg6[%c0_14, %c0_15, %c0_16, %c0_17], %35 {strides = array<i32>} : memref<1x4x32x8xf32, #tpu.memory_space<vmem>>, vector<1x1x32x8xf32>,
    %c0_18 = arith.constant 0 : index
    %c0_19 = arith.constant 0 : index
    %c0_20 = arith.constant 0 : index
    %c0_21 = arith.constant 0 : index
    %36 = vector.load %arg7[%c0_18, %c0_19, %c0_20, %c0_21] : memref<1x4x32x8xf32, #tpu.memory_space<vmem>>, vector<1x1x32x8xf32>
    %37 = vector.shape_cast %36 : vector<1x1x32x8xf32> to vector<32x8xf32>
    %38 = vector.shape_cast %32 : vector<32x8xf32> to vector<1x1x32x8xf32>
    tpu.vector_store %arg7[%c0_18, %c0_19, %c0_20, %c0_21], %38 {strides = array<i32>} : memref<1x4x32x8xf32, #tpu.memory_space<vmem>>, vector<1x1x32x8xf32>,
    %c0_22 = arith.constant 0 : index
    %c0_23 = arith.constant 0 : index
    %c0_24 = arith.constant 0 : index
    %c0_25 = arith.constant 0 : index
    %39 = vector.load %arg8[%c0_22, %c0_23, %c0_24, %c0_25] : memref<1x4x32x8xf32, #tpu.memory_space<vmem>>, vector<1x1x32x8xf32>
    %40 = vector.shape_cast %39 : vector<1x1x32x8xf32> to vector<32x8xf32>
    %41 = vector.shape_cast %8 : vector<32x8xf32> to vector<1x1x32x8xf32>
    tpu.vector_store %arg8[%c0_22, %c0_23, %c0_24, %c0_25], %41 {strides = array<i32>} : memref<1x4x32x8xf32, #tpu.memory_space<vmem>>, vector<1x1x32x8xf32>,
    %42 = vector.extract_strided_slice %3 {offsets = [0, 24], sizes = [32, 8], strides = [1, 1]} : vector<32x96xf32> to vector<32x8xf32>
    %43 = vector.extract_strided_slice %3 {offsets = [0, 32], sizes = [32, 8], strides = [1, 1]} : vector<32x96xf32> to vector<32x8xf32>
    %44 = vector.extract_strided_slice %3 {offsets = [0, 40], sizes = [32, 8], strides = [1, 1]} : vector<32x96xf32> to vector<32x8xf32>
    %45 = arith.mulf %42, %42 : vector<32x8xf32>
    %cst_26 = arith.constant dense<0.000000e+00> : vector<32xf32>
    %46 = vector.multi_reduction <add>, %45, %cst_26 [1] : vector<32x8xf32> to vector<32xf32>
    %47 = vector.shape_cast %46 : vector<32xf32> to vector<32x1xf32>
    %cst_27 = arith.constant 8.000000e+00 : f32
    %48 = vector.broadcast %cst_27 : f32 to vector<32x1xf32>
    %49 = arith.divf %47, %48 : vector<32x1xf32>
    %cst_28 = arith.constant 9.99999997E-7 : f32
    %50 = vector.broadcast %cst_28 : f32 to vector<32x1xf32>
    %51 = arith.addf %49, %50 : vector<32x1xf32>
    %52 = math.rsqrt %51 : vector<32x1xf32>
    %53 = vector.broadcast %52 : vector<32x1xf32> to vector<32x8xf32>
    %54 = arith.mulf %42, %53 : vector<32x8xf32>
    %55 = vector.broadcast %4 : vector<1x8xf32> to vector<32x8xf32>
    %56 = arith.mulf %54, %55 : vector<32x8xf32>
    %57 = arith.mulf %43, %43 : vector<32x8xf32>
    %cst_29 = arith.constant dense<0.000000e+00> : vector<32xf32>
    %58 = vector.multi_reduction <add>, %57, %cst_29 [1] : vector<32x8xf32> to vector<32xf32>
    %59 = vector.shape_cast %58 : vector<32xf32> to vector<32x1xf32>
    %cst_30 = arith.constant 8.000000e+00 : f32
    %60 = vector.broadcast %cst_30 : f32 to vector<32x1xf32>
    %61 = arith.divf %59, %60 : vector<32x1xf32>
    %cst_31 = arith.constant 9.99999997E-7 : f32
    %62 = vector.broadcast %cst_31 : f32 to vector<32x1xf32>
    %63 = arith.addf %61, %62 : vector<32x1xf32>
    %64 = math.rsqrt %63 : vector<32x1xf32>
    %65 = vector.broadcast %64 : vector<32x1xf32> to vector<32x8xf32>
    %66 = arith.mulf %43, %65 : vector<32x8xf32>
    %67 = vector.broadcast %5 : vector<1x8xf32> to vector<32x8xf32>
    %68 = arith.mulf %66, %67 : vector<32x8xf32>
    %c0_32 = arith.constant 0 : index
    %c1 = arith.constant 1 : index
    %c0_33 = arith.constant 0 : index
    %c0_34 = arith.constant 0 : index
    %69 = vector.load %arg6[%c0_32, %c1, %c0_33, %c0_34] : memref<1x4x32x8xf32, #tpu.memory_space<vmem>>, vector<1x1x32x8xf32>
    %70 = vector.shape_cast %69 : vector<1x1x32x8xf32> to vector<32x8xf32>
    %71 = vector.shape_cast %56 : vector<32x8xf32> to vector<1x1x32x8xf32>
    tpu.vector_store %arg6[%c0_32, %c1, %c0_33, %c0_34], %71 {strides = array<i32>} : memref<1x4x32x8xf32, #tpu.memory_space<vmem>>, vector<1x1x32x8xf32>,
    %c0_35 = arith.constant 0 : index
    %c1_36 = arith.constant 1 : index
    %c0_37 = arith.constant 0 : index
    %c0_38 = arith.constant 0 : index
    %72 = vector.load %arg7[%c0_35, %c1_36, %c0_37, %c0_38] : memref<1x4x32x8xf32, #tpu.memory_space<vmem>>, vector<1x1x32x8xf32>
    %73 = vector.shape_cast %72 : vector<1x1x32x8xf32> to vector<32x8xf32>
    %74 = vector.shape_cast %68 : vector<32x8xf32> to vector<1x1x32x8xf32>
    tpu.vector_store %arg7[%c0_35, %c1_36, %c0_37, %c0_38], %74 {strides = array<i32>} : memref<1x4x32x8xf32, #tpu.memory_space<vmem>>, vector<1x1x32x8xf32>,
    %c0_39 = arith.constant 0 : index
    %c1_40 = arith.constant 1 : index
    %c0_41 = arith.constant 0 : index
    %c0_42 = arith.constant 0 : index
    %75 = vector.load %arg8[%c0_39, %c1_40, %c0_41, %c0_42] : memref<1x4x32x8xf32, #tpu.memory_space<vmem>>, vector<1x1x32x8xf32>
    %76 = vector.shape_cast %75 : vector<1x1x32x8xf32> to vector<32x8xf32>
    %77 = vector.shape_cast %44 : vector<32x8xf32> to vector<1x1x32x8xf32>
    tpu.vector_store %arg8[%c0_39, %c1_40, %c0_41, %c0_42], %77 {strides = array<i32>} : memref<1x4x32x8xf32, #tpu.memory_space<vmem>>, vector<1x1x32x8xf32>,
    %78 = vector.extract_strided_slice %3 {offsets = [0, 48], sizes = [32, 8], strides = [1, 1]} : vector<32x96xf32> to vector<32x8xf32>
    %79 = vector.extract_strided_slice %3 {offsets = [0, 56], sizes = [32, 8], strides = [1, 1]} : vector<32x96xf32> to vector<32x8xf32>
    %80 = vector.extract_strided_slice %3 {offsets = [0, 64], sizes = [32, 8], strides = [1, 1]} : vector<32x96xf32> to vector<32x8xf32>
    %81 = arith.mulf %78, %78 : vector<32x8xf32>
    %cst_43 = arith.constant dense<0.000000e+00> : vector<32xf32>
    %82 = vector.multi_reduction <add>, %81, %cst_43 [1] : vector<32x8xf32> to vector<32xf32>
    %83 = vector.shape_cast %82 : vector<32xf32> to vector<32x1xf32>
    %cst_44 = arith.constant 8.000000e+00 : f32
    %84 = vector.broadcast %cst_44 : f32 to vector<32x1xf32>
    %85 = arith.divf %83, %84 : vector<32x1xf32>
    %cst_45 = arith.constant 9.99999997E-7 : f32
    %86 = vector.broadcast %cst_45 : f32 to vector<32x1xf32>
    %87 = arith.addf %85, %86 : vector<32x1xf32>
    %88 = math.rsqrt %87 : vector<32x1xf32>
    %89 = vector.broadcast %88 : vector<32x1xf32> to vector<32x8xf32>
    %90 = arith.mulf %78, %89 : vector<32x8xf32>
    %91 = vector.broadcast %4 : vector<1x8xf32> to vector<32x8xf32>
    %92 = arith.mulf %90, %91 : vector<32x8xf32>
    %93 = arith.mulf %79, %79 : vector<32x8xf32>
    %cst_46 = arith.constant dense<0.000000e+00> : vector<32xf32>
    %94 = vector.multi_reduction <add>, %93, %cst_46 [1] : vector<32x8xf32> to vector<32xf32>
    %95 = vector.shape_cast %94 : vector<32xf32> to vector<32x1xf32>
    %cst_47 = arith.constant 8.000000e+00 : f32
    %96 = vector.broadcast %cst_47 : f32 to vector<32x1xf32>
    %97 = arith.divf %95, %96 : vector<32x1xf32>
    %cst_48 = arith.constant 9.99999997E-7 : f32
    %98 = vector.broadcast %cst_48 : f32 to vector<32x1xf32>
    %99 = arith.addf %97, %98 : vector<32x1xf32>
    %100 = math.rsqrt %99 : vector<32x1xf32>
    %101 = vector.broadcast %100 : vector<32x1xf32> to vector<32x8xf32>
    %102 = arith.mulf %79, %101 : vector<32x8xf32>
    %103 = vector.broadcast %5 : vector<1x8xf32> to vector<32x8xf32>
    %104 = arith.mulf %102, %103 : vector<32x8xf32>
    %c0_49 = arith.constant 0 : index
    %c2 = arith.constant 2 : index
    %c0_50 = arith.constant 0 : index
    %c0_51 = arith.constant 0 : index
    %105 = vector.load %arg6[%c0_49, %c2, %c0_50, %c0_51] : memref<1x4x32x8xf32, #tpu.memory_space<vmem>>, vector<1x1x32x8xf32>
    %106 = vector.shape_cast %105 : vector<1x1x32x8xf32> to vector<32x8xf32>
    %107 = vector.shape_cast %92 : vector<32x8xf32> to vector<1x1x32x8xf32>
    tpu.vector_store %arg6[%c0_49, %c2, %c0_50, %c0_51], %107 {strides = array<i32>} : memref<1x4x32x8xf32, #tpu.memory_space<vmem>>, vector<1x1x32x8xf32>,
    %c0_52 = arith.constant 0 : index
    %c2_53 = arith.constant 2 : index
    %c0_54 = arith.constant 0 : index
    %c0_55 = arith.constant 0 : index
    %108 = vector.load %arg7[%c0_52, %c2_53, %c0_54, %c0_55] : memref<1x4x32x8xf32, #tpu.memory_space<vmem>>, vector<1x1x32x8xf32>
    %109 = vector.shape_cast %108 : vector<1x1x32x8xf32> to vector<32x8xf32>
    %110 = vector.shape_cast %104 : vector<32x8xf32> to vector<1x1x32x8xf32>
    tpu.vector_store %arg7[%c0_52, %c2_53, %c0_54, %c0_55], %110 {strides = array<i32>} : memref<1x4x32x8xf32, #tpu.memory_space<vmem>>, vector<1x1x32x8xf32>,
    %c0_56 = arith.constant 0 : index
    %c2_57 = arith.constant 2 : index
    %c0_58 = arith.constant 0 : index
    %c0_59 = arith.constant 0 : index
    %111 = vector.load %arg8[%c0_56, %c2_57, %c0_58, %c0_59] : memref<1x4x32x8xf32, #tpu.memory_space<vmem>>, vector<1x1x32x8xf32>
    %112 = vector.shape_cast %111 : vector<1x1x32x8xf32> to vector<32x8xf32>
    %113 = vector.shape_cast %80 : vector<32x8xf32> to vector<1x1x32x8xf32>
    tpu.vector_store %arg8[%c0_56, %c2_57, %c0_58, %c0_59], %113 {strides = array<i32>} : memref<1x4x32x8xf32, #tpu.memory_space<vmem>>, vector<1x1x32x8xf32>,
    %114 = vector.extract_strided_slice %3 {offsets = [0, 72], sizes = [32, 8], strides = [1, 1]} : vector<32x96xf32> to vector<32x8xf32>
    %115 = vector.extract_strided_slice %3 {offsets = [0, 80], sizes = [32, 8], strides = [1, 1]} : vector<32x96xf32> to vector<32x8xf32>
    %116 = vector.extract_strided_slice %3 {offsets = [0, 88], sizes = [32, 8], strides = [1, 1]} : vector<32x96xf32> to vector<32x8xf32>
    %117 = arith.mulf %114, %114 : vector<32x8xf32>
    %cst_60 = arith.constant dense<0.000000e+00> : vector<32xf32>
    %118 = vector.multi_reduction <add>, %117, %cst_60 [1] : vector<32x8xf32> to vector<32xf32>
    %119 = vector.shape_cast %118 : vector<32xf32> to vector<32x1xf32>
    %cst_61 = arith.constant 8.000000e+00 : f32
    %120 = vector.broadcast %cst_61 : f32 to vector<32x1xf32>
    %121 = arith.divf %119, %120 : vector<32x1xf32>
    %cst_62 = arith.constant 9.99999997E-7 : f32
    %122 = vector.broadcast %cst_62 : f32 to vector<32x1xf32>
    %123 = arith.addf %121, %122 : vector<32x1xf32>
    %124 = math.rsqrt %123 : vector<32x1xf32>
    %125 = vector.broadcast %124 : vector<32x1xf32> to vector<32x8xf32>
    %126 = arith.mulf %114, %125 : vector<32x8xf32>
    %127 = vector.broadcast %4 : vector<1x8xf32> to vector<32x8xf32>
    %128 = arith.mulf %126, %127 : vector<32x8xf32>
    %129 = arith.mulf %115, %115 : vector<32x8xf32>
    %cst_63 = arith.constant dense<0.000000e+00> : vector<32xf32>
    %130 = vector.multi_reduction <add>, %129, %cst_63 [1] : vector<32x8xf32> to vector<32xf32>
    %131 = vector.shape_cast %130 : vector<32xf32> to vector<32x1xf32>
    %cst_64 = arith.constant 8.000000e+00 : f32
    %132 = vector.broadcast %cst_64 : f32 to vector<32x1xf32>
    %133 = arith.divf %131, %132 : vector<32x1xf32>
    %cst_65 = arith.constant 9.99999997E-7 : f32
    %134 = vector.broadcast %cst_65 : f32 to vector<32x1xf32>
    %135 = arith.addf %133, %134 : vector<32x1xf32>
    %136 = math.rsqrt %135 : vector<32x1xf32>
    %137 = vector.broadcast %136 : vector<32x1xf32> to vector<32x8xf32>
    %138 = arith.mulf %115, %137 : vector<32x8xf32>
    %139 = vector.broadcast %5 : vector<1x8xf32> to vector<32x8xf32>
    %140 = arith.mulf %138, %139 : vector<32x8xf32>
    %c0_66 = arith.constant 0 : index
    %c3 = arith.constant 3 : index
    %c0_67 = arith.constant 0 : index
    %c0_68 = arith.constant 0 : index
    %141 = vector.load %arg6[%c0_66, %c3, %c0_67, %c0_68] : memref<1x4x32x8xf32, #tpu.memory_space<vmem>>, vector<1x1x32x8xf32>
    %142 = vector.shape_cast %141 : vector<1x1x32x8xf32> to vector<32x8xf32>
    %143 = vector.shape_cast %128 : vector<32x8xf32> to vector<1x1x32x8xf32>
    tpu.vector_store %arg6[%c0_66, %c3, %c0_67, %c0_68], %143 {strides = array<i32>} : memref<1x4x32x8xf32, #tpu.memory_space<vmem>>, vector<1x1x32x8xf32>,
    %c0_69 = arith.constant 0 : index
    %c3_70 = arith.constant 3 : index
    %c0_71 = arith.constant 0 : index
    %c0_72 = arith.constant 0 : index
    %144 = vector.load %arg7[%c0_69, %c3_70, %c0_71, %c0_72] : memref<1x4x32x8xf32, #tpu.memory_space<vmem>>, vector<1x1x32x8xf32>
    %145 = vector.shape_cast %144 : vector<1x1x32x8xf32> to vector<32x8xf32>
    %146 = vector.shape_cast %140 : vector<32x8xf32> to vector<1x1x32x8xf32>
    tpu.vector_store %arg7[%c0_69, %c3_70, %c0_71, %c0_72], %146 {strides = array<i32>} : memref<1x4x32x8xf32, #tpu.memory_space<vmem>>, vector<1x1x32x8xf32>,
    %c0_73 = arith.constant 0 : index
    %c3_74 = arith.constant 3 : index
    %c0_75 = arith.constant 0 : index
    %c0_76 = arith.constant 0 : index
    %147 = vector.load %arg8[%c0_73, %c3_74, %c0_75, %c0_76] : memref<1x4x32x8xf32, #tpu.memory_space<vmem>>, vector<1x1x32x8xf32>
    %148 = vector.shape_cast %147 : vector<1x1x32x8xf32> to vector<32x8xf32>
    %149 = vector.shape_cast %116 : vector<32x8xf32> to vector<1x1x32x8xf32>
    tpu.vector_store %arg8[%c0_73, %c3_74, %c0_75, %c0_76], %149 {strides = array<i32>} : memref<1x4x32x8xf32, #tpu.memory_space<vmem>>, vector<1x1x32x8xf32>,
    return
  }
  func.func @transform_0(%arg0: i32, %arg1: i32) -> (i32, i32, i32) {
    %c0_i32 = arith.constant 0 : i32
    %c0_i32_0 = arith.constant 0 : i32
    return %arg0, %arg1, %c0_i32 : i32, i32, i32
  }
  func.func @transform_1(%arg0: i32, %arg1: i32) -> (i32, i32) {
    %c0_i32 = arith.constant 0 : i32
    %c0_i32_0 = arith.constant 0 : i32
    %c0_i32_1 = arith.constant 0 : i32
    return %c0_i32, %c0_i32_0 : i32, i32
  }
  func.func @transform_2(%arg0: i32, %arg1: i32) -> (i32, i32) {
    %c0_i32 = arith.constant 0 : i32
    %c0_i32_0 = arith.constant 0 : i32
    %c0_i32_1 = arith.constant 0 : i32
    return %c0_i32, %c0_i32_0 : i32, i32
  }
  func.func @transform_3(%arg0: i32, %arg1: i32) -> (i32, i32) {
    %c0_i32 = arith.constant 0 : i32
    %c0_i32_0 = arith.constant 0 : i32
    %c0_i32_1 = arith.constant 0 : i32
    return %c0_i32, %c0_i32_0 : i32, i32
  }
  func.func @transform_4(%arg0: i32, %arg1: i32) -> (i32, i32, i32, i32) {
    %c0_i32 = arith.constant 0 : i32
    %c0_i32_0 = arith.constant 0 : i32
    %c0_i32_1 = arith.constant 0 : i32
    return %arg0, %c0_i32, %arg1, %c0_i32_0 : i32, i32, i32, i32
  }
  func.func @transform_5(%arg0: i32, %arg1: i32) -> (i32, i32, i32, i32) {
    %c0_i32 = arith.constant 0 : i32
    %c0_i32_0 = arith.constant 0 : i32
    %c0_i32_1 = arith.constant 0 : i32
    return %arg0, %c0_i32, %arg1, %c0_i32_0 : i32, i32, i32, i32
  }
  func.func @transform_6(%arg0: i32, %arg1: i32) -> (i32, i32, i32, i32) {
    %c0_i32 = arith.constant 0 : i32
    %c0_i32_0 = arith.constant 0 : i32
    %c0_i32_1 = arith.constant 0 : i32
    return %arg0, %c0_i32, %arg1, %c0_i32_0 : i32, i32, i32, i32
  }
}

</mosaic_0001>

<bundles_post_ra>
// kernel: tpu_custom_call.1
= control target key start
LH: loop header
LB: loop body
LE: loop exit
PB: predicated region body
PF: predicated region fallthrough
CT: control target
= control target key end

     0   :  { %s2711_s0 = inlined_call_operand.hbm [shape: f32[2,64,32], index: 0, kind: input, shape index: {}]   ;;  %s2712_s1 = inlined_call_operand.hbm [shape: f32[32,96], index: 1, kind: input, shape index: {}]   ;;  %s2713_s2 = inlined_call_operand.hbm [shape: f32[1,8], index: 2, kind: input, shape index: {}]   ;;  %s2714_s3 = inlined_call_operand.hbm [shape: f32[1,8], index: 3, kind: input, shape index: {}]   ;;  %s2715_s4 = inlined_call_operand.hbm [shape: f32[2,4,64,8], index: 4, kind: output, shape index: {0}]   ;;  %s2716_s5 = inlined_call_operand.hbm [shape: f32[2,4,64,8], index: 5, kind: output, shape index: {1}]   ;;  %s2717_s6 = inlined_call_operand.hbm [shape: f32[2,4,64,8], index: 6, kind: output, shape index: {2}]  }
   0x1   :  { %2727 = sst [smem:[#allocation28_spill]] %s2712_s1 }
   0x2   :  { %2728 = sst [smem:[#allocation29_spill]] %s2713_s2 }
   0x3   :  { %2729 = sst [smem:[#allocation30_spill]] %s2714_s3 }
   0x4   :  { %2730 = sst [smem:[#allocation31_spill]] %s2716_s5 }
   0x5   :  { %2731 = sst [smem:[#allocation32_spill]] %s2717_s6 }
   0x6   :  { %12 = vsyncpa [#allocation3], 0 }
   0x7   :  { %14 = vsyncpa [#allocation3 + $0x1], 0 }
   0x8   :  { %15 = vsyncpa [#allocation6], 0 }
   0x9   :  { %16 = vsyncpa [#allocation9], 0 }
   0xa   :  { %17 = vsyncpa [#allocation4], 0 }
   0xb   :  { %19 = vsyncpa [#allocation4 + $0x1], 0 }
   0xc   :  { %20 = vsyncpa [#allocation12], 0 }
   0xd   :  { %22 = vsyncpa [#allocation12 + $0x1], 0  ;;  %s2021_s21 = smov 0   ;;  %s2023_s22 = smov 0  }
   0xe   :  { %s2025_s23 = smov 0   ;;  %s2027_s24 = smov 0  }
   0xf   :  { %s2029_s25 = smov 0   ;;  %s2031_s26 = smov 0  }
  0x10   :  { %s2033_s27 = smov 0   ;;  %s2035_s28 = smov 0  }
  0x11 LB: > { %2732 = sst [smem:[#allocation25_spill]] %s1915_s21  ;;  %s2062_s29 = sadd.s32 4294967295, %s1943_s28   ;;  %s1943_s28 = sphi %s2035_s28, %s28_s28   ;;  %s1939_s27 = sphi %s2033_s27, %s2768_s27   ;;  %s1935_s26 = sphi %s2031_s26, %s2767_s26   ;;  %s1931_s25 = sphi %s2029_s25, %s2766_s25   ;;  %s1927_s24 = sphi %s2027_s24, %s2765_s24   ;;  %s1923_s23 = sphi %s2025_s23, %s2764_s23   ;;  %s1919_s22 = sphi %s2023_s22, %s2763_s22   ;;  %s1915_s21 = sphi %s2021_s21, %s2762_s21  }
  0x12   : > { %s2718_s30 = sadd.s32 4294967294, %s1943_s28   ;;  %p62_p0 = scmp.ne.s32.totalorder %s1919_s22, %s1915_s21 }
  0x13   : > { %p2719_p1 = scmp.eq.s32.totalorder %s2062_s29, 0  ;;  %p157_p3 = scmp.eq.s32.totalorder %s2718_s30, 3 }
  0x14   : > { %p1402_p5 = scmp.ge.s32.totalorder %s1943_s28, 1  ;;  %p220_p7 = scmp.lt.s32.totalorder %s1943_s28, 5 }
  0x15   : > { %p2073_p4 = por %p2719_p1, %p62_p0  ;;  %p2078_p6 = por %p157_p3, %p62_p0 }
  0x16   : > { %p2083_p8 = pnand %p1402_p5, %p220_p7  ;;  %s1945_s10 = smov [#allocation5]  }
  0x17   : > { %s2733_s7 = scalar_select %p2073_p4, 1, 0 }
  0x18   : > { %s2734_s8 = scalar_select %p2078_p6, 1, 0 }
  0x19   : > { %s2736_s9 = scalar_select %p2083_p8, 1, 0 }
  0x1a   : > { %2735 = sst [smem:[#allocation26_spill]] %s2734_s8  ;;  %s232_s11 = sshll.u32 %s1945_s10, 4  ;;  %s2087_s11 = int_to_ptr.vmem [resolvable:$true] %s232_s11 }
  0x1b   : > { %p1547_p9 = pneg %p2083_p8  ;;  %s1946_s13 = smov [#allocation7]  }
  0x1c   : > { %s246_s14 = sshll.u32 %s1946_s13, 4  ;;  %s1947_s15 = smov [#allocation8]   ;;  %s2097_s14 = int_to_ptr.vmem [resolvable:$true] %s246_s14 }
  0x1d   : > { %p2093_p10 = pnand %p1547_p9, %p2719_p1  ;;  %s2099_s16 = sshll.u32 %s1947_s15, 4  ;;  %s258_s16 = int_to_ptr.vmem [resolvable:$true] %s2099_s16 }
  0x1e   : > { %s2738_s1 = sld [smem:[#allocation28_spill]] }
  0x1f   : > { %p2109_p12 = pneg %p2093_p10 }
  0x24   : > { %s1747_s19 = scalar_lea.hbm %s2738_s1, 512 }
  0x25   : > { %p1748_p11 = scmp.ne.s32.totalorder %s2738_s1, %s1747_s19  ;;  %p1754_p3 = scmp.lt.u32.totalorder %s1747_s19, %s2738_s1 }
  0x27   : > { %p1750_p13 = pnand %p2109_p12, %p1748_p11 }
  0x29   : > { %p1751_p0 = pneg %p1750_p13 }
  0x2b   : > { %p1756_p5 = pnand %p1754_p3, %p1751_p0 }
  0x2d   : > { %1759 = shalt.err (!%p1756_p5)
}
  0x2e   : > { %s1760_s17 = scalar_lea.vmem %s2087_s11, 512  ;;  %p1768_p2 = scmp.lt.s32.totalorder %s2087_s11, %s2087_s11 }
  0x2f   : > { %p1761_p7 = scmp.ne.s32.totalorder %s2087_s11, %s1760_s17  ;;  %p1769_p6 = scmp.lt.s32.totalorder %s1760_s17, %s1760_s17 }
  0x31   : > { %p1763_p9 = pnand %p1761_p7, %p2109_p12  ;;  %p1770_p11 = por %p1769_p6, %p1768_p2 }
  0x33   : > { %p1764_p1 = pneg %p1763_p9 }
  0x35   : > { %p1771_p13 = pnand %p1770_p11, %p1764_p1 }
  0x37   : > { %1774 = shalt.err (!%p1771_p13)
}
  0x38   : > { %s2724_s18 = smov 128   ;;  %s2725_s19 = smov 8  }
  0x39   : > { %1550 = dma.hbm_to_vmem [thread:$0]  (!%p2093_p10), %s2738_s1, 512, %s2087_s11, [#allocation6], %s2724_s18, %s2724_s18, %s2725_s19  }
  0x3a   : > { %s2740_s2 = sld [smem:[#allocation29_spill]] }
  0x40   : > { %s1775_s17 = scalar_lea.hbm %s2740_s2, 16 }
  0x41   : > { %p1776_p1 = scmp.ne.s32.totalorder %s2740_s2, %s1775_s17  ;;  %p1782_p0 = scmp.lt.u32.totalorder %s1775_s17, %s2740_s2 }
  0x43   : > { %p1778_p2 = pnand %p1776_p1, %p2109_p12 }
  0x45   : > { %p1779_p6 = pneg %p1778_p2 }
  0x47   : > { %p1784_p3 = pnand %p1782_p0, %p1779_p6 }
  0x49   : > { %1787 = shalt.err (!%p1784_p3)
}
  0x4a   : > { %s1788_s11 = scalar_lea.vmem %s2097_s14, 16  ;;  %s1795_s21 = scalar_lea.vmem %s2097_s14, 32 }
  0x4b   : > { %p1789_p5 = scmp.ne.s32.totalorder %s2097_s14, %s1788_s11  ;;  %p1796_p11 = scmp.lt.s32.totalorder %s2097_s14, %s2097_s14 }
  0x4c   : > { %p1797_p13 = scmp.lt.s32.totalorder %s1795_s21, %s1788_s11 }
  0x4d   : > { %p1791_p7 = pnand %p1789_p5, %p2109_p12 }
  0x4e   : > { %p1798_p1 = por %p1797_p13, %p1796_p11 }
  0x4f   : > { %p1792_p9 = pneg %p1791_p7 }
  0x51   : > { %p1799_p2 = pnand %p1798_p1, %p1792_p9 }
  0x53   : > { %1802 = shalt.err (!%p1799_p2)
}
  0x54   : > { %1553 = dma.hbm_to_vmem [thread:$0]  (!%p2093_p10), %s2740_s2, 16, %s2097_s14, [#allocation6]  }
  0x55   : > { %s2741_s3 = sld [smem:[#allocation30_spill]] }
  0x5b   : > { %s1803_s10 = scalar_lea.hbm %s2741_s3, 16 }
  0x5c   : > { %p1804_p6 = scmp.ne.s32.totalorder %s2741_s3, %s1803_s10  ;;  %p1810_p5 = scmp.lt.u32.totalorder %s1803_s10, %s2741_s3 }
  0x5e   : > { %p1806_p0 = pnand %p1804_p6, %p2109_p12 }
  0x60   : > { %p1807_p3 = pneg %p1806_p0 }
  0x62   : > { %p1812_p7 = pnand %p1810_p5, %p1807_p3 }
  0x64   : > { %1815 = shalt.err (!%p1812_p7)
}
  0x65   : > { %s1816_s21 = scalar_lea.vmem %s258_s16, 16  ;;  %s1823_s14 = scalar_lea.vmem %s258_s16, 32 }
  0x66   : > { %p1817_p9 = scmp.ne.s32.totalorder %s258_s16, %s1816_s21  ;;  %p1824_p1 = scmp.lt.s32.totalorder %s258_s16, %s258_s16 }
  0x67   : > { %p1825_p2 = scmp.lt.s32.totalorder %s1823_s14, %s1816_s21 }
  0x68   : > { %p1819_p11 = pnand %p1817_p9, %p2109_p12 }
  0x69   : > { %p1826_p4 = por %p1825_p2, %p1824_p1 }
  0x6a   : > { %p1820_p13 = pneg %p1819_p11 }
  0x6c   : > { %p1827_p8 = pnand %p1826_p4, %p1820_p13 }
  0x6e   : > { %1830 = shalt.err (!%p1827_p8)
}
  0x6f   : > { %1556 = dma.hbm_to_vmem [thread:$0]  (!%p2093_p10), %s2741_s3, 16, %s258_s16, [#allocation9]  }
  0x70   : > { %s37_s30 = sadd.s32 1, %s1935_s26  ;;  %s40_s12 = sadd.s32 1, %s1939_s27 }
  0x71   : > { %p38_p4 = scmp.ge.s32.totalorder %s37_s30, 2  ;;  %s49_s8 = sadd.s32 1, %s1923_s23 }
  0x72   : > { %p56_p8 = scmp.ne.s32.totalorder %s1923_s23, %s1919_s22  ;;  %p57_p12 = scmp.eq.s32.totalorder %s1943_s28, 0 }
  0x73   : > { %s2770_s30 = smov (%p38_p4, %s37_s30), 0  ;;  %s2772_s12 = smov (!%p38_p4, %s40_s12), %s1939_s27 }
  0x74   : > { %s45_s20 = ssub.s32 %s1935_s26, %s2770_s30  ;;  %p42_p6 = scmp.ge.s32.totalorder %s2772_s12, 2 }
  0x75   : > { %p2742_p0 = scmp.eq.s32.totalorder %s2062_s29, 3  ;;  %p2193_p10 = por %p57_p12, %p56_p8 }
  0x76   : > { %p1574_p5 = scmp.lt.s32.totalorder %s1943_s28, 4  ;;  %s2774_s12 = smov (%p42_p6, %s2772_s12), 0 }
  0x77   : > { %p2189_p3 = por %p2742_p0, %p56_p8  ;;  %2745 = sst [smem:[#allocation27_spill]] %s2774_s12 }
  0x78   : > { %s268_s13 = sand.u32 1, %s1923_s23   ;;  %s1408_s15 = sshll.u32 %s1935_s26, 2 }
  0x79   : > { %s44_s17 = ssub.s32 %s1939_s27, %s2774_s12  ;;  %s1407_s21 = sshll.u32 %s268_s13, 5 }
  0x7a   : > { %s46_s11 = sor.u32 %s45_s20, %s44_s17  ;;  %s1409_s14 = sshll.u32 %s1939_s27, 3 }
  0x7b   : > { %p47_p7 = scmp.eq.s32.totalorder %s46_s11, 0  ;;  %s272_s5 = scalar_lea.vmem [#allocation2], %s1407_s21 }
  0x7c   : > { %s281_s6 = sshll.u32 %s272_s5, 4  ;;  %s278_s19 = sadd.s32 %s1409_s14, %s1408_s15  ;;  %s2208_s6 = int_to_ptr.vmem [resolvable:$true] %s281_s6 }
  0x7d   : > { %s2206_s18 = scalar_select %p47_p7, %s1923_s23, %s49_s8  }
  0x7e   : > { %s1410_s1 = sshll.u32 %s278_s19, 7  ;;  %p2214_p9 = pnand %p1574_p5, %p2193_p10 }
  0x7f   : > { %s2221_s20 = scalar_lea.hbm %s2711_s0, %s1410_s1  ;;  %s2223_s8 = scalar_lea.sflag [#allocation3], %s268_s13 }
  0x80   : > { %s1831_s19 = scalar_lea.hbm %s2221_s20, 512  ;;  %p1833_p13 = pneg %p2214_p9 }
  0x81   : > { %p1832_p11 = scmp.ne.s32.totalorder %s2221_s20, %s1831_s19  ;;  %s1836_s12 = scalar_lea.hbm %s2711_s0, 2048 }
  0x82   : > { %p1837_p4 = scmp.lt.u32.totalorder %s2221_s20, %s2711_s0  ;;  %p1838_p8 = scmp.lt.u32.totalorder %s1836_s12, %s1831_s19 }
  0x83   : > { %p1834_p1 = pnand %p1833_p13, %p1832_p11  ;;  %p1840_p6 = scmp.lt.u32.totalorder %s1831_s19, %s2221_s20 }
  0x84   : > { %p1839_p12 = por %p1838_p8, %p1837_p4 }
  0x85   : > { %p1835_p2 = pneg %p1834_p1 }
  0x86   : > { %p1841_p0 = por %p1840_p6, %p1839_p12 }
  0x88   : > { %p1842_p10 = pnand %p1841_p0, %p1835_p2 }
  0x8a   : > { %1845 = shalt.err (!%p1842_p10)
}
  0x8b   : > { %s1846_s13 = scalar_lea.vmem %s2208_s6, 512  ;;  %s1950_s17 = smov [#allocation2]  }
  0x8c   : > { %p1847_p5 = scmp.ne.s32.totalorder %s2208_s6, %s1846_s13  ;;  %s1851_s11 = sshll.u32 %s1950_s17, 4  ;;  %s1852_s11 = int_to_ptr.vmem [resolvable:$false] %s1851_s11 }
  0x8d   : > { %s1853_s21 = scalar_lea.vmem %s1852_s11, 1024  ;;  %p1854_p1 = scmp.lt.s32.totalorder %s2208_s6, %s1852_s11 }
  0x8e   : > { %p1849_p7 = pnand %p1847_p5, %p1833_p13  ;;  %p1855_p4 = scmp.lt.s32.totalorder %s1853_s21, %s1846_s13 }
  0x90   : > { %p1850_p11 = pneg %p1849_p7  ;;  %p1856_p8 = por %p1855_p4, %p1854_p1 }
  0x92   : > { %p1857_p12 = pnand %p1856_p8, %p1850_p11 }
  0x94   : > { %1860 = shalt.err (!%p1857_p12)
}
  0x95   : > { %s2747_s14 = smov 8   ;;  %s2748_s5 = smov 128  }
  0x96   : > { %1560 = dma.hbm_to_vmem [thread:$0]  (!%p2214_p9), %s2221_s20, 512, %s2208_s6, %s2223_s8, %s2748_s5, %s2748_s5, %s2747_s14  }
  0x97   : > { %p2749_p13 = scmp.ne.s32.totalorder %s2736_s9, 0 }
  0x98   : > { %s2257_s19 = sand.u32 (!%p2749_p13), 1, %s1919_s22   ;;  %p2750_p2 = scmp.ne.s32.totalorder (!%p2749_p13), %s2733_s7, 0 }
  0x99   : > { %293 = sbr.rel (%p2749_p13) target bundleno = 983 (0x3d7), region = 36  ;;  %s1412_s16 = sshll.u32 (!%p2749_p13), %s2257_s19, 5 }
  0x9a   : > { %s296_s3 = scalar_lea.sflag (!%p2749_p13), [#allocation3], %s2257_s19  ;;  %s2261_s12 = scalar_lea.vmem (!%p2749_p13), [#allocation2], %s1412_s16 }
  0xa0   : > { %1894 = dma.done.wait (%p2750_p2), %s296_s3, 512  }
  0xa1   : > { %1896 = vsyncadd (%p2750_p2), %s296_s3, 4294966784  ;;  %p2751_p9 = scmp.eq.s32.totalorder %s2062_s29, 0 }
  0xa3   : > { %1898 = dma.done.wait (%p2751_p9), [#allocation6], 528   ;;  %p2752_p6 = pmov %p2751_p9 }
  0xa5   : > { %1900 = vsyncadd (%p2752_p6), [#allocation6], 4294966768  ;;  %p2753_p0 = pmov %p2752_p6 }
  0xa7   : > { %1902 = dma.done.wait (%p2753_p0), [#allocation9], 16   ;;  %p2754_p10 = pmov %p2753_p0 }
  0xa8   : > { %vm362_vm0 = vcmask 261120   ;;  %v358_v0 = vld [vmem:[#allocation5] sm:$0xff]  ;;  %v359_v1 = vld [vmem:[#allocation5 + $0x8] sm:$0xff]  ;;  %v360_v2 = vld [vmem:[#allocation5 + $0x10] sm:$0xff]  ;;  %s1951_s2 = smov 8   ;;  %s1952_s7 = smov 24  }
  0xa9   : > { %1904 = vsyncadd (%p2754_p10), [#allocation9], 4294967280  ;;  %v1497_v3 = vpack.c.bf16 %v359_v1, %v358_v0  ;;  %v361_v4 = vld [vmem:[#allocation5 + $0x18] sm:$0xff]  ;;  %v354_v5 = vld [vmem:[%s2261_s12] sm:$0xff]  ;;  %s1953_s9 = smov 32   ;;  %s1954_s6 = smov 48  }
  0xaa   : > { %v1501_v6 = vpack.c.bf16 %v361_v4, %v360_v2  ;;  %1491 = vmatprep.mubr.msk.f32.mxu0 %vm362_vm0, %v354_v5  ;;  %v356_v7 = vld [vmem:[%s2261_s12 + $0x10] sm:$0xff]  ;;  %v2278_v8 = vld [vmem:[#allocation8] ss:$0 sm:$0xff]  ;;  %v2280_v9 = vld [vmem:[#allocation7] ss:$0 sm:$0xff]  ;;  %s1955_s20 = smov 112  }
  0xab   : > { %1498 = vmatprep.subr.bf16.mxu0 %v1497_v3  ;;  %1505 = vmatprep.subr.bf16.mxu1 %v1497_v3  ;;  %v355_v10 = vld [vmem:[%s2261_s12 + $0x8] sm:$0xff]  ;;  %v357_v11 = vld [vmem:[%s2261_s12 + $0x18] sm:$0xff]  ;;  %s1956_s8 = smov 88   ;;  %s1957_s1 = smov 104   ;;  %vm466_vm1 = vcmask 64512  }
  0xac   : > { %1500 = vmatpush3.bf16.msra.mxu0 %v1497_v3  ;;  %1507 = vmatpush3.bf16.msra.mxu1 %v1497_v3  ;;  %s1958_s15 = smov 120   ;;  %s1959_s13 = smov 80  }
  0xad   : > { %1502 = vmatprep.subr.bf16.mxu0 %v1501_v6  ;;  %1506 = vmatprep.subr.bf16.mxu1 %v1501_v6  ;;  %s1960_s17 = smov 96   ;;  %s1961_s11 = smov 72  }
  0xae   : > { %1494 = vmatprep.mubr.msk.f32.mxu1 %vm362_vm0, %v356_v7  ;;  %555 = vrot.lane.b32.xlu0 %v2278_v8, %s1951_s2  ;;  %s1962_s21 = smov 56   ;;  %s2350_s14 = sshll.u32 %s2257_s19, 7 }
  0xaf   : > { %646 = vrot.lane.b32.xlu1 %v2280_v9, %s1952_s7  ;;  %s2355_s5 = scalar_lea.vmem [#allocation13], %s2350_s14  ;;  %s2396_s16 = scalar_lea.vmem [#allocation10], %s2350_s14 }
  0xb0   : > { %1504 = vmatpush3.bf16.msra.mxu0 %v1501_v6  ;;  %1508 = vmatpush3.bf16.msra.mxu1 %v1501_v6  ;;  %s1963_s3 = smov 64   ;;  %s1964_s12 = smov 40  }
  0xb1   : > { %s1070_s2 = sand.u32 1, %s2062_s29   ;;  %s2543_s7 = scalar_lea.vmem [#allocation11], %s2350_s14 }
  0xb2   : > { %693 = vrot.lane.b32.xlu0 %v2278_v8, %s1953_s9  ;;  %s1066_s9 = scalar_lea.sflag [#allocation4], %s2257_s19 }
  0xb3   : > { %1492 = vmatmul.mubr.msk.f32.vlgmr.msra.gmra.mrb[0].mxu0 %vm362_vm0, %v355_v10  ;;  %1495 = vmatmul.mubr.msk.f32.vlgmr.msra.gmra.mrb[0].mxu1 %vm362_vm0, %v357_v11 }
  0xb4   : > { %799 = vrot.lane.b32.xlu1 %v2280_v9, %s1954_s6 }
 0x120   : > { %v2338_v22 = vpop.permute.xlu0 %555 }
 0x121   : > { %v2340_v23 = vpop.permute.xlu1 %646 }
 0x124   : > { %v2344_v24 = vpop.permute.xlu0 %693 }
 0x126   : > { %v2347_v25 = vpop.permute.xlu1 %799 }
 0x186   : > { %v2292_v12 = vpop.f32.mrb[0].mxu0  ;;  %v2294_v13 = vpop.f32.mrb[0].mxu1 }
 0x187   : > { %592 = vrot.lane.b32.xlu0 %v2292_v12, %s1955_s20  ;;  %v2297_v14 = vpop.f32.mrb[1].mxu0  ;;  %v2299_v15 = vpop.f32.mrb[1].mxu1  ;;  %v463_v16 = vmul.f32 %v2292_v12, %v2292_v12  ;;  %v465_v17 = vmul.f32 %v2294_v13, %v2294_v13 }
 0x188   : > { %590 = vrot.lane.b32.xlu1 %v2297_v14, %s1955_s20  ;;  %v464_v19 = vmul.f32 %v2299_v15, %v2299_v15  ;;  %v462_v21 = vmul.f32 %v2297_v14, %v2297_v14 }
 0x189   : > { %v476_v18 = vsel %vm466_vm1, %v465_v17, 0.0  ;;  %v470_v20 = vsel %vm466_vm1, %v463_v16, 0.0 }
 0x18a   : > { %v467_v37 = vsel %vm466_vm1, %v462_v21, 0.0  ;;  %v473_v50 = vsel %vm466_vm1, %v464_v19, 0.0 }
 0x18b   : > { %596 = vrot.lane.b32.xlu0 %v2294_v13, %s1955_s20 }
 0x18c   : > { %594 = vrot.lane.b32.xlu1 %v2299_v15, %s1955_s20 }
 0x18f   : > { %744 = vrot.lane.b32.xlu0 %v2292_v12, %s1956_s8 }
 0x190   : > { %742 = vrot.lane.b32.xlu1 %v2297_v14, %s1956_s8 }
 0x193   : > { %748 = vrot.lane.b32.xlu0 %v2294_v13, %s1956_s8 }
 0x194   : > { %746 = vrot.lane.b32.xlu1 %v2299_v15, %s1956_s8 }
 0x197   : > { %608 = vrot.lane.b32.xlu0 %v463_v16, %s1957_s1 }
 0x198   : > { %512 = vrot.lane.b32.xlu1 %v463_v16, %s1958_s15 }
 0x19b   : > { %612 = vrot.lane.b32.xlu0 %v465_v17, %s1957_s1 }
 0x19c   : > { %516 = vrot.lane.b32.xlu1 %v465_v17, %s1958_s15 }
 0x19f   : > { %761 = vrot.lane.b32.xlu0 %v463_v16, %s1959_s13 }
 0x1a0   : > { %655 = vrot.lane.b32.xlu1 %v463_v16, %s1960_s17 }
 0x1a3   : > { %765 = vrot.lane.b32.xlu0 %v465_v17, %s1959_s13 }
 0x1a4   : > { %659 = vrot.lane.b32.xlu1 %v465_v17, %s1960_s17 }
 0x1a7   : > { %808 = vrot.lane.b32.xlu0 %v463_v16, %s1961_s11 }
 0x1ab   : > { %812 = vrot.lane.b32.xlu0 %v465_v17, %s1961_s11 }
 0x1af   : > { %914 = vrot.lane.b32.xlu0 %v463_v16, %s1962_s21 }
 0x1b3   : > { %918 = vrot.lane.b32.xlu0 %v465_v17, %s1962_s21 }
 0x1b7   : > { %961 = vrot.lane.b32.xlu0 %v463_v16, %s1954_s6 }
 0x1bb   : > { %965 = vrot.lane.b32.xlu0 %v465_v17, %s1954_s6 }
 0x1c8   : > { %477 = vadd.xlane.f32.xlu1 %v476_v18 }
 0x1d9   : > { %514 = vrot.lane.b32.xlu1 %v464_v19, %s1958_s15 }
 0x1da   : > { %471 = vadd.xlane.f32.xlu0 %v470_v20 }
 0x1dd   : > { %606 = vrot.lane.b32.xlu1 %v462_v21, %s1957_s1 }
 0x1e1   : > { %610 = vrot.lane.b32.xlu1 %v464_v19, %s1957_s1 }
 0x1e5   : > { %657 = vrot.lane.b32.xlu1 %v464_v19, %s1960_s17 }
 0x1e9   : > { %759 = vrot.lane.b32.xlu1 %v462_v21, %s1959_s13 }
 0x1ed   : > { %763 = vrot.lane.b32.xlu1 %v464_v19, %s1959_s13 }
 0x1f0   : > { %510 = vrot.lane.b32.xlu0 %v462_v21, %s1958_s15 }
 0x1f1   : > { %806 = vrot.lane.b32.xlu1 %v462_v21, %s1961_s11 }
 0x1f4   : > { %653 = vrot.lane.b32.xlu0 %v462_v21, %s1960_s17 }
 0x1f5   : > { %810 = vrot.lane.b32.xlu1 %v464_v19, %s1961_s11 }
 0x1f9   : > { %v593_v26 = vpop.permute.xlu0 %592  ;;  %912 = vrot.lane.b32.xlu1 %v462_v21, %s1962_s21 }
 0x1fa   : > { %603 = vst.msk [vmem:[%s2355_s5 + $0x8] sm:$0xff] %vm466_vm1, %v593_v26  ;;  %v591_v27 = vpop.permute.xlu1 %590 }
 0x1fb   : > { %602 = vst.msk [vmem:[%s2355_s5] sm:$0xff] %vm466_vm1, %v591_v27 }
 0x1fd   : > { %v597_v28 = vpop.permute.xlu0 %596  ;;  %916 = vrot.lane.b32.xlu1 %v464_v19, %s1962_s21 }
 0x1fe   : > { %605 = vst.msk [vmem:[%s2355_s5 + $0x18] sm:$0xff] %vm466_vm1, %v597_v28  ;;  %v595_v29 = vpop.permute.xlu1 %594 }
 0x1ff   : > { %604 = vst.msk [vmem:[%s2355_s5 + $0x10] sm:$0xff] %vm466_vm1, %v595_v29 }
 0x201   : > { %v745_v30 = vpop.permute.xlu0 %744  ;;  %959 = vrot.lane.b32.xlu1 %v462_v21, %s1954_s6 }
 0x202   : > { %1434 = vst.msk [vmem:[%s2355_s5 + $0x28] sm:$0xff] %vm466_vm1, %v745_v30  ;;  %v743_v31 = vpop.permute.xlu1 %742 }
 0x203   : > { %1433 = vst.msk [vmem:[%s2355_s5 + $0x20] sm:$0xff] %vm466_vm1, %v743_v31 }
 0x205   : > { %v749_v32 = vpop.permute.xlu0 %748  ;;  %963 = vrot.lane.b32.xlu1 %v464_v19, %s1954_s6 }
 0x206   : > { %1436 = vst.msk [vmem:[%s2355_s5 + $0x38] sm:$0xff] %vm466_vm1, %v749_v32  ;;  %v747_v33 = vpop.permute.xlu1 %746 }
 0x207   : > { %1435 = vst.msk [vmem:[%s2355_s5 + $0x30] sm:$0xff] %vm466_vm1, %v747_v33 }
 0x209   : > { %v609_v34 = vpop.permute.xlu0 %608 }
 0x20a   : > { %v513_v35 = vpop.permute.xlu1 %512  ;;  %v621_v42 = vsel %vm466_vm1, %v609_v34, 0.0 }
 0x20b   : > { %v525_v52 = vsel %vm466_vm1, %v513_v35, 0.0 }
 0x20d   : > { %v613_v36 = vpop.permute.xlu0 %612 }
 0x20e   : > { %v517_v38 = vpop.permute.xlu1 %516  ;;  %v627_v44 = vsel %vm466_vm1, %v613_v36, 0.0 }
 0x20f   : > { %v531_v40 = vsel %vm466_vm1, %v517_v38, 0.0 }
 0x211   : > { %v762_v39 = vpop.permute.xlu0 %761 }
 0x212   : > { %v656_v41 = vpop.permute.xlu1 %655  ;;  %v774_v48 = vsel %vm466_vm1, %v762_v39, 0.0 }
 0x213   : > { %468 = vadd.xlane.f32.xlu0 %v467_v37  ;;  %v668_v55 = vsel %vm466_vm1, %v656_v41, 0.0 }
 0x215   : > { %v766_v43 = vpop.permute.xlu0 %765 }
 0x216   : > { %v660_v45 = vpop.permute.xlu1 %659  ;;  %v780_v51 = vsel %vm466_vm1, %v766_v43, 0.0 }
 0x217   : > { %532 = vadd.xlane.f32.xlu0 %v531_v40  ;;  %v674_v47 = vsel %vm466_vm1, %v660_v45, 0.0 }
 0x219   : > { %v809_v46 = vpop.permute.xlu0 %808 }
 0x21a   : > { %v821_v54 = vsel %vm466_vm1, %v809_v46, 0.0 }
 0x21b   : > { %622 = vadd.xlane.f32.xlu0 %v621_v42 }
 0x21d   : > { %v813_v49 = vpop.permute.xlu0 %812 }
 0x21e   : > { %v827_v56 = vsel %vm466_vm1, %v813_v49, 0.0 }
 0x21f   : > { %628 = vadd.xlane.f32.xlu0 %v627_v44 }
 0x221   : > { %v915_v53 = vpop.permute.xlu0 %914 }
 0x222   : > { %v927_v58 = vsel %vm466_vm1, %v915_v53, 0.0 }
 0x223   : > { %675 = vadd.xlane.f32.xlu0 %v674_v47 }
 0x225   : > { %v919_v57 = vpop.permute.xlu0 %918 }
 0x226   : > { %v933_v60 = vsel %vm466_vm1, %v919_v57, 0.0 }
 0x227   : > { %775 = vadd.xlane.f32.xlu0 %v774_v48 }
 0x229   : > { %474 = vadd.xlane.f32.xlu1 %v473_v50  ;;  %v962_v59 = vpop.permute.xlu0 %961 }
 0x22a   : > { %v974_v61 = vsel %vm466_vm1, %v962_v59, 0.0 }
 0x22b   : > { %781 = vadd.xlane.f32.xlu0 %v780_v51 }
 0x22d   : > { %526 = vadd.xlane.f32.xlu1 %v525_v52  ;;  %v966_v62 = vpop.permute.xlu0 %965 }
 0x22e   : > { %v980_v63 = vsel %vm466_vm1, %v966_v62, 0.0 }
 0x22f   : > { %822 = vadd.xlane.f32.xlu0 %v821_v54 }
 0x231   : > { %669 = vadd.xlane.f32.xlu1 %v668_v55 }
 0x233   : > { %828 = vadd.xlane.f32.xlu0 %v827_v56 }
 0x237   : > { %928 = vadd.xlane.f32.xlu0 %v927_v58 }
 0x23b   : > { %934 = vadd.xlane.f32.xlu0 %v933_v60 }
 0x23f   : > { %975 = vadd.xlane.f32.xlu0 %v974_v61 }
 0x243   : > { %981 = vadd.xlane.f32.xlu0 %v980_v63 }
 0x255   : > { %v478_v0 = vpop.xlane.xlu1 %477 }
 0x256   : > { %v483_v1 = vmul.f32 0.125, %v478_v0 }
 0x258   : > { %v487_v2 = vadd.f32 1e-06, %v483_v1 }
 0x259   : > { %v515_v3 = vpop.permute.xlu1 %514 }
 0x25a   : > { %1683 = vrsqrt.f32 %v487_v2  ;;  %v528_v29 = vsel %vm466_vm1, %v515_v3, 0.0 }
 0x25d   : > { %v607_v4 = vpop.permute.xlu1 %606 }
 0x25e   : > { %v618_v5 = vsel %vm466_vm1, %v607_v4, 0.0 }
 0x25f   : > { %619 = vadd.xlane.f32.xlu1 %v618_v5 }
 0x261   : > { %v611_v6 = vpop.permute.xlu1 %610 }
 0x262   : > { %v624_v31 = vsel %vm466_vm1, %v611_v6, 0.0 }
 0x264   : > { %v1684_v7 = vpop.eup %1683 }
 0x265   : > { %v495_v10 = vmul.f32 %v1684_v7, %v2294_v13  ;;  %v658_v11 = vpop.permute.xlu1 %657 }
 0x266   : > { %v671_v40 = vsel %vm466_vm1, %v658_v11, 0.0 }
 0x267   : > { %v505_v16 = vmul.f32 %v2280_v9, %v495_v10  ;;  %v472_v17 = vpop.xlane.xlu0 %471 }
 0x268   : > { %v481_v18 = vmul.f32 0.125, %v472_v17 }
 0x269   : > { %565 = vst.msk [vmem:[%s2396_s16 + $0x18] sm:$0xff] %vm466_vm1, %v505_v16  ;;  %v760_v19 = vpop.permute.xlu1 %759 }
 0x26a   : > { %v485_v20 = vadd.f32 1e-06, %v481_v18  ;;  %v771_v21 = vsel %vm466_vm1, %v760_v19, 0.0 }
 0x26b   : > { %772 = vadd.xlane.f32.xlu1 %v771_v21  ;;  %v511_v26 = vpop.permute.xlu0 %510 }
 0x26c   : > { %1685 = vrsqrt.f32 %v485_v20  ;;  %v522_v27 = vsel %vm466_vm1, %v511_v26, 0.0 }
 0x26d   : > { %v764_v28 = vpop.permute.xlu1 %763  ;;  %523 = vadd.xlane.f32.xlu0 %v522_v27 }
 0x26e   : > { %v777_v41 = vsel %vm466_vm1, %v764_v28, 0.0 }
 0x26f   : > { %v654_v32 = vpop.permute.xlu0 %653 }
 0x270   : > { %v665_v36 = vsel %vm466_vm1, %v654_v32, 0.0 }
 0x271   : > { %v807_v30 = vpop.permute.xlu1 %806  ;;  %529 = vadd.xlane.f32.xlu0 %v528_v29 }
 0x272   : > { %v818_v42 = vsel %vm466_vm1, %v807_v30, 0.0 }
 0x275   : > { %v811_v33 = vpop.permute.xlu1 %810  ;;  %625 = vadd.xlane.f32.xlu0 %v624_v31 }
 0x276   : > { %v1686_v34 = vpop.eup %1685  ;;  %v824_v44 = vsel %vm466_vm1, %v811_v33, 0.0 }
 0x277   : > { %v493_v35 = vmul.f32 %v1686_v34, %v2292_v12 }
 0x279   : > { %v503_v37 = vmul.f32 %v2280_v9, %v493_v35  ;;  %v913_v38 = vpop.permute.xlu1 %912  ;;  %666 = vadd.xlane.f32.xlu0 %v665_v36 }
 0x27a   : > { %v924_v39 = vsel %vm466_vm1, %v913_v38, 0.0 }
 0x27b   : > { %563 = vst.msk [vmem:[%s2396_s16 + $0x8] sm:$0xff] %vm466_vm1, %v503_v37  ;;  %925 = vadd.xlane.f32.xlu1 %v924_v39 }
 0x27d   : > { %672 = vadd.xlane.f32.xlu0 %v671_v40  ;;  %v917_v43 = vpop.permute.xlu1 %916 }
 0x27e   : > { %v930_v46 = vsel %vm466_vm1, %v917_v43, 0.0 }
 0x281   : > { %778 = vadd.xlane.f32.xlu0 %v777_v41  ;;  %v960_v45 = vpop.permute.xlu1 %959 }
 0x282   : > { %v971_v47 = vsel %vm466_vm1, %v960_v45, 0.0 }
 0x285   : > { %819 = vadd.xlane.f32.xlu0 %v818_v42  ;;  %v964_v48 = vpop.permute.xlu1 %963 }
 0x286   : > { %v977_v49 = vsel %vm466_vm1, %v964_v48, 0.0 }
 0x289   : > { %825 = vadd.xlane.f32.xlu0 %v824_v44 }
 0x28c   : > { %952 = vrot.lane.b32.xlu1 %v2280_v9, %s1961_s11 }
 0x28d   : > { %931 = vadd.xlane.f32.xlu0 %v930_v46 }
 0x290   : > { %895 = vrot.lane.b32.xlu1 %v2297_v14, %s1963_s3 }
 0x291   : > { %972 = vadd.xlane.f32.xlu0 %v971_v47 }
 0x294   : > { %899 = vrot.lane.b32.xlu1 %v2299_v15, %s1963_s3 }
 0x295   : > { %978 = vadd.xlane.f32.xlu0 %v977_v49 }
 0x298   : > { %1048 = vrot.lane.b32.xlu1 %v2297_v14, %s1964_s12 }
 0x2a0   : > { %v469_v50 = vpop.xlane.xlu0 %468 }
 0x2a1   : > { %v480_v51 = vmul.f32 0.125, %v469_v50 }
 0x2a3   : > { %v484_v52 = vadd.f32 1e-06, %v480_v51 }
 0x2a4   : > { %v533_v53 = vpop.xlane.xlu0 %532 }
 0x2a5   : > { %1687 = vrsqrt.f32 %v484_v52  ;;  %v537_v54 = vmul.f32 0.125, %v533_v53 }
 0x2a7   : > { %v541_v55 = vadd.f32 1e-06, %v537_v54 }
 0x2a8   : > { %v623_v56 = vpop.xlane.xlu0 %622 }
 0x2a9   : > { %1689 = vrsqrt.f32 %v541_v55  ;;  %v631_v1 = vmul.f32 0.125, %v623_v56 }
 0x2ab   : > { %846 = vrot.lane.b32.xlu0 %v2278_v8, %s1962_s21  ;;  %v635_v5 = vadd.f32 1e-06, %v631_v1 }
 0x2ac   : > { %v629_v57 = vpop.xlane.xlu0 %628 }
 0x2ad   : > { %v633_v58 = vmul.f32 0.125, %v629_v57 }
 0x2af   : > { %v1688_v59 = vpop.eup %1687  ;;  %v637_v60 = vadd.f32 1e-06, %v633_v58  ;;  %999 = vrot.lane.b32.xlu0 %v2278_v8, %s1959_s13 }
 0x2b0   : > { %v492_v61 = vmul.f32 %v1688_v59, %v2297_v14  ;;  %v676_v63 = vpop.xlane.xlu0 %675 }
 0x2b1   : > { %1691 = vrsqrt.f32 %v637_v60  ;;  %v680_v6 = vmul.f32 0.125, %v676_v63 }
 0x2b2   : > { %v502_v62 = vmul.f32 %v2280_v9, %v492_v61 }
 0x2b3   : > { %897 = vrot.lane.b32.xlu0 %v2292_v12, %s1963_s3  ;;  %v1690_v0 = vpop.eup %1689  ;;  %v684_v20 = vadd.f32 1e-06, %v680_v6 }
 0x2b4   : > { %562 = vst.msk [vmem:[%s2396_s16] sm:$0xff] %vm466_vm1, %v502_v62  ;;  %v549_v8 = vmul.f32 %v1690_v0, %v2294_v13  ;;  %v776_v7 = vpop.xlane.xlu0 %775 }
 0x2b5   : > { %v784_v26 = vmul.f32 0.125, %v776_v7 }
 0x2b6   : > { %v475_v2 = vpop.xlane.xlu1 %474  ;;  %v561_v18 = vmul.f32 %v2338_v22, %v549_v8 }
 0x2b7   : > { %v482_v3 = vmul.f32 0.125, %v475_v2  ;;  %901 = vrot.lane.b32.xlu0 %v2294_v13, %s1963_s3  ;;  %v788_v31 = vadd.f32 1e-06, %v784_v26 }
 0x2b8   : > { %v782_v28 = vpop.xlane.xlu0 %781 }
 0x2b9   : > { %v486_v4 = vadd.f32 1e-06, %v482_v3  ;;  %v786_v32 = vmul.f32 0.125, %v782_v28 }
 0x2ba   : > { %v527_v10 = vpop.xlane.xlu1 %526 }
 0x2bb   : > { %v1692_v11 = vpop.eup %1691  ;;  %1693 = vrsqrt.f32 %v486_v4  ;;  %v535_v16 = vmul.f32 0.125, %v527_v10  ;;  %1050 = vrot.lane.b32.xlu0 %v2292_v12, %s1964_s12  ;;  %v790_v35 = vadd.f32 1e-06, %v786_v32 }
 0x2bc   : > { %v645_v19 = vmul.f32 %v1692_v11, %v2294_v13  ;;  %1695 = vrsqrt.f32 %v635_v5  ;;  %v823_v51 = vpop.xlane.xlu0 %822 }
 0x2bd   : > { %v539_v17 = vadd.f32 1e-06, %v535_v16  ;;  %v831_v32 = vmul.f32 0.125, %v823_v51 }
 0x2be   : > { %v670_v21 = vpop.xlane.xlu1 %669  ;;  %v652_v30 = vmul.f32 %v2340_v23, %v645_v19 }
 0x2bf   : > { %1697 = vrsqrt.f32 %v539_v17  ;;  %v678_v27 = vmul.f32 0.125, %v670_v21  ;;  %576 = vrot.lane.b32.xlu0 %v561_v18, %s1958_s15 }
 0x2c0   : > { %1699 = vrsqrt.f32 %v684_v20  ;;  %v829_v55 = vpop.xlane.xlu0 %828 }
 0x2c1   : > { %v682_v29 = vadd.f32 1e-06, %v678_v27 }
 0x2c3   : > { %1701 = vrsqrt.f32 %v682_v29  ;;  %710 = vrot.lane.b32.xlu0 %v652_v30, %s1957_s1 }
 0x2c4   : > { %1703 = vrsqrt.f32 %v788_v31  ;;  %v2467_v56 = vpop.xlane.xlu0 %928 }
 0x2c5   : > { %v1694_v33 = vpop.eup %1693  ;;  %1705 = vrsqrt.f32 %v790_v35  ;;  %v937_v51 = vmul.f32 0.125, %v2467_v56 }
 0x2c6   : > { %v494_v34 = vmul.f32 %v1694_v33, %v2299_v15  ;;  %v1696_v36 = vpop.eup %1695 }
 0x2c7   : > { %v643_v42 = vmul.f32 %v1696_v36, %v2292_v12 }
 0x2c8   : > { %v504_v37 = vmul.f32 %v2280_v9, %v494_v34  ;;  %v2469_v57 = vpop.xlane.xlu0 %934 }
 0x2c9   : > { %v1698_v38 = vpop.eup %1697  ;;  %v650_v45 = vmul.f32 %v2340_v23, %v643_v42 }
 0x2ca   : > { %564 = vst.msk [vmem:[%s2396_s16 + $0x10] sm:$0xff] %vm466_vm1, %v504_v37  ;;  %v547_v39 = vmul.f32 %v1698_v38, %v2292_v12  ;;  %v1700_v40 = vpop.eup %1699 }
 0x2cb   : > { %v692_v46 = vmul.f32 %v1700_v40, %v2294_v13 }
 0x2cc   : > { %v559_v41 = vmul.f32 %v2338_v22, %v547_v39  ;;  %v2471_v58 = vpop.xlane.xlu0 %975 }
 0x2cd   : > { %v1702_v43 = vpop.eup %1701  ;;  %v699_v48 = vmul.f32 %v2344_v24, %v692_v46 }
 0x2ce   : > { %572 = vrot.lane.b32.xlu1 %v559_v41, %s1958_s15  ;;  %v690_v44 = vmul.f32 %v1702_v43, %v2292_v12  ;;  %v1704_v47 = vpop.eup %1703  ;;  %v835_v41 = vadd.f32 1e-06, %v831_v32 }
 0x2cf   : > { %v796_v49 = vmul.f32 %v1704_v47, %v2292_v12  ;;  %v1706_v50 = vpop.eup %1705 }
 0x2d0   : > { %v697_v9 = vmul.f32 %v2344_v24, %v690_v44  ;;  %v798_v53 = vmul.f32 %v1706_v50, %v2294_v13  ;;  %v2473_v59 = vpop.xlane.xlu0 %981  ;;  %v833_v44 = vmul.f32 0.125, %v829_v55 }
 0x2d1   : > { %v803_v52 = vmul.f32 %v2347_v25, %v796_v49 }
 0x2d2   : > { %706 = vrot.lane.b32.xlu1 %v650_v45, %s1957_s1  ;;  %727 = vrot.lane.b32.xlu0 %v697_v9, %s1960_s17  ;;  %v805_v54 = vmul.f32 %v2347_v25, %v798_v53  ;;  %v837_v50 = vadd.f32 1e-06, %v833_v44 }
 0x2d6   : > { %731 = vrot.lane.b32.xlu0 %v699_v48, %s1960_s17 }
 0x2da   : > { %859 = vrot.lane.b32.xlu0 %v803_v52, %s1959_s13 }
 0x2de   : > { %863 = vrot.lane.b32.xlu0 %v805_v54, %s1959_s13 }
 0x2ec   : > { %v620_v60 = vpop.xlane.xlu1 %619 }
 0x2ed   : > { %v630_v61 = vmul.f32 0.125, %v620_v60 }
 0x2ef   : > { %v634_v1 = vadd.f32 1e-06, %v630_v61  ;;  %v939_v61 = vmul.f32 0.125, %v2469_v57 }
 0x2f8   : > { %v773_v6 = vpop.xlane.xlu1 %772 }
 0x2f9   : > { %v783_v21 = vmul.f32 0.125, %v773_v6  ;;  %v984_v6 = vmul.f32 0.125, %v2471_v58 }
 0x2fa   : > { %v524_v62 = vpop.xlane.xlu0 %523 }
 0x2fb   : > { %v534_v63 = vmul.f32 0.125, %v524_v62  ;;  %v787_v35 = vadd.f32 1e-06, %v783_v21 }
 0x2fd   : > { %v538_v0 = vadd.f32 1e-06, %v534_v63 }
 0x2fe   : > { %v530_v2 = vpop.xlane.xlu0 %529 }
 0x2ff   : > { %1707 = vrsqrt.f32 %v538_v0  ;;  %v536_v3 = vmul.f32 0.125, %v530_v2 }
 0x300   : > { %1709 = vrsqrt.f32 %v634_v1  ;;  %v941_v1 = vadd.f32 1e-06, %v937_v51 }
 0x301   : > { %v540_v4 = vadd.f32 1e-06, %v536_v3  ;;  %v943_v3 = vadd.f32 1e-06, %v939_v61 }
 0x302   : > { %v626_v8 = vpop.xlane.xlu0 %625 }
 0x303   : > { %1711 = vrsqrt.f32 %v540_v4  ;;  %v632_v5 = vmul.f32 0.125, %v626_v8 }
 0x305   : > { %v636_v7 = vadd.f32 1e-06, %v632_v5 }
 0x306   : > { %v667_v10 = vpop.xlane.xlu0 %666 }
 0x307   : > { %1713 = vrsqrt.f32 %v636_v7  ;;  %v677_v11 = vmul.f32 0.125, %v667_v10 }
 0x308   : > { %v926_v16 = vpop.xlane.xlu1 %925 }
 0x309   : > { %v1708_v17 = vpop.eup %1707  ;;  %v681_v18 = vadd.f32 1e-06, %v677_v11  ;;  %v936_v63 = vmul.f32 0.125, %v926_v16 }
 0x30a   : > { %v673_v19 = vpop.xlane.xlu0 %672  ;;  %v546_v20 = vmul.f32 %v1708_v17, %v2297_v14  ;;  %v1710_v27 = vpop.eup %1709 }
 0x30b   : > { %1715 = vrsqrt.f32 %v681_v18  ;;  %v679_v26 = vmul.f32 0.125, %v673_v19  ;;  %v642_v39 = vmul.f32 %v1710_v27, %v2297_v14  ;;  %v940_v8 = vadd.f32 1e-06, %v936_v63 }
 0x30c   : > { %v2476_v28 = vpop.permute.xlu1 %952  ;;  %v558_v29 = vmul.f32 %v2338_v22, %v546_v20  ;;  %v988_v19 = vadd.f32 1e-06, %v984_v6  ;;  %v986_v20 = vmul.f32 0.125, %v2473_v59 }
 0x30d   : > { %v1712_v30 = vpop.eup %1711  ;;  %v683_v31 = vadd.f32 1e-06, %v679_v26  ;;  %v649_v9 = vmul.f32 %v2340_v23, %v642_v39 }
 0x30e   : > { %570 = vrot.lane.b32.xlu1 %v558_v29, %s1958_s15  ;;  %v779_v33 = vpop.xlane.xlu0 %778  ;;  %v548_v34 = vmul.f32 %v1712_v30, %v2299_v15 }
 0x30f   : > { %1717 = vrsqrt.f32 %v683_v31  ;;  %v785_v36 = vmul.f32 0.125, %v779_v33  ;;  %v990_v33 = vadd.f32 1e-06, %v986_v20 }
 0x310   : > { %v896_v37 = vpop.permute.xlu1 %895  ;;  %v560_v38 = vmul.f32 %v2338_v22, %v548_v34  ;;  %1719 = vrsqrt.f32 %v787_v35 }
 0x311   : > { %v1714_v40 = vpop.eup %1713  ;;  %1445 = vst.msk [vmem:[%s2355_s5 + $0x40] sm:$0xff] %vm466_vm1, %v896_v37  ;;  %v789_v43 = vadd.f32 1e-06, %v785_v36  ;;  %1721 = vrsqrt.f32 %v835_v41 }
 0x312   : > { %574 = vrot.lane.b32.xlu1 %v560_v38, %s1958_s15  ;;  %v820_v42 = vpop.xlane.xlu0 %819  ;;  %v644_v46 = vmul.f32 %v1714_v40, %v2299_v15 }
 0x313   : > { %v830_v22 = vmul.f32 0.125, %v820_v42  ;;  %1723 = vrsqrt.f32 %v789_v43 }
 0x314   : > { %v900_v45 = vpop.permute.xlu1 %899  ;;  %v651_v53 = vmul.f32 %v2340_v23, %v644_v46  ;;  %1725 = vrsqrt.f32 %v837_v50 }
 0x315   : > { %v1716_v47 = vpop.eup %1715  ;;  %1447 = vst.msk [vmem:[%s2355_s5 + $0x50] sm:$0xff] %vm466_vm1, %v900_v45  ;;  %v834_v60 = vadd.f32 1e-06, %v830_v22 }
 0x316   : > { %704 = vrot.lane.b32.xlu1 %v649_v9, %s1957_s1  ;;  %v826_v48 = vpop.xlane.xlu0 %825  ;;  %v689_v54 = vmul.f32 %v1716_v47, %v2297_v14 }
 0x317   : > { %v832_v49 = vmul.f32 0.125, %v826_v48  ;;  %1727 = vrsqrt.f32 %v834_v60 }
 0x318   : > { %v1049_v52 = vpop.permute.xlu1 %1048  ;;  %v696_v56 = vmul.f32 %v2344_v24, %v689_v54 }
 0x319   : > { %v1718_v55 = vpop.eup %1717  ;;  %1457 = vst.msk [vmem:[%s2355_s5 + $0x60] sm:$0xff] %vm466_vm1, %v1049_v52  ;;  %v836_v0 = vadd.f32 1e-06, %v832_v49 }
 0x31a   : > { %708 = vrot.lane.b32.xlu1 %v651_v53, %s1957_s1  ;;  %v932_v62 = vpop.xlane.xlu0 %931  ;;  %v691_v2 = vmul.f32 %v1718_v55, %v2299_v15  ;;  %v1720_v23 = vpop.eup %1719 }
 0x31b   : > { %1729 = vrsqrt.f32 %v836_v0  ;;  %v938_v57 = vmul.f32 0.125, %v932_v62  ;;  %v1722_v5 = vpop.eup %1721  ;;  %v795_v10 = vmul.f32 %v1720_v23, %v2297_v14 }
 0x31c   : > { %1731 = vrsqrt.f32 %v941_v1  ;;  %v698_v7 = vmul.f32 %v2344_v24, %v691_v2  ;;  %v843_v58 = vmul.f32 %v1722_v5, %v2292_v12 }
 0x31d   : > { %v1724_v11 = vpop.eup %1723  ;;  %1733 = vrsqrt.f32 %v943_v3  ;;  %v942_v17 = vadd.f32 1e-06, %v938_v57  ;;  %v802_v21 = vmul.f32 %v2347_v25, %v795_v10 }
 0x31e   : > { %725 = vrot.lane.b32.xlu1 %v696_v56, %s1960_s17  ;;  %v973_v4 = vpop.xlane.xlu0 %972  ;;  %1735 = vrsqrt.f32 %v940_v8  ;;  %v797_v26 = vmul.f32 %v1724_v11, %v2299_v15  ;;  %v1726_v24 = vpop.eup %1725 }
 0x31f   : > { %v983_v18 = vmul.f32 0.125, %v973_v4  ;;  %1737 = vrsqrt.f32 %v942_v17  ;;  %v845_v35 = vmul.f32 %v1726_v24, %v2294_v13 }
 0x320   : > { %1739 = vrsqrt.f32 %v988_v19  ;;  %v804_v34 = vmul.f32 %v2347_v25, %v797_v26 }
 0x321   : > { %v1728_v29 = vpop.eup %1727  ;;  %v987_v30 = vadd.f32 1e-06, %v983_v18 }
 0x322   : > { %729 = vrot.lane.b32.xlu1 %v698_v7, %s1960_s17  ;;  %v979_v16 = vpop.xlane.xlu0 %978  ;;  %v842_v38 = vmul.f32 %v1728_v29, %v2297_v14 }
 0x323   : > { %v985_v31 = vmul.f32 0.125, %v979_v16  ;;  %1741 = vrsqrt.f32 %v987_v30 }
 0x324   : > { %1743 = vrsqrt.f32 %v990_v33 }
 0x325   : > { %v1730_v59 = vpop.eup %1729  ;;  %v989_v39 = vadd.f32 1e-06, %v985_v31 }
 0x326   : > { %857 = vrot.lane.b32.xlu1 %v802_v21, %s1959_s13  ;;  %v847_v27 = vpop.permute.xlu0 %846  ;;  %v1732_v36 = vpop.eup %1731  ;;  %v844_v25 = vmul.f32 %v1730_v59, %v2299_v15 }
 0x327   : > { %v850_v32 = vmul.f32 %v847_v27, %v843_v58  ;;  %v852_v40 = vmul.f32 %v847_v27, %v845_v35  ;;  %v1734_v41 = vpop.eup %1733  ;;  %v849_v42 = vmul.f32 %v847_v27, %v842_v38  ;;  %v949_v44 = vmul.f32 %v1732_v36, %v2292_v12 }
 0x328   : > { %v1736_v43 = vpop.eup %1735  ;;  %1745 = vrsqrt.f32 %v989_v39  ;;  %v851_v46 = vmul.f32 %v847_v27, %v844_v25  ;;  %v951_v48 = vmul.f32 %v1734_v41, %v2294_v13 }
 0x329   : > { %880 = vrot.lane.b32.xlu0 %v850_v32, %s1961_s11  ;;  %v956_v9 = vmul.f32 %v2476_v28, %v949_v44  ;;  %v948_v47 = vmul.f32 %v1736_v43, %v2297_v14  ;;  %v1738_v22 = vpop.eup %1737 }
 0x32a   : > { %861 = vrot.lane.b32.xlu1 %v804_v34, %s1959_s13  ;;  %v1000_v37 = vpop.permute.xlu0 %999  ;;  %v1740_v49 = vpop.eup %1739  ;;  %v958_v51 = vmul.f32 %v2476_v28, %v951_v48  ;;  %v950_v53 = vmul.f32 %v1738_v22, %v2299_v15 }
 0x32b   : > { %v955_v52 = vmul.f32 %v2476_v28, %v948_v47  ;;  %v996_v55 = vmul.f32 %v1740_v49, %v2292_v12 }
 0x32c   : > { %v957_v63 = vmul.f32 %v2476_v28, %v950_v53 }
 0x32d   : > { %884 = vrot.lane.b32.xlu0 %v852_v40, %s1961_s11  ;;  %v1742_v54 = vpop.eup %1741  ;;  %v1003_v62 = vmul.f32 %v1000_v37, %v996_v55 }
 0x32e   : > { %878 = vrot.lane.b32.xlu1 %v849_v42, %s1961_s11  ;;  %v898_v45 = vpop.permute.xlu0 %897  ;;  %v1744_v60 = vpop.eup %1743  ;;  %v995_v0 = vmul.f32 %v1742_v54, %v2297_v14 }
 0x32f   : > { %1446 = vst.msk [vmem:[%s2355_s5 + $0x48] sm:$0xff] %vm466_vm1, %v898_v45  ;;  %v998_v56 = vmul.f32 %v1744_v60, %v2294_v13 }
 0x330   : > { %v1002_v28 = vmul.f32 %v1000_v37, %v995_v0 }
 0x331   : > { %1012 = vrot.lane.b32.xlu0 %v956_v9, %s1962_s21  ;;  %v1005_v2 = vmul.f32 %v1000_v37, %v998_v56 }
 0x332   : > { %882 = vrot.lane.b32.xlu1 %v851_v46, %s1961_s11  ;;  %v902_v50 = vpop.permute.xlu0 %901  ;;  %v1746_v1 = vpop.eup %1745 }
 0x333   : > { %1448 = vst.msk [vmem:[%s2355_s5 + $0x58] sm:$0xff] %vm466_vm1, %v902_v50  ;;  %v997_v14 = vmul.f32 %v1746_v1, %v2299_v15 }
 0x335   : > { %1016 = vrot.lane.b32.xlu0 %v958_v51, %s1962_s21  ;;  %v1004_v4 = vmul.f32 %v1000_v37, %v997_v14 }
 0x336   : > { %1010 = vrot.lane.b32.xlu1 %v955_v52, %s1962_s21  ;;  %v1051_v61 = vpop.permute.xlu0 %1050 }
 0x337   : > { %1458 = vst.msk [vmem:[%s2355_s5 + $0x68] sm:$0xff] %vm466_vm1, %v1051_v61 }
 0x339   : > { %1033 = vrot.lane.b32.xlu0 %v1003_v62, %s1954_s6 }
 0x33a   : > { %1014 = vrot.lane.b32.xlu1 %v957_v63, %s1962_s21  ;;  %v577_v12 = vpop.permute.xlu0 %576 }
 0x33b   : > { %585 = vst.msk [vmem:[%s2543_s7 + $0x18] sm:$0xff] %vm466_vm1, %v577_v12 }
 0x33d   : > { %1037 = vrot.lane.b32.xlu0 %v1005_v2, %s1954_s6 }
 0x33e   : > { %1031 = vrot.lane.b32.xlu1 %v1002_v28, %s1954_s6  ;;  %v711_v23 = vpop.permute.xlu0 %710 }
 0x33f   : > { %1428 = vst.msk [vmem:[%s2396_s16 + $0x38] sm:$0xff] %vm466_vm1, %v711_v23 }
 0x340   : > { %v573_v3 = vpop.permute.xlu1 %572 }
 0x341   : > { %583 = vst.msk [vmem:[%s2543_s7 + $0x8] sm:$0xff] %vm466_vm1, %v573_v3  ;;  %1054 = vrot.lane.b32.xlu0 %v2294_v13, %s1964_s12 }
 0x342   : > { %1035 = vrot.lane.b32.xlu1 %v1004_v4, %s1954_s6  ;;  %s2616_s6 = scalar_lea.sflag [#allocation12], %s1070_s2 }
 0x344   : > { %v707_v8 = vpop.permute.xlu1 %706  ;;  %v728_v57 = vpop.permute.xlu0 %727 }
 0x345   : > { %1426 = vst.msk [vmem:[%s2396_s16 + $0x28] sm:$0xff] %vm466_vm1, %v707_v8  ;;  %1430 = vst.msk [vmem:[%s2543_s7 + $0x28] sm:$0xff] %vm466_vm1, %v728_v57 }
 0x346   : > { %1052 = vrot.lane.b32.xlu1 %v2299_v15, %s1964_s12 }
 0x348   : > { %v732_v5 = vpop.permute.xlu0 %731 }
 0x349   : > { %1432 = vst.msk [vmem:[%s2543_s7 + $0x38] sm:$0xff] %vm466_vm1, %v732_v5 }
 0x34c   : > { %v860_v13 = vpop.permute.xlu0 %859 }
 0x34d   : > { %1438 = vst.msk [vmem:[%s2396_s16 + $0x48] sm:$0xff] %vm466_vm1, %v860_v13 }
 0x350   : > { %v864_v6 = vpop.permute.xlu0 %863 }
 0x351   : > { %1440 = vst.msk [vmem:[%s2396_s16 + $0x58] sm:$0xff] %vm466_vm1, %v864_v6 }
 0x380   : > { %v571_v7 = vpop.permute.xlu1 %570 }
 0x381   : > { %582 = vst.msk [vmem:[%s2543_s7] sm:$0xff] %vm466_vm1, %v571_v7 }
 0x384   : > { %v575_v10 = vpop.permute.xlu1 %574 }
 0x385   : > { %584 = vst.msk [vmem:[%s2543_s7 + $0x10] sm:$0xff] %vm466_vm1, %v575_v10 }
 0x388   : > { %v705_v15 = vpop.permute.xlu1 %704 }
 0x389   : > { %1425 = vst.msk [vmem:[%s2396_s16 + $0x20] sm:$0xff] %vm466_vm1, %v705_v15 }
 0x38c   : > { %v709_v11 = vpop.permute.xlu1 %708 }
 0x38d   : > { %1427 = vst.msk [vmem:[%s2396_s16 + $0x30] sm:$0xff] %vm466_vm1, %v709_v11 }
 0x390   : > { %v726_v16 = vpop.permute.xlu1 %725 }
 0x391   : > { %1429 = vst.msk [vmem:[%s2543_s7 + $0x20] sm:$0xff] %vm466_vm1, %v726_v16 }
 0x394   : > { %v730_v17 = vpop.permute.xlu1 %729 }
 0x395   : > { %1431 = vst.msk [vmem:[%s2543_s7 + $0x30] sm:$0xff] %vm466_vm1, %v730_v17 }
 0x398   : > { %v858_v18 = vpop.permute.xlu1 %857 }
 0x399   : > { %1437 = vst.msk [vmem:[%s2396_s16 + $0x40] sm:$0xff] %vm466_vm1, %v858_v18 }
 0x39b   : > { %v881_v19 = vpop.permute.xlu0 %880 }
 0x39c   : > { %1442 = vst.msk [vmem:[%s2543_s7 + $0x48] sm:$0xff] %vm466_vm1, %v881_v19  ;;  %v862_v20 = vpop.permute.xlu1 %861 }
 0x39d   : > { %1439 = vst.msk [vmem:[%s2396_s16 + $0x50] sm:$0xff] %vm466_vm1, %v862_v20 }
 0x39f   : > { %v885_v21 = vpop.permute.xlu0 %884 }
 0x3a0   : > { %1444 = vst.msk [vmem:[%s2543_s7 + $0x58] sm:$0xff] %vm466_vm1, %v885_v21  ;;  %v879_v26 = vpop.permute.xlu1 %878 }
 0x3a1   : > { %1441 = vst.msk [vmem:[%s2543_s7 + $0x40] sm:$0xff] %vm466_vm1, %v879_v26 }
 0x3a3   : > { %v1013_v58 = vpop.permute.xlu0 %1012 }
 0x3a4   : > { %1450 = vst.msk [vmem:[%s2396_s16 + $0x68] sm:$0xff] %vm466_vm1, %v1013_v58  ;;  %v883_v24 = vpop.permute.xlu1 %882 }
 0x3a5   : > { %1443 = vst.msk [vmem:[%s2543_s7 + $0x50] sm:$0xff] %vm466_vm1, %v883_v24 }
 0x3a7   : > { %v1017_v27 = vpop.permute.xlu0 %1016 }
 0x3a8   : > { %1452 = vst.msk [vmem:[%s2396_s16 + $0x78] sm:$0xff] %vm466_vm1, %v1017_v27  ;;  %v1011_v29 = vpop.permute.xlu1 %1010 }
 0x3a9   : > { %1449 = vst.msk [vmem:[%s2396_s16 + $0x60] sm:$0xff] %vm466_vm1, %v1011_v29 }
 0x3ab   : > { %v1034_v30 = vpop.permute.xlu0 %1033 }
 0x3ac   : > { %1454 = vst.msk [vmem:[%s2543_s7 + $0x68] sm:$0xff] %vm466_vm1, %v1034_v30  ;;  %v1015_v31 = vpop.permute.xlu1 %1014 }
 0x3ad   : > { %1451 = vst.msk [vmem:[%s2396_s16 + $0x70] sm:$0xff] %vm466_vm1, %v1015_v31 }
 0x3af   : > { %v1038_v32 = vpop.permute.xlu0 %1037 }
 0x3b0   : > { %1456 = vst.msk [vmem:[%s2543_s7 + $0x78] sm:$0xff] %vm466_vm1, %v1038_v32  ;;  %v1032_v33 = vpop.permute.xlu1 %1031 }
 0x3b1   : > { %1453 = vst.msk [vmem:[%s2543_s7 + $0x60] sm:$0xff] %vm466_vm1, %v1032_v33 }
 0x3b3   : > { %v1055_v34 = vpop.permute.xlu0 %1054 }
 0x3b4   : > { %1460 = vst.msk [vmem:[%s2355_s5 + $0x78] sm:$0xff] %vm466_vm1, %v1055_v34  ;;  %v1036_v59 = vpop.permute.xlu1 %1035 }
 0x3b5   : > { %1455 = vst.msk [vmem:[%s2543_s7 + $0x70] sm:$0xff] %vm466_vm1, %v1036_v59 }
 0x3b8   : > { %v1053_v35 = vpop.permute.xlu1 %1052 }
 0x3b9   : > { %1459 = vst.msk [vmem:[%s2355_s5 + $0x70] sm:$0xff] %vm466_vm1, %v1053_v35 }
 0x3ba   : > { %s1464_s20 = sshll.u32 %s1927_s24, 2  ;;  %s1465_s8 = sshll.u32 %s1931_s25, 5 }
 0x3bb   : > { %s1088_s1 = sadd.s32 %s1465_s8, %s1464_s20  ;;  %s1107_s15 = sshll.u32 %s2396_s16, 4  ;;  %s1108_s15 = int_to_ptr.vmem [resolvable:$true] %s1107_s15 }
 0x3bc   : > { %s2621_s13 = sshll.u32 %s1088_s1, 7  ;;  %s1965_s11 = smov 512  }
 0x3bd   : > { %s1090_s17 = scalar_lea.hbm %s2715_s4, %s2621_s13  ;;  %1523 = sst [smem:[#allocation15]] (%p2189_p3), %s1965_s11 }
 0x3be   : > { %s1966_s21 = smov 1024   ;;  %s1967_s24 = smov 4  }
 0x3bf   : > { %1524 = sst [smem:[#allocation15 + $0x1]] (%p2189_p3), %s1966_s21  ;;  %s1968_s25 = smov 128  }
 0x3c0   : > { %1525 = sst [smem:[#allocation15 + $0x2]] (%p2189_p3), %s1967_s24  ;;  %s1969_s14 = smov 8  }
 0x3c1   : > { %1526 = sst [smem:[#allocation15 + $0x3]] (%p2189_p3), %s1968_s25  ;;  %s1970_s16 = smov [#allocation14]  }
 0x3c2   : > { %1527 = sst [smem:[#allocation15 + $0x4]] (%p2189_p3), %s1968_s25  ;;  %s1971_s3 = smov 0  }
 0x3c3   : > { %1528 = sst [smem:[#allocation15 + $0x5]] (%p2189_p3), %s1969_s14 }
 0x3c4   : > { %1529 = dma.general (%p2189_p3), %s1108_s15, 2048, %s1090_s17, %s1066_s9, %s1970_s16, [#allocation15], %s1971_s3, 0  }
 0x3c5   : > { %s2755_s20 = sld [smem:[#allocation31_spill]]  ;;  %s1154_s1 = sshll.u32 %s2543_s7, 4  ;;  %s1155_s1 = int_to_ptr.vmem [resolvable:$true] %s1154_s1 }
 0x3c6   : > { %s1972_s29 = smov 512   ;;  %s1973_s9 = smov 1024  }
 0x3c7   : > { %1530 = sst [smem:[#allocation17]] (%p2189_p3), %s1972_s29  ;;  %s1974_s15 = smov 4  }
 0x3c8   : > { %1531 = sst [smem:[#allocation17 + $0x1]] (%p2189_p3), %s1973_s9  ;;  %s1975_s19 = smov 128  }
 0x3c9   : > { %1532 = sst [smem:[#allocation17 + $0x2]] (%p2189_p3), %s1974_s15  ;;  %s1976_s17 = smov 8  }
 0x3ca   : > { %1533 = sst [smem:[#allocation17 + $0x3]] (%p2189_p3), %s1975_s19  ;;  %s1977_s11 = smov [#allocation16]  }
 0x3cb   : > { %s1137_s8 = scalar_lea.hbm %s2755_s20, %s2621_s13  ;;  %1534 = sst [smem:[#allocation17 + $0x4]] (%p2189_p3), %s1975_s19 }
 0x3cc   : > { %1535 = sst [smem:[#allocation17 + $0x5]] (%p2189_p3), %s1976_s17  ;;  %s1978_s7 = smov 0  }
 0x3cd   : > { %1536 = dma.general (%p2189_p3), %s1155_s1, 2048, %s1137_s8, %s2616_s6, %s1977_s11, [#allocation17], %s1978_s7, 0  }
 0x3ce   : > { %s2756_s25 = sld [smem:[#allocation32_spill]]  ;;  %s1201_s16 = sshll.u32 %s2355_s5, 4  ;;  %s1202_s16 = int_to_ptr.vmem [resolvable:$true] %s1201_s16 }
 0x3cf   : > { %s1979_s3 = smov 512   ;;  %s1980_s12 = smov 1024  }
 0x3d0   : > { %1537 = sst [smem:[#allocation19]] (%p2189_p3), %s1979_s3  ;;  %s1981_s2 = smov 4  }
 0x3d1   : > { %1538 = sst [smem:[#allocation19 + $0x1]] (%p2189_p3), %s1980_s12  ;;  %s1982_s20 = smov 128  }
 0x3d2   : > { %1539 = sst [smem:[#allocation19 + $0x2]] (%p2189_p3), %s1981_s2  ;;  %s1983_s8 = smov 8  }
 0x3d3   : > { %1540 = sst [smem:[#allocation19 + $0x3]] (%p2189_p3), %s1982_s20  ;;  %s1985_s5 = smov 0  }
 0x3d4   : > { %s1184_s14 = scalar_lea.hbm %s2756_s25, %s2621_s13  ;;  %1541 = sst [smem:[#allocation19 + $0x4]] (%p2189_p3), %s1982_s20 }
 0x3d5   : > { %1542 = sst [smem:[#allocation19 + $0x5]] (%p2189_p3), %s1983_s8  ;;  %s1984_s13 = smov [#allocation18]  }
 0x3d6   : > { %1543 = dma.general (%p2189_p3), %s1202_s16, 2048, %s1184_s14, %s2616_s6, %s1984_s13, [#allocation19], %s1985_s5, 0  }
 0x3d7 PF: > { %s2757_s1 = sld [smem:[#allocation25_spill]]  ;;  %s2758_s29 = sld [smem:[#allocation26_spill]] }
 0x3d8   : > { %p1578_p5 = scmp.ge.s32.totalorder %s1943_s28, 2 }
 0x3dd   : > { %s1229_s9 = sand.u32 1, %s2757_s1   ;;  %p2759_p7 = scmp.ne.s32.totalorder %s2758_s29, 0 }
 0x3de   : > { %s1230_s15 = scalar_lea.sflag [#allocation4], %s1229_s9 }
 0x3df   : > { %p1562_p11 = pnand %p1578_p5, %p2759_p7 }
 0x3e1   : > { %1906 = dma.done.wait (!%p1562_p11), %s1230_s15, 2048  }
 0x3e2   : > { %1908 = vsyncadd (!%p1562_p11), %s1230_s15, 4294965248  ;;  %s2760_s19 = sadd.s32 4294967294, %s1943_s28  }
 0x3e3   : > { %s1238_s17 = sand.u32 1, %s2760_s19  }
 0x3e4   : > { %s1239_s11 = scalar_lea.sflag [#allocation12], %s1238_s17 }
 0x3e5   : > { %1910 = dma.done.wait (!%p1562_p11), %s1239_s11, 4096  }
 0x3e6   : > { %1912 = vsyncadd (!%p1562_p11), %s1239_s11, 4294963200  ;;  %s28_s28 = sadd.s32 1, %s1943_s28   ;;  %s2761_s10 = sld [smem:[#allocation27_spill]] }
 0x3e7   : > { %p25_p3 = scmp.ge.s32.totalorder %s28_s28, 6   ;;  %s2762_s21 = smov %s1919_s22 }
 0x3e8   : > { %s2763_s22 = smov %s1923_s23  ;;  %s2764_s23 = smov %s2206_s18 }
 0x3e9   : > { %s2765_s24 = smov %s1935_s26  ;;  %s2766_s25 = smov %s1939_s27 }
 0x3ea   : > { %s2767_s26 = smov %s2770_s30  ;;  %27 = sbr.rel (!%p25_p3) target bundleno = 17 (0x11), region = 149 }
 0x3ec   : > { %s2768_s27 = smov %s2761_s10 }
 0x3f1   :  { %1253 = vsyncpa [#allocation3], 1 }
 0x3f2   :  { %1255 = vsyncpa [#allocation3 + $0x1], 1 }
 0x3f3   :  { %1256 = vsyncpa [#allocation6], 1 }
 0x3f4   :  { %1257 = vsyncpa [#allocation9], 1 }
 0x3f5   :  { %1258 = vsyncpa [#allocation4], 1 }
 0x3f6   :  { %1260 = vsyncpa [#allocation4 + $0x1], 1 }
 0x3f7   :  { %1261 = vsyncpa [#allocation12], 1 }
 0x3f8   :  { %1263 = vsyncpa [#allocation12 + $0x1], 1 }

// kernel: tpu_custom_call.1
= control target key start
LH: loop header
LB: loop body
LE: loop exit
PB: predicated region body
PF: predicated region fallthrough
CT: control target
= control target key end

     0   :  { %s2711_s0 = inlined_call_operand.hbm [shape: f32[2,64,32], index: 0, kind: input, shape index: {}]   ;;  %s2712_s1 = inlined_call_operand.hbm [shape: f32[32,96], index: 1, kind: input, shape index: {}]   ;;  %s2713_s2 = inlined_call_operand.hbm [shape: f32[1,8], index: 2, kind: input, shape index: {}]   ;;  %s2714_s3 = inlined_call_operand.hbm [shape: f32[1,8], index: 3, kind: input, shape index: {}]   ;;  %s2715_s4 = inlined_call_operand.hbm [shape: f32[2,4,64,8], index: 4, kind: output, shape index: {0}]   ;;  %s2716_s5 = inlined_call_operand.hbm [shape: f32[2,4,64,8], index: 5, kind: output, shape index: {1}]   ;;  %s2717_s6 = inlined_call_operand.hbm [shape: f32[2,4,64,8], index: 6, kind: output, shape index: {2}]  }
   0x1   :  { %2727 = sst [smem:[#allocation28_spill]] %s2712_s1 }
   0x2   :  { %2728 = sst [smem:[#allocation29_spill]] %s2713_s2 }
   0x3   :  { %2729 = sst [smem:[#allocation30_spill]] %s2714_s3 }
   0x4   :  { %2730 = sst [smem:[#allocation31_spill]] %s2716_s5 }
   0x5   :  { %2731 = sst [smem:[#allocation32_spill]] %s2717_s6 }
   0x6   :  { %12 = vsyncpa [#allocation3], 0 }
   0x7   :  { %14 = vsyncpa [#allocation3 + $0x1], 0 }
   0x8   :  { %15 = vsyncpa [#allocation6], 0 }
   0x9   :  { %16 = vsyncpa [#allocation9], 0 }
   0xa   :  { %17 = vsyncpa [#allocation4], 0 }
   0xb   :  { %19 = vsyncpa [#allocation4 + $0x1], 0 }
   0xc   :  { %20 = vsyncpa [#allocation12], 0 }
   0xd   :  { %22 = vsyncpa [#allocation12 + $0x1], 0  ;;  %s2021_s21 = smov 0   ;;  %s2023_s22 = smov 0  }
   0xe   :  { %s2025_s23 = smov 0   ;;  %s2027_s24 = smov 0  }
   0xf   :  { %s2029_s25 = smov 0   ;;  %s2031_s26 = smov 0  }
  0x10   :  { %s2033_s27 = smov 0   ;;  %s2035_s28 = smov 0  }
  0x11 LB: > { %2732 = sst [smem:[#allocation25_spill]] %s1915_s21  ;;  %s2062_s29 = sadd.s32 4294967295, %s1943_s28   ;;  %s1943_s28 = sphi %s2035_s28, %s28_s28   ;;  %s1939_s27 = sphi %s2033_s27, %s2768_s27   ;;  %s1935_s26 = sphi %s2031_s26, %s2767_s26   ;;  %s1931_s25 = sphi %s2029_s25, %s2766_s25   ;;  %s1927_s24 = sphi %s2027_s24, %s2765_s24   ;;  %s1923_s23 = sphi %s2025_s23, %s2764_s23   ;;  %s1919_s22 = sphi %s2023_s22, %s2763_s22   ;;  %s1915_s21 = sphi %s2021_s21, %s2762_s21  }
  0x12   : > { %s2718_s30 = sadd.s32 4294967294, %s1943_s28   ;;  %p62_p0 = scmp.ne.s32.totalorder %s1919_s22, %s1915_s21 }
  0x13   : > { %p2719_p1 = scmp.eq.s32.totalorder %s2062_s29, 0  ;;  %p157_p3 = scmp.eq.s32.totalorder %s2718_s30, 3 }
  0x14   : > { %p1402_p5 = scmp.ge.s32.totalorder %s1943_s28, 1  ;;  %p220_p7 = scmp.lt.s32.totalorder %s1943_s28, 5 }
  0x15   : > { %p2073_p4 = por %p2719_p1, %p62_p0  ;;  %p2078_p6 = por %p157_p3, %p62_p0 }
  0x16   : > { %p2083_p8 = pnand %p1402_p5, %p220_p7  ;;  %s1945_s10 = smov [#allocation5]  }
  0x17   : > { %s2733_s7 = scalar_select %p2073_p4, 1, 0 }
  0x18   : > { %s2734_s8 = scalar_select %p2078_p6, 1, 0 }
  0x19   : > { %s2736_s9 = scalar_select %p2083_p8, 1, 0 }
  0x1a   : > { %2735 = sst [smem:[#allocation26_spill]] %s2734_s8  ;;  %s232_s11 = sshll.u32 %s1945_s10, 4  ;;  %s2087_s11 = int_to_ptr.vmem [resolvable:$true] %s232_s11 }
  0x1b   : > { %p1547_p9 = pneg %p2083_p8  ;;  %s1946_s13 = smov [#allocation7]  }
  0x1c   : > { %s246_s14 = sshll.u32 %s1946_s13, 4  ;;  %s1947_s15 = smov [#allocation8]   ;;  %s2097_s14 = int_to_ptr.vmem [resolvable:$true] %s246_s14 }
  0x1d   : > { %p2093_p10 = pnand %p1547_p9, %p2719_p1  ;;  %s2099_s16 = sshll.u32 %s1947_s15, 4  ;;  %s258_s16 = int_to_ptr.vmem [resolvable:$true] %s2099_s16 }
  0x1e   : > { %s2738_s1 = sld [smem:[#allocation28_spill]] }
  0x1f   : > { %p2109_p12 = pneg %p2093_p10 }
  0x24   : > { %s1747_s19 = scalar_lea.hbm %s2738_s1, 512 }
  0x25   : > { %p1748_p11 = scmp.ne.s32.totalorder %s2738_s1, %s1747_s19  ;;  %p1754_p3 = scmp.lt.u32.totalorder %s1747_s19, %s2738_s1 }
  0x27   : > { %p1750_p13 = pnand %p2109_p12, %p1748_p11 }
  0x29   : > { %p1751_p0 = pneg %p1750_p13 }
  0x2b   : > { %p1756_p5 = pnand %p1754_p3, %p1751_p0 }
  0x2d   : > { %1759 = shalt.err (!%p1756_p5)
}
  0x2e   : > { %s1760_s17 = scalar_lea.vmem %s2087_s11, 512  ;;  %p1768_p2 = scmp.lt.s32.totalorder %s2087_s11, %s2087_s11 }
  0x2f   : > { %p1761_p7 = scmp.ne.s32.totalorder %s2087_s11, %s1760_s17  ;;  %p1769_p6 = scmp.lt.s32.totalorder %s1760_s17, %s1760_s17 }
  0x31   : > { %p1763_p9 = pnand %p1761_p7, %p2109_p12  ;;  %p1770_p11 = por %p1769_p6, %p1768_p2 }
  0x33   : > { %p1764_p1 = pneg %p1763_p9 }
  0x35   : > { %p1771_p13 = pnand %p1770_p11, %p1764_p1 }
  0x37   : > { %1774 = shalt.err (!%p1771_p13)
}
  0x38   : > { %s2724_s18 = smov 128   ;;  %s2725_s19 = smov 8  }
  0x39   : > { %1550 = dma.hbm_to_vmem [thread:$0]  (!%p2093_p10), %s2738_s1, 512, %s2087_s11, [#allocation6], %s2724_s18, %s2724_s18, %s2725_s19  }
  0x3a   : > { %s2740_s2 = sld [smem:[#allocation29_spill]] }
  0x40   : > { %s1775_s17 = scalar_lea.hbm %s2740_s2, 16 }
  0x41   : > { %p1776_p1 = scmp.ne.s32.totalorder %s2740_s2, %s1775_s17  ;;  %p1782_p0 = scmp.lt.u32.totalorder %s1775_s17, %s2740_s2 }
  0x43   : > { %p1778_p2 = pnand %p1776_p1, %p2109_p12 }
  0x45   : > { %p1779_p6 = pneg %p1778_p2 }
  0x47   : > { %p1784_p3 = pnand %p1782_p0, %p1779_p6 }
  0x49   : > { %1787 = shalt.err (!%p1784_p3)
}
  0x4a   : > { %s1788_s11 = scalar_lea.vmem %s2097_s14, 16  ;;  %s1795_s21 = scalar_lea.vmem %s2097_s14, 32 }
  0x4b   : > { %p1789_p5 = scmp.ne.s32.totalorder %s2097_s14, %s1788_s11  ;;  %p1796_p11 = scmp.lt.s32.totalorder %s2097_s14, %s2097_s14 }
  0x4c   : > { %p1797_p13 = scmp.lt.s32.totalorder %s1795_s21, %s1788_s11 }
  0x4d   : > { %p1791_p7 = pnand %p1789_p5, %p2109_p12 }
  0x4e   : > { %p1798_p1 = por %p1797_p13, %p1796_p11 }
  0x4f   : > { %p1792_p9 = pneg %p1791_p7 }
  0x51   : > { %p1799_p2 = pnand %p1798_p1, %p1792_p9 }
  0x53   : > { %1802 = shalt.err (!%p1799_p2)
}
  0x54   : > { %1553 = dma.hbm_to_vmem [thread:$0]  (!%p2093_p10), %s2740_s2, 16, %s2097_s14, [#allocation6]  }
  0x55   : > { %s2741_s3 = sld [smem:[#allocation30_spill]] }
  0x5b   : > { %s1803_s10 = scalar_lea.hbm %s2741_s3, 16 }
  0x5c   : > { %p1804_p6 = scmp.ne.s32.totalorder %s2741_s3, %s1803_s10  ;;  %p1810_p5 = scmp.lt.u32.totalorder %s1803_s10, %s2741_s3 }
  0x5e   : > { %p1806_p0 = pnand %p1804_p6, %p2109_p12 }
  0x60   : > { %p1807_p3 = pneg %p1806_p0 }
  0x62   : > { %p1812_p7 = pnand %p1810_p5, %p1807_p3 }
  0x64   : > { %1815 = shalt.err (!%p1812_p7)
}
  0x65   : > { %s1816_s21 = scalar_lea.vmem %s258_s16, 16  ;;  %s1823_s14 = scalar_lea.vmem %s258_s16, 32 }
  0x66   : > { %p1817_p9 = scmp.ne.s32.totalorder %s258_s16, %s1816_s21  ;;  %p1824_p1 = scmp.lt.s32.totalorder %s258_s16, %s258_s16 }
  0x67   : > { %p1825_p2 = scmp.lt.s32.totalorder %s1823_s14, %s1816_s21 }
  0x68   : > { %p1819_p11 = pnand %p1817_p9, %p2109_p12 }
  0x69   : > { %p1826_p4 = por %p1825_p2, %p1824_p1 }
  0x6a   : > { %p1820_p13 = pneg %p1819_p11 }
  0x6c   : > { %p1827_p8 = pnand %p1826_p4, %p1820_p13 }
  0x6e   : > { %1830 = shalt.err (!%p1827_p8)
}
  0x6f   : > { %1556 = dma.hbm_to_vmem [thread:$0]  (!%p2093_p10), %s2741_s3, 16, %s258_s16, [#allocation9]  }
  0x70   : > { %s37_s30 = sadd.s32 1, %s1935_s26  ;;  %s40_s12 = sadd.s32 1, %s1939_s27 }
  0x71   : > { %p38_p4 = scmp.ge.s32.totalorder %s37_s30, 2  ;;  %s49_s8 = sadd.s32 1, %s1923_s23 }
  0x72   : > { %p56_p8 = scmp.ne.s32.totalorder %s1923_s23, %s1919_s22  ;;  %p57_p12 = scmp.eq.s32.totalorder %s1943_s28, 0 }
  0x73   : > { %s2770_s30 = smov (%p38_p4, %s37_s30), 0  ;;  %s2772_s12 = smov (!%p38_p4, %s40_s12), %s1939_s27 }
  0x74   : > { %s45_s20 = ssub.s32 %s1935_s26, %s2770_s30  ;;  %p42_p6 = scmp.ge.s32.totalorder %s2772_s12, 2 }
  0x75   : > { %p2742_p0 = scmp.eq.s32.totalorder %s2062_s29, 3  ;;  %p2193_p10 = por %p57_p12, %p56_p8 }
  0x76   : > { %p1574_p5 = scmp.lt.s32.totalorder %s1943_s28, 4  ;;  %s2774_s12 = smov (%p42_p6, %s2772_s12), 0 }
  0x77   : > { %p2189_p3 = por %p2742_p0, %p56_p8  ;;  %2745 = sst [smem:[#allocation27_spill]] %s2774_s12 }
  0x78   : > { %s268_s13 = sand.u32 1, %s1923_s23   ;;  %s1408_s15 = sshll.u32 %s1935_s26, 2 }
  0x79   : > { %s44_s17 = ssub.s32 %s1939_s27, %s2774_s12  ;;  %s1407_s21 = sshll.u32 %s268_s13, 5 }
  0x7a   : > { %s46_s11 = sor.u32 %s45_s20, %s44_s17  ;;  %s1409_s14 = sshll.u32 %s1939_s27, 3 }
  0x7b   : > { %p47_p7 = scmp.eq.s32.totalorder %s46_s11, 0  ;;  %s272_s5 = scalar_lea.vmem [#allocation2], %s1407_s21 }
  0x7c   : > { %s281_s6 = sshll.u32 %s272_s5, 4  ;;  %s278_s19 = sadd.s32 %s1409_s14, %s1408_s15  ;;  %s2208_s6 = int_to_ptr.vmem [resolvable:$true] %s281_s6 }
  0x7d   : > { %s2206_s18 = scalar_select %p47_p7, %s1923_s23, %s49_s8  }
  0x7e   : > { %s1410_s1 = sshll.u32 %s278_s19, 7  ;;  %p2214_p9 = pnand %p1574_p5, %p2193_p10 }
  0x7f   : > { %s2221_s20 = scalar_lea.hbm %s2711_s0, %s1410_s1  ;;  %s2223_s8 = scalar_lea.sflag [#allocation3], %s268_s13 }
  0x80   : > { %s1831_s19 = scalar_lea.hbm %s2221_s20, 512  ;;  %p1833_p13 = pneg %p2214_p9 }
  0x81   : > { %p1832_p11 = scmp.ne.s32.totalorder %s2221_s20, %s1831_s19  ;;  %s1836_s12 = scalar_lea.hbm %s2711_s0, 2048 }
  0x82   : > { %p1837_p4 = scmp.lt.u32.totalorder %s2221_s20, %s2711_s0  ;;  %p1838_p8 = scmp.lt.u32.totalorder %s1836_s12, %s1831_s19 }
  0x83   : > { %p1834_p1 = pnand %p1833_p13, %p1832_p11  ;;  %p1840_p6 = scmp.lt.u32.totalorder %s1831_s19, %s2221_s20 }
  0x84   : > { %p1839_p12 = por %p1838_p8, %p1837_p4 }
  0x85   : > { %p1835_p2 = pneg %p1834_p1 }
  0x86   : > { %p1841_p0 = por %p1840_p6, %p1839_p12 }
  0x88   : > { %p1842_p10 = pnand %p1841_p0, %p1835_p2 }
  0x8a   : > { %1845 = shalt.err (!%p1842_p10)
}
  0x8b   : > { %s1846_s13 = scalar_lea.vmem %s2208_s6, 512  ;;  %s1950_s17 = smov [#allocation2]  }
  0x8c   : > { %p1847_p5 = scmp.ne.s32.totalorder %s2208_s6, %s1846_s13  ;;  %s1851_s11 = sshll.u32 %s1950_s17, 4  ;;  %s1852_s11 = int_to_ptr.vmem [resolvable:$false] %s1851_s11 }
  0x8d   : > { %s1853_s21 = scalar_lea.vmem %s1852_s11, 1024  ;;  %p1854_p1 = scmp.lt.s32.totalorder %s2208_s6, %s1852_s11 }
  0x8e   : > { %p1849_p7 = pnand %p1847_p5, %p1833_p13  ;;  %p1855_p4 = scmp.lt.s32.totalorder %s1853_s21, %s1846_s13 }
  0x90   : > { %p1850_p11 = pneg %p1849_p7  ;;  %p1856_p8 = por %p1855_p4, %p1854_p1 }
  0x92   : > { %p1857_p12 = pnand %p1856_p8, %p1850_p11 }
  0x94   : > { %1860 = shalt.err (!%p1857_p12)
}
  0x95   : > { %s2747_s14 = smov 8   ;;  %s2748_s5 = smov 128  }
  0x96   : > { %1560 = dma.hbm_to_vmem [thread:$0]  (!%p2214_p9), %s2221_s20, 512, %s2208_s6, %s2223_s8, %s2748_s5, %s2748_s5, %s2747_s14  }
  0x97   : > { %p2749_p13 = scmp.ne.s32.totalorder %s2736_s9, 0 }
  0x98   : > { %s2257_s19 = sand.u32 (!%p2749_p13), 1, %s1919_s22   ;;  %p2750_p2 = scmp.ne.s32.totalorder (!%p2749_p13), %s2733_s7, 0 }
  0x99   : > { %293 = sbr.rel (%p2749_p13) target bundleno = 983 (0x3d7), region = 36  ;;  %s1412_s16 = sshll.u32 (!%p2749_p13), %s2257_s19, 5 }
  0x9a   : > { %s296_s3 = scalar_lea.sflag (!%p2749_p13), [#allocation3], %s2257_s19  ;;  %s2261_s12 = scalar_lea.vmem (!%p2749_p13), [#allocation2], %s1412_s16 }
  0xa0   : > { %1894 = dma.done.wait (%p2750_p2), %s296_s3, 512  }
  0xa1   : > { %1896 = vsyncadd (%p2750_p2), %s296_s3, 4294966784  ;;  %p2751_p9 = scmp.eq.s32.totalorder %s2062_s29, 0 }
  0xa3   : > { %1898 = dma.done.wait (%p2751_p9), [#allocation6], 528   ;;  %p2752_p6 = pmov %p2751_p9 }
  0xa5   : > { %1900 = vsyncadd (%p2752_p6), [#allocation6], 4294966768  ;;  %p2753_p0 = pmov %p2752_p6 }
  0xa7   : > { %1902 = dma.done.wait (%p2753_p0), [#allocation9], 16   ;;  %p2754_p10 = pmov %p2753_p0 }
  0xa8   : > { %vm362_vm0 = vcmask 261120   ;;  %v358_v0 = vld [vmem:[#allocation5] sm:$0xff]  ;;  %v359_v1 = vld [vmem:[#allocation5 + $0x8] sm:$0xff]  ;;  %v360_v2 = vld [vmem:[#allocation5 + $0x10] sm:$0xff]  ;;  %s1951_s2 = smov 8   ;;  %s1952_s7 = smov 24  }
  0xa9   : > { %1904 = vsyncadd (%p2754_p10), [#allocation9], 4294967280  ;;  %v1497_v3 = vpack.c.bf16 %v359_v1, %v358_v0  ;;  %v361_v4 = vld [vmem:[#allocation5 + $0x18] sm:$0xff]  ;;  %v354_v5 = vld [vmem:[%s2261_s12] sm:$0xff]  ;;  %s1953_s9 = smov 32   ;;  %s1954_s6 = smov 48  }
  0xaa   : > { %v1501_v6 = vpack.c.bf16 %v361_v4, %v360_v2  ;;  %1491 = vmatprep.mubr.msk.f32.mxu0 %vm362_vm0, %v354_v5  ;;  %v356_v7 = vld [vmem:[%s2261_s12 + $0x10] sm:$0xff]  ;;  %v2278_v8 = vld [vmem:[#allocation8] ss:$0 sm:$0xff]  ;;  %v2280_v9 = vld [vmem:[#allocation7] ss:$0 sm:$0xff]  ;;  %s1955_s20 = smov 112  }
  0xab   : > { %1498 = vmatprep.subr.bf16.mxu0 %v1497_v3  ;;  %1505 = vmatprep.subr.bf16.mxu1 %v1497_v3  ;;  %v355_v10 = vld [vmem:[%s2261_s12 + $0x8] sm:$0xff]  ;;  %v357_v11 = vld [vmem:[%s2261_s12 + $0x18] sm:$0xff]  ;;  %s1956_s8 = smov 88   ;;  %s1957_s1 = smov 104   ;;  %vm466_vm1 = vcmask 64512  }
  0xac   : > { %1500 = vmatpush3.bf16.msra.mxu0 %v1497_v3  ;;  %1507 = vmatpush3.bf16.msra.mxu1 %v1497_v3  ;;  %s1958_s15 = smov 120   ;;  %s1959_s13 = smov 80  }
  0xad   : > { %1502 = vmatprep.subr.bf16.mxu0 %v1501_v6  ;;  %1506 = vmatprep.subr.bf16.mxu1 %v1501_v6  ;;  %s1960_s17 = smov 96   ;;  %s1961_s11 = smov 72  }
  0xae   : > { %1494 = vmatprep.mubr.msk.f32.mxu1 %vm362_vm0, %v356_v7  ;;  %555 = vrot.lane.b32.xlu0 %v2278_v8, %s1951_s2  ;;  %s1962_s21 = smov 56   ;;  %s2350_s14 = sshll.u32 %s2257_s19, 7 }
  0xaf   : > { %646 = vrot.lane.b32.xlu1 %v2280_v9, %s1952_s7  ;;  %s2355_s5 = scalar_lea.vmem [#allocation13], %s2350_s14  ;;  %s2396_s16 = scalar_lea.vmem [#allocation10], %s2350_s14 }
  0xb0   : > { %1504 = vmatpush3.bf16.msra.mxu0 %v1501_v6  ;;  %1508 = vmatpush3.bf16.msra.mxu1 %v1501_v6  ;;  %s1963_s3 = smov 64   ;;  %s1964_s12 = smov 40  }
  0xb1   : > { %s1070_s2 = sand.u32 1, %s2062_s29   ;;  %s2543_s7 = scalar_lea.vmem [#allocation11], %s2350_s14 }
  0xb2   : > { %693 = vrot.lane.b32.xlu0 %v2278_v8, %s1953_s9  ;;  %s1066_s9 = scalar_lea.sflag [#allocation4], %s2257_s19 }
  0xb3   : > { %1492 = vmatmul.mubr.msk.f32.vlgmr.msra.gmra.mrb[0].mxu0 %vm362_vm0, %v355_v10  ;;  %1495 = vmatmul.mubr.msk.f32.vlgmr.msra.gmra.mrb[0].mxu1 %vm362_vm0, %v357_v11 }
  0xb4   : > { %799 = vrot.lane.b32.xlu1 %v2280_v9, %s1954_s6 }
 0x120   : > { %v2338_v22 = vpop.permute.xlu0 %555 }
 0x121   : > { %v2340_v23 = vpop.permute.xlu1 %646 }
 0x124   : > { %v2344_v24 = vpop.permute.xlu0 %693 }
 0x126   : > { %v2347_v25 = vpop.permute.xlu1 %799 }
 0x186   : > { %v2292_v12 = vpop.f32.mrb[0].mxu0  ;;  %v2294_v13 = vpop.f32.mrb[0].mxu1 }
 0x187   : > { %592 = vrot.lane.b32.xlu0 %v2292_v12, %s1955_s20  ;;  %v2297_v14 = vpop.f32.mrb[1].mxu0  ;;  %v2299_v15 = vpop.f32.mrb[1].mxu1  ;;  %v463_v16 = vmul.f32 %v2292_v12, %v2292_v12  ;;  %v465_v17 = vmul.f32 %v2294_v13, %v2294_v13 }
 0x188   : > { %590 = vrot.lane.b32.xlu1 %v2297_v14, %s1955_s20  ;;  %v464_v19 = vmul.f32 %v2299_v15, %v2299_v15  ;;  %v462_v21 = vmul.f32 %v2297_v14, %v2297_v14 }
 0x189   : > { %v476_v18 = vsel %vm466_vm1, %v465_v17, 0.0  ;;  %v470_v20 = vsel %vm466_vm1, %v463_v16, 0.0 }
 0x18a   : > { %v467_v37 = vsel %vm466_vm1, %v462_v21, 0.0  ;;  %v473_v50 = vsel %vm466_vm1, %v464_v19, 0.0 }
 0x18b   : > { %596 = vrot.lane.b32.xlu0 %v2294_v13, %s1955_s20 }
 0x18c   : > { %594 = vrot.lane.b32.xlu1 %v2299_v15, %s1955_s20 }
 0x18f   : > { %744 = vrot.lane.b32.xlu0 %v2292_v12, %s1956_s8 }
 0x190   : > { %742 = vrot.lane.b32.xlu1 %v2297_v14, %s1956_s8 }
 0x193   : > { %748 = vrot.lane.b32.xlu0 %v2294_v13, %s1956_s8 }
 0x194   : > { %746 = vrot.lane.b32.xlu1 %v2299_v15, %s1956_s8 }
 0x197   : > { %608 = vrot.lane.b32.xlu0 %v463_v16, %s1957_s1 }
 0x198   : > { %512 = vrot.lane.b32.xlu1 %v463_v16, %s1958_s15 }
 0x19b   : > { %612 = vrot.lane.b32.xlu0 %v465_v17, %s1957_s1 }
 0x19c   : > { %516 = vrot.lane.b32.xlu1 %v465_v17, %s1958_s15 }
 0x19f   : > { %761 = vrot.lane.b32.xlu0 %v463_v16, %s1959_s13 }
 0x1a0   : > { %655 = vrot.lane.b32.xlu1 %v463_v16, %s1960_s17 }
 0x1a3   : > { %765 = vrot.lane.b32.xlu0 %v465_v17, %s1959_s13 }
 0x1a4   : > { %659 = vrot.lane.b32.xlu1 %v465_v17, %s1960_s17 }
 0x1a7   : > { %808 = vrot.lane.b32.xlu0 %v463_v16, %s1961_s11 }
 0x1ab   : > { %812 = vrot.lane.b32.xlu0 %v465_v17, %s1961_s11 }
 0x1af   : > { %914 = vrot.lane.b32.xlu0 %v463_v16, %s1962_s21 }
 0x1b3   : > { %918 = vrot.lane.b32.xlu0 %v465_v17, %s1962_s21 }
 0x1b7   : > { %961 = vrot.lane.b32.xlu0 %v463_v16, %s1954_s6 }
 0x1bb   : > { %965 = vrot.lane.b32.xlu0 %v465_v17, %s1954_s6 }
 0x1c8   : > { %477 = vadd.xlane.f32.xlu1 %v476_v18 }
 0x1d9   : > { %514 = vrot.lane.b32.xlu1 %v464_v19, %s1958_s15 }
 0x1da   : > { %471 = vadd.xlane.f32.xlu0 %v470_v20 }
 0x1dd   : > { %606 = vrot.lane.b32.xlu1 %v462_v21, %s1957_s1 }
 0x1e1   : > { %610 = vrot.lane.b32.xlu1 %v464_v19, %s1957_s1 }
 0x1e5   : > { %657 = vrot.lane.b32.xlu1 %v464_v19, %s1960_s17 }
 0x1e9   : > { %759 = vrot.lane.b32.xlu1 %v462_v21, %s1959_s13 }
 0x1ed   : > { %763 = vrot.lane.b32.xlu1 %v464_v19, %s1959_s13 }
 0x1f0   : > { %510 = vrot.lane.b32.xlu0 %v462_v21, %s1958_s15 }
 0x1f1   : > { %806 = vrot.lane.b32.xlu1 %v462_v21, %s1961_s11 }
 0x1f4   : > { %653 = vrot.lane.b32.xlu0 %v462_v21, %s1960_s17 }
 0x1f5   : > { %810 = vrot.lane.b32.xlu1 %v464_v19, %s1961_s11 }
 0x1f9   : > { %v593_v26 = vpop.permute.xlu0 %592  ;;  %912 = vrot.lane.b32.xlu1 %v462_v21, %s1962_s21 }
 0x1fa   : > { %603 = vst.msk [vmem:[%s2355_s5 + $0x8] sm:$0xff] %vm466_vm1, %v593_v26  ;;  %v591_v27 = vpop.permute.xlu1 %590 }
 0x1fb   : > { %602 = vst.msk [vmem:[%s2355_s5] sm:$0xff] %vm466_vm1, %v591_v27 }
 0x1fd   : > { %v597_v28 = vpop.permute.xlu0 %596  ;;  %916 = vrot.lane.b32.xlu1 %v464_v19, %s1962_s21 }
 0x1fe   : > { %605 = vst.msk [vmem:[%s2355_s5 + $0x18] sm:$0xff] %vm466_vm1, %v597_v28  ;;  %v595_v29 = vpop.permute.xlu1 %594 }
 0x1ff   : > { %604 = vst.msk [vmem:[%s2355_s5 + $0x10] sm:$0xff] %vm466_vm1, %v595_v29 }
 0x201   : > { %v745_v30 = vpop.permute.xlu0 %744  ;;  %959 = vrot.lane.b32.xlu1 %v462_v21, %s1954_s6 }
 0x202   : > { %1434 = vst.msk [vmem:[%s2355_s5 + $0x28] sm:$0xff] %vm466_vm1, %v745_v30  ;;  %v743_v31 = vpop.permute.xlu1 %742 }
 0x203   : > { %1433 = vst.msk [vmem:[%s2355_s5 + $0x20] sm:$0xff] %vm466_vm1, %v743_v31 }
 0x205   : > { %v749_v32 = vpop.permute.xlu0 %748  ;;  %963 = vrot.lane.b32.xlu1 %v464_v19, %s1954_s6 }
 0x206   : > { %1436 = vst.msk [vmem:[%s2355_s5 + $0x38] sm:$0xff] %vm466_vm1, %v749_v32  ;;  %v747_v33 = vpop.permute.xlu1 %746 }
 0x207   : > { %1435 = vst.msk [vmem:[%s2355_s5 + $0x30] sm:$0xff] %vm466_vm1, %v747_v33 }
 0x209   : > { %v609_v34 = vpop.permute.xlu0 %608 }
 0x20a   : > { %v513_v35 = vpop.permute.xlu1 %512  ;;  %v621_v42 = vsel %vm466_vm1, %v609_v34, 0.0 }
 0x20b   : > { %v525_v52 = vsel %vm466_vm1, %v513_v35, 0.0 }
 0x20d   : > { %v613_v36 = vpop.permute.xlu0 %612 }
 0x20e   : > { %v517_v38 = vpop.permute.xlu1 %516  ;;  %v627_v44 = vsel %vm466_vm1, %v613_v36, 0.0 }
 0x20f   : > { %v531_v40 = vsel %vm466_vm1, %v517_v38, 0.0 }
 0x211   : > { %v762_v39 = vpop.permute.xlu0 %761 }
 0x212   : > { %v656_v41 = vpop.permute.xlu1 %655  ;;  %v774_v48 = vsel %vm466_vm1, %v762_v39, 0.0 }
 0x213   : > { %468 = vadd.xlane.f32.xlu0 %v467_v37  ;;  %v668_v55 = vsel %vm466_vm1, %v656_v41, 0.0 }
 0x215   : > { %v766_v43 = vpop.permute.xlu0 %765 }
 0x216   : > { %v660_v45 = vpop.permute.xlu1 %659  ;;  %v780_v51 = vsel %vm466_vm1, %v766_v43, 0.0 }
 0x217   : > { %532 = vadd.xlane.f32.xlu0 %v531_v40  ;;  %v674_v47 = vsel %vm466_vm1, %v660_v45, 0.0 }
 0x219   : > { %v809_v46 = vpop.permute.xlu0 %808 }
 0x21a   : > { %v821_v54 = vsel %vm466_vm1, %v809_v46, 0.0 }
 0x21b   : > { %622 = vadd.xlane.f32.xlu0 %v621_v42 }
 0x21d   : > { %v813_v49 = vpop.permute.xlu0 %812 }
 0x21e   : > { %v827_v56 = vsel %vm466_vm1, %v813_v49, 0.0 }
 0x21f   : > { %628 = vadd.xlane.f32.xlu0 %v627_v44 }
 0x221   : > { %v915_v53 = vpop.permute.xlu0 %914 }
 0x222   : > { %v927_v58 = vsel %vm466_vm1, %v915_v53, 0.0 }
 0x223   : > { %675 = vadd.xlane.f32.xlu0 %v674_v47 }
 0x225   : > { %v919_v57 = vpop.permute.xlu0 %918 }
 0x226   : > { %v933_v60 = vsel %vm466_vm1, %v919_v57, 0.0 }
 0x227   : > { %775 = vadd.xlane.f32.xlu0 %v774_v48 }
 0x229   : > { %474 = vadd.xlane.f32.xlu1 %v473_v50  ;;  %v962_v59 = vpop.permute.xlu0 %961 }
 0x22a   : > { %v974_v61 = vsel %vm466_vm1, %v962_v59, 0.0 }
 0x22b   : > { %781 = vadd.xlane.f32.xlu0 %v780_v51 }
 0x22d   : > { %526 = vadd.xlane.f32.xlu1 %v525_v52  ;;  %v966_v62 = vpop.permute.xlu0 %965 }
 0x22e   : > { %v980_v63 = vsel %vm466_vm1, %v966_v62, 0.0 }
 0x22f   : > { %822 = vadd.xlane.f32.xlu0 %v821_v54 }
 0x231   : > { %669 = vadd.xlane.f32.xlu1 %v668_v55 }
 0x233   : > { %828 = vadd.xlane.f32.xlu0 %v827_v56 }
 0x237   : > { %928 = vadd.xlane.f32.xlu0 %v927_v58 }
 0x23b   : > { %934 = vadd.xlane.f32.xlu0 %v933_v60 }
 0x23f   : > { %975 = vadd.xlane.f32.xlu0 %v974_v61 }
 0x243   : > { %981 = vadd.xlane.f32.xlu0 %v980_v63 }
 0x255   : > { %v478_v0 = vpop.xlane.xlu1 %477 }
 0x256   : > { %v483_v1 = vmul.f32 0.125, %v478_v0 }
 0x258   : > { %v487_v2 = vadd.f32 1e-06, %v483_v1 }
 0x259   : > { %v515_v3 = vpop.permute.xlu1 %514 }
 0x25a   : > { %1683 = vrsqrt.f32 %v487_v2  ;;  %v528_v29 = vsel %vm466_vm1, %v515_v3, 0.0 }
 0x25d   : > { %v607_v4 = vpop.permute.xlu1 %606 }
 0x25e   : > { %v618_v5 = vsel %vm466_vm1, %v607_v4, 0.0 }
 0x25f   : > { %619 = vadd.xlane.f32.xlu1 %v618_v5 }
 0x261   : > { %v611_v6 = vpop.permute.xlu1 %610 }
 0x262   : > { %v624_v31 = vsel %vm466_vm1, %v611_v6, 0.0 }
 0x264   : > { %v1684_v7 = vpop.eup %1683 }
 0x265   : > { %v495_v10 = vmul.f32 %v1684_v7, %v2294_v13  ;;  %v658_v11 = vpop.permute.xlu1 %657 }
 0x266   : > { %v671_v40 = vsel %vm466_vm1, %v658_v11, 0.0 }
 0x267   : > { %v505_v16 = vmul.f32 %v2280_v9, %v495_v10  ;;  %v472_v17 = vpop.xlane.xlu0 %471 }
 0x268   : > { %v481_v18 = vmul.f32 0.125, %v472_v17 }
 0x269   : > { %565 = vst.msk [vmem:[%s2396_s16 + $0x18] sm:$0xff] %vm466_vm1, %v505_v16  ;;  %v760_v19 = vpop.permute.xlu1 %759 }
 0x26a   : > { %v485_v20 = vadd.f32 1e-06, %v481_v18  ;;  %v771_v21 = vsel %vm466_vm1, %v760_v19, 0.0 }
 0x26b   : > { %772 = vadd.xlane.f32.xlu1 %v771_v21  ;;  %v511_v26 = vpop.permute.xlu0 %510 }
 0x26c   : > { %1685 = vrsqrt.f32 %v485_v20  ;;  %v522_v27 = vsel %vm466_vm1, %v511_v26, 0.0 }
 0x26d   : > { %v764_v28 = vpop.permute.xlu1 %763  ;;  %523 = vadd.xlane.f32.xlu0 %v522_v27 }
 0x26e   : > { %v777_v41 = vsel %vm466_vm1, %v764_v28, 0.0 }
 0x26f   : > { %v654_v32 = vpop.permute.xlu0 %653 }
 0x270   : > { %v665_v36 = vsel %vm466_vm1, %v654_v32, 0.0 }
 0x271   : > { %v807_v30 = vpop.permute.xlu1 %806  ;;  %529 = vadd.xlane.f32.xlu0 %v528_v29 }
 0x272   : > { %v818_v42 = vsel %vm466_vm1, %v807_v30, 0.0 }
 0x275   : > { %v811_v33 = vpop.permute.xlu1 %810  ;;  %625 = vadd.xlane.f32.xlu0 %v624_v31 }
 0x276   : > { %v1686_v34 = vpop.eup %1685  ;;  %v824_v44 = vsel %vm466_vm1, %v811_v33, 0.0 }
 0x277   : > { %v493_v35 = vmul.f32 %v1686_v34, %v2292_v12 }
 0x279   : > { %v503_v37 = vmul.f32 %v2280_v9, %v493_v35  ;;  %v913_v38 = vpop.permute.xlu1 %912  ;;  %666 = vadd.xlane.f32.xlu0 %v665_v36 }
 0x27a   : > { %v924_v39 = vsel %vm466_vm1, %v913_v38, 0.0 }
 0x27b   : > { %563 = vst.msk [vmem:[%s2396_s16 + $0x8] sm:$0xff] %vm466_vm1, %v503_v37  ;;  %925 = vadd.xlane.f32.xlu1 %v924_v39 }
 0x27d   : > { %672 = vadd.xlane.f32.xlu0 %v671_v40  ;;  %v917_v43 = vpop.permute.xlu1 %916 }
 0x27e   : > { %v930_v46 = vsel %vm466_vm1, %v917_v43, 0.0 }
 0x281   : > { %778 = vadd.xlane.f32.xlu0 %v777_v41  ;;  %v960_v45 = vpop.permute.xlu1 %959 }
 0x282   : > { %v971_v47 = vsel %vm466_vm1, %v960_v45, 0.0 }
 0x285   : > { %819 = vadd.xlane.f32.xlu0 %v818_v42  ;;  %v964_v48 = vpop.permute.xlu1 %963 }
 0x286   : > { %v977_v49 = vsel %vm466_vm1, %v964_v48, 0.0 }
 0x289   : > { %825 = vadd.xlane.f32.xlu0 %v824_v44 }
 0x28c   : > { %952 = vrot.lane.b32.xlu1 %v2280_v9, %s1961_s11 }
 0x28d   : > { %931 = vadd.xlane.f32.xlu0 %v930_v46 }
 0x290   : > { %895 = vrot.lane.b32.xlu1 %v2297_v14, %s1963_s3 }
 0x291   : > { %972 = vadd.xlane.f32.xlu0 %v971_v47 }
 0x294   : > { %899 = vrot.lane.b32.xlu1 %v2299_v15, %s1963_s3 }
 0x295   : > { %978 = vadd.xlane.f32.xlu0 %v977_v49 }
 0x298   : > { %1048 = vrot.lane.b32.xlu1 %v2297_v14, %s1964_s12 }
 0x2a0   : > { %v469_v50 = vpop.xlane.xlu0 %468 }
 0x2a1   : > { %v480_v51 = vmul.f32 0.125, %v469_v50 }
 0x2a3   : > { %v484_v52 = vadd.f32 1e-06, %v480_v51 }
 0x2a4   : > { %v533_v53 = vpop.xlane.xlu0 %532 }
 0x2a5   : > { %1687 = vrsqrt.f32 %v484_v52  ;;  %v537_v54 = vmul.f32 0.125, %v533_v53 }
 0x2a7   : > { %v541_v55 = vadd.f32 1e-06, %v537_v54 }
 0x2a8   : > { %v623_v56 = vpop.xlane.xlu0 %622 }
 0x2a9   : > { %1689 = vrsqrt.f32 %v541_v55  ;;  %v631_v1 = vmul.f32 0.125, %v623_v56 }
 0x2ab   : > { %846 = vrot.lane.b32.xlu0 %v2278_v8, %s1962_s21  ;;  %v635_v5 = vadd.f32 1e-06, %v631_v1 }
 0x2ac   : > { %v629_v57 = vpop.xlane.xlu0 %628 }
 0x2ad   : > { %v633_v58 = vmul.f32 0.125, %v629_v57 }
 0x2af   : > { %v1688_v59 = vpop.eup %1687  ;;  %v637_v60 = vadd.f32 1e-06, %v633_v58  ;;  %999 = vrot.lane.b32.xlu0 %v2278_v8, %s1959_s13 }
 0x2b0   : > { %v492_v61 = vmul.f32 %v1688_v59, %v2297_v14  ;;  %v676_v63 = vpop.xlane.xlu0 %675 }
 0x2b1   : > { %1691 = vrsqrt.f32 %v637_v60  ;;  %v680_v6 = vmul.f32 0.125, %v676_v63 }
 0x2b2   : > { %v502_v62 = vmul.f32 %v2280_v9, %v492_v61 }
 0x2b3   : > { %897 = vrot.lane.b32.xlu0 %v2292_v12, %s1963_s3  ;;  %v1690_v0 = vpop.eup %1689  ;;  %v684_v20 = vadd.f32 1e-06, %v680_v6 }
 0x2b4   : > { %562 = vst.msk [vmem:[%s2396_s16] sm:$0xff] %vm466_vm1, %v502_v62  ;;  %v549_v8 = vmul.f32 %v1690_v0, %v2294_v13  ;;  %v776_v7 = vpop.xlane.xlu0 %775 }
 0x2b5   : > { %v784_v26 = vmul.f32 0.125, %v776_v7 }
 0x2b6   : > { %v475_v2 = vpop.xlane.xlu1 %474  ;;  %v561_v18 = vmul.f32 %v2338_v22, %v549_v8 }
 0x2b7   : > { %v482_v3 = vmul.f32 0.125, %v475_v2  ;;  %901 = vrot.lane.b32.xlu0 %v2294_v13, %s1963_s3  ;;  %v788_v31 = vadd.f32 1e-06, %v784_v26 }
 0x2b8   : > { %v782_v28 = vpop.xlane.xlu0 %781 }
 0x2b9   : > { %v486_v4 = vadd.f32 1e-06, %v482_v3  ;;  %v786_v32 = vmul.f32 0.125, %v782_v28 }
 0x2ba   : > { %v527_v10 = vpop.xlane.xlu1 %526 }
 0x2bb   : > { %v1692_v11 = vpop.eup %1691  ;;  %1693 = vrsqrt.f32 %v486_v4  ;;  %v535_v16 = vmul.f32 0.125, %v527_v10  ;;  %1050 = vrot.lane.b32.xlu0 %v2292_v12, %s1964_s12  ;;  %v790_v35 = vadd.f32 1e-06, %v786_v32 }
 0x2bc   : > { %v645_v19 = vmul.f32 %v1692_v11, %v2294_v13  ;;  %1695 = vrsqrt.f32 %v635_v5  ;;  %v823_v51 = vpop.xlane.xlu0 %822 }
 0x2bd   : > { %v539_v17 = vadd.f32 1e-06, %v535_v16  ;;  %v831_v32 = vmul.f32 0.125, %v823_v51 }
 0x2be   : > { %v670_v21 = vpop.xlane.xlu1 %669  ;;  %v652_v30 = vmul.f32 %v2340_v23, %v645_v19 }
 0x2bf   : > { %1697 = vrsqrt.f32 %v539_v17  ;;  %v678_v27 = vmul.f32 0.125, %v670_v21  ;;  %576 = vrot.lane.b32.xlu0 %v561_v18, %s1958_s15 }
 0x2c0   : > { %1699 = vrsqrt.f32 %v684_v20  ;;  %v829_v55 = vpop.xlane.xlu0 %828 }
 0x2c1   : > { %v682_v29 = vadd.f32 1e-06, %v678_v27 }
 0x2c3   : > { %1701 = vrsqrt.f32 %v682_v29  ;;  %710 = vrot.lane.b32.xlu0 %v652_v30, %s1957_s1 }
 0x2c4   : > { %1703 = vrsqrt.f32 %v788_v31  ;;  %v2467_v56 = vpop.xlane.xlu0 %928 }
 0x2c5   : > { %v1694_v33 = vpop.eup %1693  ;;  %1705 = vrsqrt.f32 %v790_v35  ;;  %v937_v51 = vmul.f32 0.125, %v2467_v56 }
 0x2c6   : > { %v494_v34 = vmul.f32 %v1694_v33, %v2299_v15  ;;  %v1696_v36 = vpop.eup %1695 }
 0x2c7   : > { %v643_v42 = vmul.f32 %v1696_v36, %v2292_v12 }
 0x2c8   : > { %v504_v37 = vmul.f32 %v2280_v9, %v494_v34  ;;  %v2469_v57 = vpop.xlane.xlu0 %934 }
 0x2c9   : > { %v1698_v38 = vpop.eup %1697  ;;  %v650_v45 = vmul.f32 %v2340_v23, %v643_v42 }
 0x2ca   : > { %564 = vst.msk [vmem:[%s2396_s16 + $0x10] sm:$0xff] %vm466_vm1, %v504_v37  ;;  %v547_v39 = vmul.f32 %v1698_v38, %v2292_v12  ;;  %v1700_v40 = vpop.eup %1699 }
 0x2cb   : > { %v692_v46 = vmul.f32 %v1700_v40, %v2294_v13 }
 0x2cc   : > { %v559_v41 = vmul.f32 %v2338_v22, %v547_v39  ;;  %v2471_v58 = vpop.xlane.xlu0 %975 }
 0x2cd   : > { %v1702_v43 = vpop.eup %1701  ;;  %v699_v48 = vmul.f32 %v2344_v24, %v692_v46 }
 0x2ce   : > { %572 = vrot.lane.b32.xlu1 %v559_v41, %s1958_s15  ;;  %v690_v44 = vmul.f32 %v1702_v43, %v2292_v12  ;;  %v1704_v47 = vpop.eup %1703  ;;  %v835_v41 = vadd.f32 1e-06, %v831_v32 }
 0x2cf   : > { %v796_v49 = vmul.f32 %v1704_v47, %v2292_v12  ;;  %v1706_v50 = vpop.eup %1705 }
 0x2d0   : > { %v697_v9 = vmul.f32 %v2344_v24, %v690_v44  ;;  %v798_v53 = vmul.f32 %v1706_v50, %v2294_v13  ;;  %v2473_v59 = vpop.xlane.xlu0 %981  ;;  %v833_v44 = vmul.f32 0.125, %v829_v55 }
 0x2d1   : > { %v803_v52 = vmul.f32 %v2347_v25, %v796_v49 }
 0x2d2   : > { %706 = vrot.lane.b32.xlu1 %v650_v45, %s1957_s1  ;;  %727 = vrot.lane.b32.xlu0 %v697_v9, %s1960_s17  ;;  %v805_v54 = vmul.f32 %v2347_v25, %v798_v53  ;;  %v837_v50 = vadd.f32 1e-06, %v833_v44 }
 0x2d6   : > { %731 = vrot.lane.b32.xlu0 %v699_v48, %s1960_s17 }
 0x2da   : > { %859 = vrot.lane.b32.xlu0 %v803_v52, %s1959_s13 }
 0x2de   : > { %863 = vrot.lane.b32.xlu0 %v805_v54, %s1959_s13 }
 0x2ec   : > { %v620_v60 = vpop.xlane.xlu1 %619 }
 0x2ed   : > { %v630_v61 = vmul.f32 0.125, %v620_v60 }
 0x2ef   : > { %v634_v1 = vadd.f32 1e-06, %v630_v61  ;;  %v939_v61 = vmul.f32 0.125, %v2469_v57 }
 0x2f8   : > { %v773_v6 = vpop.xlane.xlu1 %772 }
 0x2f9   : > { %v783_v21 = vmul.f32 0.125, %v773_v6  ;;  %v984_v6 = vmul.f32 0.125, %v2471_v58 }
 0x2fa   : > { %v524_v62 = vpop.xlane.xlu0 %523 }
 0x2fb   : > { %v534_v63 = vmul.f32 0.125, %v524_v62  ;;  %v787_v35 = vadd.f32 1e-06, %v783_v21 }
 0x2fd   : > { %v538_v0 = vadd.f32 1e-06, %v534_v63 }
 0x2fe   : > { %v530_v2 = vpop.xlane.xlu0 %529 }
 0x2ff   : > { %1707 = vrsqrt.f32 %v538_v0  ;;  %v536_v3 = vmul.f32 0.125, %v530_v2 }
 0x300   : > { %1709 = vrsqrt.f32 %v634_v1  ;;  %v941_v1 = vadd.f32 1e-06, %v937_v51 }
 0x301   : > { %v540_v4 = vadd.f32 1e-06, %v536_v3  ;;  %v943_v3 = vadd.f32 1e-06, %v939_v61 }
 0x302   : > { %v626_v8 = vpop.xlane.xlu0 %625 }
 0x303   : > { %1711 = vrsqrt.f32 %v540_v4  ;;  %v632_v5 = vmul.f32 0.125, %v626_v8 }
 0x305   : > { %v636_v7 = vadd.f32 1e-06, %v632_v5 }
 0x306   : > { %v667_v10 = vpop.xlane.xlu0 %666 }
 0x307   : > { %1713 = vrsqrt.f32 %v636_v7  ;;  %v677_v11 = vmul.f32 0.125, %v667_v10 }
 0x308   : > { %v926_v16 = vpop.xlane.xlu1 %925 }
 0x309   : > { %v1708_v17 = vpop.eup %1707  ;;  %v681_v18 = vadd.f32 1e-06, %v677_v11  ;;  %v936_v63 = vmul.f32 0.125, %v926_v16 }
 0x30a   : > { %v673_v19 = vpop.xlane.xlu0 %672  ;;  %v546_v20 = vmul.f32 %v1708_v17, %v2297_v14  ;;  %v1710_v27 = vpop.eup %1709 }
 0x30b   : > { %1715 = vrsqrt.f32 %v681_v18  ;;  %v679_v26 = vmul.f32 0.125, %v673_v19  ;;  %v642_v39 = vmul.f32 %v1710_v27, %v2297_v14  ;;  %v940_v8 = vadd.f32 1e-06, %v936_v63 }
 0x30c   : > { %v2476_v28 = vpop.permute.xlu1 %952  ;;  %v558_v29 = vmul.f32 %v2338_v22, %v546_v20  ;;  %v988_v19 = vadd.f32 1e-06, %v984_v6  ;;  %v986_v20 = vmul.f32 0.125, %v2473_v59 }
 0x30d   : > { %v1712_v30 = vpop.eup %1711  ;;  %v683_v31 = vadd.f32 1e-06, %v679_v26  ;;  %v649_v9 = vmul.f32 %v2340_v23, %v642_v39 }
 0x30e   : > { %570 = vrot.lane.b32.xlu1 %v558_v29, %s1958_s15  ;;  %v779_v33 = vpop.xlane.xlu0 %778  ;;  %v548_v34 = vmul.f32 %v1712_v30, %v2299_v15 }
 0x30f   : > { %1717 = vrsqrt.f32 %v683_v31  ;;  %v785_v36 = vmul.f32 0.125, %v779_v33  ;;  %v990_v33 = vadd.f32 1e-06, %v986_v20 }
 0x310   : > { %v896_v37 = vpop.permute.xlu1 %895  ;;  %v560_v38 = vmul.f32 %v2338_v22, %v548_v34  ;;  %1719 = vrsqrt.f32 %v787_v35 }
 0x311   : > { %v1714_v40 = vpop.eup %1713  ;;  %1445 = vst.msk [vmem:[%s2355_s5 + $0x40] sm:$0xff] %vm466_vm1, %v896_v37  ;;  %v789_v43 = vadd.f32 1e-06, %v785_v36  ;;  %1721 = vrsqrt.f32 %v835_v41 }
 0x312   : > { %574 = vrot.lane.b32.xlu1 %v560_v38, %s1958_s15  ;;  %v820_v42 = vpop.xlane.xlu0 %819  ;;  %v644_v46 = vmul.f32 %v1714_v40, %v2299_v15 }
 0x313   : > { %v830_v22 = vmul.f32 0.125, %v820_v42  ;;  %1723 = vrsqrt.f32 %v789_v43 }
 0x314   : > { %v900_v45 = vpop.permute.xlu1 %899  ;;  %v651_v53 = vmul.f32 %v2340_v23, %v644_v46  ;;  %1725 = vrsqrt.f32 %v837_v50 }
 0x315   : > { %v1716_v47 = vpop.eup %1715  ;;  %1447 = vst.msk [vmem:[%s2355_s5 + $0x50] sm:$0xff] %vm466_vm1, %v900_v45  ;;  %v834_v60 = vadd.f32 1e-06, %v830_v22 }
 0x316   : > { %704 = vrot.lane.b32.xlu1 %v649_v9, %s1957_s1  ;;  %v826_v48 = vpop.xlane.xlu0 %825  ;;  %v689_v54 = vmul.f32 %v1716_v47, %v2297_v14 }
 0x317   : > { %v832_v49 = vmul.f32 0.125, %v826_v48  ;;  %1727 = vrsqrt.f32 %v834_v60 }
 0x318   : > { %v1049_v52 = vpop.permute.xlu1 %1048  ;;  %v696_v56 = vmul.f32 %v2344_v24, %v689_v54 }
 0x319   : > { %v1718_v55 = vpop.eup %1717  ;;  %1457 = vst.msk [vmem:[%s2355_s5 + $0x60] sm:$0xff] %vm466_vm1, %v1049_v52  ;;  %v836_v0 = vadd.f32 1e-06, %v832_v49 }
 0x31a   : > { %708 = vrot.lane.b32.xlu1 %v651_v53, %s1957_s1  ;;  %v932_v62 = vpop.xlane.xlu0 %931  ;;  %v691_v2 = vmul.f32 %v1718_v55, %v2299_v15  ;;  %v1720_v23 = vpop.eup %1719 }
 0x31b   : > { %1729 = vrsqrt.f32 %v836_v0  ;;  %v938_v57 = vmul.f32 0.125, %v932_v62  ;;  %v1722_v5 = vpop.eup %1721  ;;  %v795_v10 = vmul.f32 %v1720_v23, %v2297_v14 }
 0x31c   : > { %1731 = vrsqrt.f32 %v941_v1  ;;  %v698_v7 = vmul.f32 %v2344_v24, %v691_v2  ;;  %v843_v58 = vmul.f32 %v1722_v5, %v2292_v12 }
 0x31d   : > { %v1724_v11 = vpop.eup %1723  ;;  %1733 = vrsqrt.f32 %v943_v3  ;;  %v942_v17 = vadd.f32 1e-06, %v938_v57  ;;  %v802_v21 = vmul.f32 %v2347_v25, %v795_v10 }
 0x31e   : > { %725 = vrot.lane.b32.xlu1 %v696_v56, %s1960_s17  ;;  %v973_v4 = vpop.xlane.xlu0 %972  ;;  %1735 = vrsqrt.f32 %v940_v8  ;;  %v797_v26 = vmul.f32 %v1724_v11, %v2299_v15  ;;  %v1726_v24 = vpop.eup %1725 }
 0x31f   : > { %v983_v18 = vmul.f32 0.125, %v973_v4  ;;  %1737 = vrsqrt.f32 %v942_v17  ;;  %v845_v35 = vmul.f32 %v1726_v24, %v2294_v13 }
 0x320   : > { %1739 = vrsqrt.f32 %v988_v19  ;;  %v804_v34 = vmul.f32 %v2347_v25, %v797_v26 }
 0x321   : > { %v1728_v29 = vpop.eup %1727  ;;  %v987_v30 = vadd.f32 1e-06, %v983_v18 }
 0x322   : > { %729 = vrot.lane.b32.xlu1 %v698_v7, %s1960_s17  ;;  %v979_v16 = vpop.xlane.xlu0 %978  ;;  %v842_v38 = vmul.f32 %v1728_v29, %v2297_v14 }
 0x323   : > { %v985_v31 = vmul.f32 0.125, %v979_v16  ;;  %1741 = vrsqrt.f32 %v987_v30 }
 0x324   : > { %1743 = vrsqrt.f32 %v990_v33 }
 0x325   : > { %v1730_v59 = vpop.eup %1729  ;;  %v989_v39 = vadd.f32 1e-06, %v985_v31 }
 0x326   : > { %857 = vrot.lane.b32.xlu1 %v802_v21, %s1959_s13  ;;  %v847_v27 = vpop.permute.xlu0 %846  ;;  %v1732_v36 = vpop.eup %1731  ;;  %v844_v25 = vmul.f32 %v1730_v59, %v2299_v15 }
 0x327   : > { %v850_v32 = vmul.f32 %v847_v27, %v843_v58  ;;  %v852_v40 = vmul.f32 %v847_v27, %v845_v35  ;;  %v1734_v41 = vpop.eup %1733  ;;  %v849_v42 = vmul.f32 %v847_v27, %v842_v38  ;;  %v949_v44 = vmul.f32 %v1732_v36, %v2292_v12 }
 0x328   : > { %v1736_v43 = vpop.eup %1735  ;;  %1745 = vrsqrt.f32 %v989_v39  ;;  %v851_v46 = vmul.f32 %v847_v27, %v844_v25  ;;  %v951_v48 = vmul.f32 %v1734_v41, %v2294_v13 }
 0x329   : > { %880 = vrot.lane.b32.xlu0 %v850_v32, %s1961_s11  ;;  %v956_v9 = vmul.f32 %v2476_v28, %v949_v44  ;;  %v948_v47 = vmul.f32 %v1736_v43, %v2297_v14  ;;  %v1738_v22 = vpop.eup %1737 }
 0x32a   : > { %861 = vrot.lane.b32.xlu1 %v804_v34, %s1959_s13  ;;  %v1000_v37 = vpop.permute.xlu0 %999  ;;  %v1740_v49 = vpop.eup %1739  ;;  %v958_v51 = vmul.f32 %v2476_v28, %v951_v48  ;;  %v950_v53 = vmul.f32 %v1738_v22, %v2299_v15 }
 0x32b   : > { %v955_v52 = vmul.f32 %v2476_v28, %v948_v47  ;;  %v996_v55 = vmul.f32 %v1740_v49, %v2292_v12 }
 0x32c   : > { %v957_v63 = vmul.f32 %v2476_v28, %v950_v53 }
 0x32d   : > { %884 = vrot.lane.b32.xlu0 %v852_v40, %s1961_s11  ;;  %v1742_v54 = vpop.eup %1741  ;;  %v1003_v62 = vmul.f32 %v1000_v37, %v996_v55 }
 0x32e   : > { %878 = vrot.lane.b32.xlu1 %v849_v42, %s1961_s11  ;;  %v898_v45 = vpop.permute.xlu0 %897  ;;  %v1744_v60 = vpop.eup %1743  ;;  %v995_v0 = vmul.f32 %v1742_v54, %v2297_v14 }
 0x32f   : > { %1446 = vst.msk [vmem:[%s2355_s5 + $0x48] sm:$0xff] %vm466_vm1, %v898_v45  ;;  %v998_v56 = vmul.f32 %v1744_v60, %v2294_v13 }
 0x330   : > { %v1002_v28 = vmul.f32 %v1000_v37, %v995_v0 }
 0x331   : > { %1012 = vrot.lane.b32.xlu0 %v956_v9, %s1962_s21  ;;  %v1005_v2 = vmul.f32 %v1000_v37, %v998_v56 }
 0x332   : > { %882 = vrot.lane.b32.xlu1 %v851_v46, %s1961_s11  ;;  %v902_v50 = vpop.permute.xlu0 %901  ;;  %v1746_v1 = vpop.eup %1745 }
 0x333   : > { %1448 = vst.msk [vmem:[%s2355_s5 + $0x58] sm:$0xff] %vm466_vm1, %v902_v50  ;;  %v997_v14 = vmul.f32 %v1746_v1, %v2299_v15 }
 0x335   : > { %1016 = vrot.lane.b32.xlu0 %v958_v51, %s1962_s21  ;;  %v1004_v4 = vmul.f32 %v1000_v37, %v997_v14 }
 0x336   : > { %1010 = vrot.lane.b32.xlu1 %v955_v52, %s1962_s21  ;;  %v1051_v61 = vpop.permute.xlu0 %1050 }
 0x337   : > { %1458 = vst.msk [vmem:[%s2355_s5 + $0x68] sm:$0xff] %vm466_vm1, %v1051_v61 }
 0x339   : > { %1033 = vrot.lane.b32.xlu0 %v1003_v62, %s1954_s6 }
 0x33a   : > { %1014 = vrot.lane.b32.xlu1 %v957_v63, %s1962_s21  ;;  %v577_v12 = vpop.permute.xlu0 %576 }
 0x33b   : > { %585 = vst.msk [vmem:[%s2543_s7 + $0x18] sm:$0xff] %vm466_vm1, %v577_v12 }
 0x33d   : > { %1037 = vrot.lane.b32.xlu0 %v1005_v2, %s1954_s6 }
 0x33e   : > { %1031 = vrot.lane.b32.xlu1 %v1002_v28, %s1954_s6  ;;  %v711_v23 = vpop.permute.xlu0 %710 }
 0x33f   : > { %1428 = vst.msk [vmem:[%s2396_s16 + $0x38] sm:$0xff] %vm466_vm1, %v711_v23 }
 0x340   : > { %v573_v3 = vpop.permute.xlu1 %572 }
 0x341   : > { %583 = vst.msk [vmem:[%s2543_s7 + $0x8] sm:$0xff] %vm466_vm1, %v573_v3  ;;  %1054 = vrot.lane.b32.xlu0 %v2294_v13, %s1964_s12 }
 0x342   : > { %1035 = vrot.lane.b32.xlu1 %v1004_v4, %s1954_s6  ;;  %s2616_s6 = scalar_lea.sflag [#allocation12], %s1070_s2 }
 0x344   : > { %v707_v8 = vpop.permute.xlu1 %706  ;;  %v728_v57 = vpop.permute.xlu0 %727 }
 0x345   : > { %1426 = vst.msk [vmem:[%s2396_s16 + $0x28] sm:$0xff] %vm466_vm1, %v707_v8  ;;  %1430 = vst.msk [vmem:[%s2543_s7 + $0x28] sm:$0xff] %vm466_vm1, %v728_v57 }
 0x346   : > { %1052 = vrot.lane.b32.xlu1 %v2299_v15, %s1964_s12 }
 0x348   : > { %v732_v5 = vpop.permute.xlu0 %731 }
 0x349   : > { %1432 = vst.msk [vmem:[%s2543_s7 + $0x38] sm:$0xff] %vm466_vm1, %v732_v5 }
 0x34c   : > { %v860_v13 = vpop.permute.xlu0 %859 }
 0x34d   : > { %1438 = vst.msk [vmem:[%s2396_s16 + $0x48] sm:$0xff] %vm466_vm1, %v860_v13 }
 0x350   : > { %v864_v6 = vpop.permute.xlu0 %863 }
 0x351   : > { %1440 = vst.msk [vmem:[%s2396_s16 + $0x58] sm:$0xff] %vm466_vm1, %v864_v6 }
 0x380   : > { %v571_v7 = vpop.permute.xlu1 %570 }
 0x381   : > { %582 = vst.msk [vmem:[%s2543_s7] sm:$0xff] %vm466_vm1, %v571_v7 }
 0x384   : > { %v575_v10 = vpop.permute.xlu1 %574 }
 0x385   : > { %584 = vst.msk [vmem:[%s2543_s7 + $0x10] sm:$0xff] %vm466_vm1, %v575_v10 }
 0x388   : > { %v705_v15 = vpop.permute.xlu1 %704 }
 0x389   : > { %1425 = vst.msk [vmem:[%s2396_s16 + $0x20] sm:$0xff] %vm466_vm1, %v705_v15 }
 0x38c   : > { %v709_v11 = vpop.permute.xlu1 %708 }
 0x38d   : > { %1427 = vst.msk [vmem:[%s2396_s16 + $0x30] sm:$0xff] %vm466_vm1, %v709_v11 }
 0x390   : > { %v726_v16 = vpop.permute.xlu1 %725 }
 0x391   : > { %1429 = vst.msk [vmem:[%s2543_s7 + $0x20] sm:$0xff] %vm466_vm1, %v726_v16 }
 0x394   : > { %v730_v17 = vpop.permute.xlu1 %729 }
 0x395   : > { %1431 = vst.msk [vmem:[%s2543_s7 + $0x30] sm:$0xff] %vm466_vm1, %v730_v17 }
 0x398   : > { %v858_v18 = vpop.permute.xlu1 %857 }
 0x399   : > { %1437 = vst.msk [vmem:[%s2396_s16 + $0x40] sm:$0xff] %vm466_vm1, %v858_v18 }
 0x39b   : > { %v881_v19 = vpop.permute.xlu0 %880 }
 0x39c   : > { %1442 = vst.msk [vmem:[%s2543_s7 + $0x48] sm:$0xff] %vm466_vm1, %v881_v19  ;;  %v862_v20 = vpop.permute.xlu1 %861 }
 0x39d   : > { %1439 = vst.msk [vmem:[%s2396_s16 + $0x50] sm:$0xff] %vm466_vm1, %v862_v20 }
 0x39f   : > { %v885_v21 = vpop.permute.xlu0 %884 }
 0x3a0   : > { %1444 = vst.msk [vmem:[%s2543_s7 + $0x58] sm:$0xff] %vm466_vm1, %v885_v21  ;;  %v879_v26 = vpop.permute.xlu1 %878 }
 0x3a1   : > { %1441 = vst.msk [vmem:[%s2543_s7 + $0x40] sm:$0xff] %vm466_vm1, %v879_v26 }
 0x3a3   : > { %v1013_v58 = vpop.permute.xlu0 %1012 }
 0x3a4   : > { %1450 = vst.msk [vmem:[%s2396_s16 + $0x68] sm:$0xff] %vm466_vm1, %v1013_v58  ;;  %v883_v24 = vpop.permute.xlu1 %882 }
 0x3a5   : > { %1443 = vst.msk [vmem:[%s2543_s7 + $0x50] sm:$0xff] %vm466_vm1, %v883_v24 }
 0x3a7   : > { %v1017_v27 = vpop.permute.xlu0 %1016 }
 0x3a8   : > { %1452 = vst.msk [vmem:[%s2396_s16 + $0x78] sm:$0xff] %vm466_vm1, %v1017_v27  ;;  %v1011_v29 = vpop.permute.xlu1 %1010 }
 0x3a9   : > { %1449 = vst.msk [vmem:[%s2396_s16 + $0x60] sm:$0xff] %vm466_vm1, %v1011_v29 }
 0x3ab   : > { %v1034_v30 = vpop.permute.xlu0 %1033 }
 0x3ac   : > { %1454 = vst.msk [vmem:[%s2543_s7 + $0x68] sm:$0xff] %vm466_vm1, %v1034_v30  ;;  %v1015_v31 = vpop.permute.xlu1 %1014 }
 0x3ad   : > { %1451 = vst.msk [vmem:[%s2396_s16 + $0x70] sm:$0xff] %vm466_vm1, %v1015_v31 }
 0x3af   : > { %v1038_v32 = vpop.permute.xlu0 %1037 }
 0x3b0   : > { %1456 = vst.msk [vmem:[%s2543_s7 + $0x78] sm:$0xff] %vm466_vm1, %v1038_v32  ;;  %v1032_v33 = vpop.permute.xlu1 %1031 }
 0x3b1   : > { %1453 = vst.msk [vmem:[%s2543_s7 + $0x60] sm:$0xff] %vm466_vm1, %v1032_v33 }
 0x3b3   : > { %v1055_v34 = vpop.permute.xlu0 %1054 }
 0x3b4   : > { %1460 = vst.msk [vmem:[%s2355_s5 + $0x78] sm:$0xff] %vm466_vm1, %v1055_v34  ;;  %v1036_v59 = vpop.permute.xlu1 %1035 }
 0x3b5   : > { %1455 = vst.msk [vmem:[%s2543_s7 + $0x70] sm:$0xff] %vm466_vm1, %v1036_v59 }
 0x3b8   : > { %v1053_v35 = vpop.permute.xlu1 %1052 }
 0x3b9   : > { %1459 = vst.msk [vmem:[%s2355_s5 + $0x70] sm:$0xff] %vm466_vm1, %v1053_v35 }
 0x3ba   : > { %s1464_s20 = sshll.u32 %s1927_s24, 2  ;;  %s1465_s8 = sshll.u32 %s1931_s25, 5 }
 0x3bb   : > { %s1088_s1 = sadd.s32 %s1465_s8, %s1464_s20  ;;  %s1107_s15 = sshll.u32 %s2396_s16, 4  ;;  %s1108_s15 = int_to_ptr.vmem [resolvable:$true] %s1107_s15 }
 0x3bc   : > { %s2621_s13 = sshll.u32 %s1088_s1, 7  ;;  %s1965_s11 = smov 512  }
 0x3bd   : > { %s1090_s17 = scalar_lea.hbm %s2715_s4, %s2621_s13  ;;  %1523 = sst [smem:[#allocation15]] (%p2189_p3), %s1965_s11 }
 0x3be   : > { %s1966_s21 = smov 1024   ;;  %s1967_s24 = smov 4  }
 0x3bf   : > { %1524 = sst [smem:[#allocation15 + $0x1]] (%p2189_p3), %s1966_s21  ;;  %s1968_s25 = smov 128  }
 0x3c0   : > { %1525 = sst [smem:[#allocation15 + $0x2]] (%p2189_p3), %s1967_s24  ;;  %s1969_s14 = smov 8  }
 0x3c1   : > { %1526 = sst [smem:[#allocation15 + $0x3]] (%p2189_p3), %s1968_s25  ;;  %s1970_s16 = smov [#allocation14]  }
 0x3c2   : > { %1527 = sst [smem:[#allocation15 + $0x4]] (%p2189_p3), %s1968_s25  ;;  %s1971_s3 = smov 0  }
 0x3c3   : > { %1528 = sst [smem:[#allocation15 + $0x5]] (%p2189_p3), %s1969_s14 }
 0x3c4   : > { %1529 = dma.general (%p2189_p3), %s1108_s15, 2048, %s1090_s17, %s1066_s9, %s1970_s16, [#allocation15], %s1971_s3, 0  }
 0x3c5   : > { %s2755_s20 = sld [smem:[#allocation31_spill]]  ;;  %s1154_s1 = sshll.u32 %s2543_s7, 4  ;;  %s1155_s1 = int_to_ptr.vmem [resolvable:$true] %s1154_s1 }
 0x3c6   : > { %s1972_s29 = smov 512   ;;  %s1973_s9 = smov 1024  }
 0x3c7   : > { %1530 = sst [smem:[#allocation17]] (%p2189_p3), %s1972_s29  ;;  %s1974_s15 = smov 4  }
 0x3c8   : > { %1531 = sst [smem:[#allocation17 + $0x1]] (%p2189_p3), %s1973_s9  ;;  %s1975_s19 = smov 128  }
 0x3c9   : > { %1532 = sst [smem:[#allocation17 + $0x2]] (%p2189_p3), %s1974_s15  ;;  %s1976_s17 = smov 8  }
 0x3ca   : > { %1533 = sst [smem:[#allocation17 + $0x3]] (%p2189_p3), %s1975_s19  ;;  %s1977_s11 = smov [#allocation16]  }
 0x3cb   : > { %s1137_s8 = scalar_lea.hbm %s2755_s20, %s2621_s13  ;;  %1534 = sst [smem:[#allocation17 + $0x4]] (%p2189_p3), %s1975_s19 }
 0x3cc   : > { %1535 = sst [smem:[#allocation17 + $0x5]] (%p2189_p3), %s1976_s17  ;;  %s1978_s7 = smov 0  }
 0x3cd   : > { %1536 = dma.general (%p2189_p3), %s1155_s1, 2048, %s1137_s8, %s2616_s6, %s1977_s11, [#allocation17], %s1978_s7, 0  }
 0x3ce   : > { %s2756_s25 = sld [smem:[#allocation32_spill]]  ;;  %s1201_s16 = sshll.u32 %s2355_s5, 4  ;;  %s1202_s16 = int_to_ptr.vmem [resolvable:$true] %s1201_s16 }
 0x3cf   : > { %s1979_s3 = smov 512   ;;  %s1980_s12 = smov 1024  }
 0x3d0   : > { %1537 = sst [smem:[#allocation19]] (%p2189_p3), %s1979_s3  ;;  %s1981_s2 = smov 4  }
 0x3d1   : > { %1538 = sst [smem:[#allocation19 + $0x1]] (%p2189_p3), %s1980_s12  ;;  %s1982_s20 = smov 128  }
 0x3d2   : > { %1539 = sst [smem:[#allocation19 + $0x2]] (%p2189_p3), %s1981_s2  ;;  %s1983_s8 = smov 8  }
 0x3d3   : > { %1540 = sst [smem:[#allocation19 + $0x3]] (%p2189_p3), %s1982_s20  ;;  %s1985_s5 = smov 0  }
 0x3d4   : > { %s1184_s14 = scalar_lea.hbm %s2756_s25, %s2621_s13  ;;  %1541 = sst [smem:[#allocation19 + $0x4]] (%p2189_p3), %s1982_s20 }
 0x3d5   : > { %1542 = sst [smem:[#allocation19 + $0x5]] (%p2189_p3), %s1983_s8  ;;  %s1984_s13 = smov [#allocation18]  }
 0x3d6   : > { %1543 = dma.general (%p2189_p3), %s1202_s16, 2048, %s1184_s14, %s2616_s6, %s1984_s13, [#allocation19], %s1985_s5, 0  }
 0x3d7 PF: > { %s2757_s1 = sld [smem:[#allocation25_spill]]  ;;  %s2758_s29 = sld [smem:[#allocation26_spill]] }
 0x3d8   : > { %p1578_p5 = scmp.ge.s32.totalorder %s1943_s28, 2 }
 0x3dd   : > { %s1229_s9 = sand.u32 1, %s2757_s1   ;;  %p2759_p7 = scmp.ne.s32.totalorder %s2758_s29, 0 }
 0x3de   : > { %s1230_s15 = scalar_lea.sflag [#allocation4], %s1229_s9 }
 0x3df   : > { %p1562_p11 = pnand %p1578_p5, %p2759_p7 }
 0x3e1   : > { %1906 = dma.done.wait (!%p1562_p11), %s1230_s15, 2048  }
 0x3e2   : > { %1908 = vsyncadd (!%p1562_p11), %s1230_s15, 4294965248  ;;  %s2760_s19 = sadd.s32 4294967294, %s1943_s28  }
 0x3e3   : > { %s1238_s17 = sand.u32 1, %s2760_s19  }
 0x3e4   : > { %s1239_s11 = scalar_lea.sflag [#allocation12], %s1238_s17 }
 0x3e5   : > { %1910 = dma.done.wait (!%p1562_p11), %s1239_s11, 4096  }
 0x3e6   : > { %1912 = vsyncadd (!%p1562_p11), %s1239_s11, 4294963200  ;;  %s28_s28 = sadd.s32 1, %s1943_s28   ;;  %s2761_s10 = sld [smem:[#allocation27_spill]] }
 0x3e7   : > { %p25_p3 = scmp.ge.s32.totalorder %s28_s28, 6   ;;  %s2762_s21 = smov %s1919_s22 }
 0x3e8   : > { %s2763_s22 = smov %s1923_s23  ;;  %s2764_s23 = smov %s2206_s18 }
 0x3e9   : > { %s2765_s24 = smov %s1935_s26  ;;  %s2766_s25 = smov %s1939_s27 }
 0x3ea   : > { %s2767_s26 = smov %s2770_s30  ;;  %27 = sbr.rel (!%p25_p3) target bundleno = 17 (0x11), region = 149 }
 0x3ec   : > { %s2768_s27 = smov %s2761_s10 }
 0x3f1   :  { %1253 = vsyncpa [#allocation3], 1 }
 0x3f2   :  { %1255 = vsyncpa [#allocation3 + $0x1], 1 }
 0x3f3   :  { %1256 = vsyncpa [#allocation6], 1 }
 0x3f4   :  { %1257 = vsyncpa [#allocation9], 1 }
 0x3f5   :  { %1258 = vsyncpa [#allocation4], 1 }
 0x3f6   :  { %1260 = vsyncpa [#allocation4 + $0x1], 1 }
 0x3f7   :  { %1261 = vsyncpa [#allocation12], 1 }
 0x3f8   :  { %1263 = vsyncpa [#allocation12 + $0x1], 1 }

</bundles_post_ra>
